<compile_context>
chip_gen: v7x
topology: tpu7x:2x2x1
jax: 0.10.0
libtpu: 0.0.40
codegen_flags: <defaults>
</compile_context>

<pallas_src>
import functools
import math

import jax
import jax.numpy as jnp
from jax import lax
from jax.experimental import pallas as pl
from jax.experimental.pallas import tpu as pltpu

VMEM_LIMIT_BYTES = 48 * 1024 * 1024   # below physical VMEM on v5e/v6e/v7x
MAX_ROW_TILE = 256                    # rows per grid step for row-tiled kernels
MAX_VOCAB_TILE = 2048                 # vocab lanes per grid step (fc projection)
LN_EPS = 1e-5


# ----------------------------------------------------------------------------
# Small helpers
# ----------------------------------------------------------------------------
def _round_up(x, m):
    return (x + m - 1) // m * m


def _row_tile(n, max_tile=MAX_ROW_TILE):
    return min(_round_up(max(n, 1), 8), max_tile)


def _pad_rows(x2, tile):
    n = x2.shape[0]
    pad = _round_up(n, tile) - n
    if pad:
        x2 = jnp.concatenate(
            [x2, jnp.zeros((pad,) + x2.shape[1:], x2.dtype)], axis=0)
    return x2


def _cparams(dims):
    return pltpu.CompilerParams(dimension_semantics=dims,
                                vmem_limit_bytes=VMEM_LIMIT_BYTES)


# ----------------------------------------------------------------------------
# In-kernel math helpers
# ----------------------------------------------------------------------------
def _gelu(x):
    # tanh-approx GELU: jnp.tanh runs on the EUP slot, keeping the VALU free.
    c = 0.7978845608028654  # sqrt(2/pi)
    return 0.5 * x * (1.0 + jnp.tanh(c * (x + 0.044715 * x * x * x)))


def _layernorm(x, gamma, beta, eps):
    mu = jnp.mean(x, axis=-1, keepdims=True)
    xc = x - mu
    var = jnp.mean(xc * xc, axis=-1, keepdims=True)
    return xc * lax.rsqrt(var + eps) * gamma + beta


# ----------------------------------------------------------------------------
# Fused multi-head attention kernel
#   pre-LN(q) / pre-LN(kv) -> Q proj, fused KV proj -> per-head softmax(QK^T)V
#   -> output projection (accumulated per head, no concat) -> optional residual
# grid = (B,), one batch element per step; all weights are grid-invariant.
# ----------------------------------------------------------------------------
def _mha_kernel(*refs, num_heads, add_residual, self_attn, eps):
    if self_attn:
        (q_ref, gq_ref, bq_ref,
         wq_ref, bqp_ref, wkv_ref, bkvp_ref, wo_ref, bop_ref, o_ref) = refs
    else:
        (q_ref, kv_ref, gq_ref, bq_ref, gkv_ref, bkv_ref,
         wq_ref, bqp_ref, wkv_ref, bkvp_ref, wo_ref, bop_ref, o_ref) = refs

    x_q = q_ref[0].astype(jnp.float32)            # (Lq, D)
    Lq, D = x_q.shape
    hd = D // num_heads
    scale = 1.0 / math.sqrt(hd)

    q_ln = _layernorm(x_q, gq_ref[...], bq_ref[...], eps)
    if self_attn:
        kv_ln = q_ln
    else:
        x_kv = kv_ref[0].astype(jnp.float32)      # (Lk, D)
        kv_ln = _layernorm(x_kv, gkv_ref[...], bkv_ref[...], eps)

    # Fused projections: bf16 inputs, f32 accumulation on the MXU.
    q = jnp.dot(q_ln.astype(jnp.bfloat16), wq_ref[...],
                preferred_element_type=jnp.float32) + bqp_ref[...]
    kv = jnp.dot(kv_ln.astype(jnp.bfloat16), wkv_ref[...],
                 preferred_element_type=jnp.float32) + bkvp_ref[...]
    k = kv[:, :D]
    v = kv[:, D:]

    # TODO(synk): heads stay as a static unrolled loop over lane-aligned
    #             64-wide slices; a batched (H, L, hd) einsum would need a 3-D
    #             relayout that Mosaic may reject, so we keep the proven form.
    wo = wo_ref[...]                              # (D, D) bf16, pre-transposed
    acc = jnp.zeros((Lq, D), jnp.float32)
    for h in range(num_heads):
        sl = slice(h * hd, (h + 1) * hd)
        qh = q[:, sl].astype(jnp.bfloat16)
        kh = k[:, sl].astype(jnp.bfloat16)
        vh = v[:, sl].astype(jnp.bfloat16)
        # q @ k^T without an explicit transpose.
        s = lax.dot_general(qh, kh, (((1,), (1,)), ((), ())),
                            preferred_element_type=jnp.float32) * scale
        s = s - jnp.max(s, axis=-1, keepdims=True)
        p = jnp.exp(s)
        p = p * pl.reciprocal(jnp.sum(p, axis=-1, keepdims=True), approx=True)
        ctx = jnp.dot(p.astype(jnp.bfloat16), vh,
                      preferred_element_type=jnp.float32)
        # per-head partial of the output projection (avoids concatenate)
        acc = acc + jnp.dot(ctx.astype(jnp.bfloat16), wo[sl, :],
                            preferred_element_type=jnp.float32)

    y = acc + bop_ref[...]
    if add_residual:
        y = y + x_q
    o_ref[0] = y.astype(o_ref.dtype)


def mha_block(q_in, ln_q, attn, num_heads, *, kv_in=None, ln_kv=None,
              add_residual=False, eps=LN_EPS):
    """Fused pre-LN multi-head attention. kv_in=None -> self-attention."""
    self_attn = kv_in is None
    B, Lq, D = q_in.shape

    def rep(shape):
        return pl.BlockSpec(shape, lambda b, _n=len(shape): (0,) * _n)

    arrays = [q_in]
    specs = [pl.BlockSpec((1, Lq, D), lambda b: (b, 0, 0))]
    if not self_attn:
        Lk = kv_in.shape[1]
        arrays.append(kv_in)
        specs.append(pl.BlockSpec((1, Lk, D), lambda b: (b, 0, 0)))
    arrays += [ln_q[0], ln_q[1]]
    specs += [rep((1, D)), rep((1, D))]
    if not self_attn:
        arrays += [ln_kv[0], ln_kv[1]]
        specs += [rep((1, D)), rep((1, D))]
    arrays += [attn["wq_t"], attn["bq"], attn["wkv_t"], attn["bkv"],
               attn["wo_t"], attn["bo"]]
    specs += [rep((D, D)), rep((1, D)), rep((D, 2 * D)), rep((1, 2 * D)),
              rep((D, D)), rep((1, D))]

    return pl.pallas_call(
        functools.partial(_mha_kernel, num_heads=num_heads,
                          add_residual=add_residual, self_attn=self_attn,
                          eps=eps),
        out_shape=jax.ShapeDtypeStruct((B, Lq, D), jnp.float32),
        grid=(B,),
        in_specs=specs,
        out_specs=pl.BlockSpec((1, Lq, D), lambda b: (b, 0, 0)),
        compiler_params=_cparams(("parallel",)),
    )(*arrays)


# ----------------------------------------------------------------------------
# Fused MLP block kernel:  out = x + W2 @ GELU(W1 @ LN(x) + b1) + b2
# Row-tiled over the flattened (B*L) dimension.
# ----------------------------------------------------------------------------
def _ffn_kernel(x_ref, g_ref, b_ref, w1_ref, b1_ref, w2_ref, b2_ref, o_ref,
                *, eps):
    x = x_ref[...].astype(jnp.float32)
    h = _layernorm(x, g_ref[...], b_ref[...], eps)
    h = jnp.dot(h.astype(jnp.bfloat16), w1_ref[...],
                preferred_element_type=jnp.float32) + b1_ref[...]
    h = _gelu(h)
    y = jnp.dot(h.astype(jnp.bfloat16), w2_ref[...],
                preferred_element_type=jnp.float32) + b2_ref[...]
    o_ref[...] = (x + y).astype(o_ref.dtype)


def ffn_block(x, ln, w1_t, b1, w2_t, b2, eps=LN_EPS):
    B, L, D = x.shape
    H = w1_t.shape[1]
    x2 = x.reshape(-1, D)
    n = x2.shape[0]
    tm = _row_tile(n)
    x2 = _pad_rows(x2, tm)
    np_ = x2.shape[0]
    out = pl.pallas_call(
        functools.partial(_ffn_kernel, eps=eps),
        out_shape=jax.ShapeDtypeStruct((np_, D), jnp.float32),
        grid=(np_ // tm,),
        in_specs=[
            pl.BlockSpec((tm, D), lambda i: (i, 0)),
            pl.BlockSpec((1, D), lambda i: (0, 0)),
            pl.BlockSpec((1, D), lambda i: (0, 0)),
            pl.BlockSpec((D, H), lambda i: (0, 0)),
            pl.BlockSpec((1, H), lambda i: (0, 0)),
            pl.BlockSpec((H, D), lambda i: (0, 0)),
            pl.BlockSpec((1, D), lambda i: (0, 0)),
        ],
        out_specs=pl.BlockSpec((tm, D), lambda i: (i, 0)),
        compiler_params=_cparams(("parallel",)),
    )(x2, ln[0], ln[1], w1_t, b1, w2_t, b2)
    return out[:n].reshape(B, L, D)


# ----------------------------------------------------------------------------
# MLM head, stage 1:  ln_post -> dense -> GELU -> ln   (row-tiled)
# ----------------------------------------------------------------------------
def _head_pre_kernel(x_ref, g0_ref, b0_ref, wd_ref, bd_ref, g1_ref, b1_ref,
                     o_ref, *, eps):
    x = x_ref[...].astype(jnp.float32)
    h = _layernorm(x, g0_ref[...], b0_ref[...], eps)            # ln_post
    h = jnp.dot(h.astype(jnp.bfloat16), wd_ref[...],
                preferred_element_type=jnp.float32) + bd_ref[...]
    h = _gelu(h)
    h = _layernorm(h, g1_ref[...], b1_ref[...], eps)            # mlm_head.ln
    o_ref[...] = h.astype(o_ref.dtype)


def mlm_head_pre(x2, ln_post, wd_t, bd, ln_mlm, eps=LN_EPS):
    n, D = x2.shape
    tm = _row_tile(n)
    x2p = _pad_rows(x2, tm)
    np_ = x2p.shape[0]
    out = pl.pallas_call(
        functools.partial(_head_pre_kernel, eps=eps),
        out_shape=jax.ShapeDtypeStruct((np_, D), jnp.float32),
        grid=(np_ // tm,),
        in_specs=[
            pl.BlockSpec((tm, D), lambda i: (i, 0)),
            pl.BlockSpec((1, D), lambda i: (0, 0)),
            pl.BlockSpec((1, D), lambda i: (0, 0)),
            pl.BlockSpec((D, D), lambda i: (0, 0)),
            pl.BlockSpec((1, D), lambda i: (0, 0)),
            pl.BlockSpec((1, D), lambda i: (0, 0)),
            pl.BlockSpec((1, D), lambda i: (0, 0)),
        ],
        out_specs=pl.BlockSpec((tm, D), lambda i: (i, 0)),
        compiler_params=_cparams(("parallel",)),
    )(x2p, ln_post[0], ln_post[1], wd_t, bd, ln_mlm[0], ln_mlm[1])
    return out[:n]


# ----------------------------------------------------------------------------
# MLM head, stage 2:  vocab projection, 2-D tiled (rows x vocab)
# ----------------------------------------------------------------------------
def _vocab_kernel(x_ref, w_ref, b_ref, o_ref):
    o_ref[...] = (jnp.dot(x_ref[...].astype(jnp.bfloat16), w_ref[...],
                          preferred_element_type=jnp.float32)
                  + b_ref[...]).astype(o_ref.dtype)


def vocab_projection(x2, w_t, b, vocab_size):
    n, D = x2.shape
    V = vocab_size
    tv = min(MAX_VOCAB_TILE, _round_up(V, 128))
    Vp = _round_up(V, tv)
    if Vp != V:
        w_t = jnp.concatenate([w_t, jnp.zeros((D, Vp - V), w_t.dtype)], axis=1)
        b = jnp.concatenate([b, jnp.zeros((1, Vp - V), b.dtype)], axis=1)
    tm = _row_tile(n)
    x2p = _pad_rows(x2, tm)
    np_ = x2p.shape[0]
    out = pl.pallas_call(
        _vocab_kernel,
        out_shape=jax.ShapeDtypeStruct((np_, Vp), jnp.float32),
        grid=(np_ // tm, Vp // tv),
        in_specs=[
            pl.BlockSpec((tm, D), lambda i, j: (i, 0)),
            pl.BlockSpec((D, tv), lambda i, j: (0, j)),
            pl.BlockSpec((1, tv), lambda i, j: (0, j)),
        ],
        out_specs=pl.BlockSpec((tm, tv), lambda i, j: (i, j)),
        compiler_params=_cparams(("parallel", "parallel")),
    )(x2p, w_t, b)
    return out[:n, :V]


# ----------------------------------------------------------------------------
# Parameter init (PyTorch-style shapes, mirrors MLM.__init__ init stds)
# ----------------------------------------------------------------------------
def init_params(key, embed_dim, num_layers, vocab_size):
    D = embed_dim
    scale = D ** (-0.5)
    proj_std = scale * (2 * num_layers) ** (-0.5)
    attn_std = scale
    fc_std = (2 * D) ** (-0.5)

    keys = list(jax.random.split(key, 4 + 4 * num_layers))
    kit = iter(keys)

    def normal(shape, std):
        return std * jax.random.normal(next(kit), shape, dtype=jnp.float32)

    def ln(dim):
        return (jnp.ones((dim,), jnp.float32), jnp.zeros((dim,), jnp.float32))

    params = {
        "cross_attn": {
            "in_proj_w": normal((3 * D, D), attn_std),
            "in_proj_b": jnp.zeros((3 * D,), jnp.float32),
            "out_proj_w": normal((D, D), proj_std),
            "out_proj_b": jnp.zeros((D,), jnp.float32),
        },
        "ln_pre_t": ln(D),
        "ln_pre_i": ln(D),
        "ln_post": ln(D),
        "blocks": [],
        "mlm_head": {
            "dense_w": normal((D, D), 0.02),
            "dense_b": jnp.zeros((D,), jnp.float32),
            "ln": ln(D),
            "fc_w": normal((vocab_size, D), 0.02),
            "fc_b": jnp.zeros((vocab_size,), jnp.float32),
        },
    }
    for _ in range(num_layers):
        params["blocks"].append({
            "ln_1": ln(D),
            "attn": {
                "in_proj_w": normal((3 * D, D), attn_std),
                "in_proj_b": jnp.zeros((3 * D,), jnp.float32),
                "out_proj_w": normal((D, D), proj_std),
                "out_proj_b": jnp.zeros((D,), jnp.float32),
            },
            "ln_2": ln(D),
            "dense1_w": normal((4 * D, D), fc_std),
            "dense1_b": jnp.zeros((4 * D,), jnp.float32),
            "dense2_w": normal((D, 4 * D), proj_std),
            "dense2_b": jnp.zeros((D,), jnp.float32),
        })
    return params


# ----------------------------------------------------------------------------
# One-time weight preparation: transpose to (in, out), cast to bf16, reshape
# biases / LN params to lane-dense (1, D) blocks.
# ----------------------------------------------------------------------------
def prepare_params(params):
    D = params["ln_post"][0].shape[0]

    def ln2(p):
        g, b = p
        return (g.reshape(1, -1).astype(jnp.float32),
                b.reshape(1, -1).astype(jnp.float32))

    def attn(a):
        w, b = a["in_proj_w"], a["in_proj_b"]
        return {
            "wq_t": w[:D].T.astype(jnp.bfloat16),            # (D, D)
            "bq": b[:D].reshape(1, D).astype(jnp.float32),
            "wkv_t": w[D:].T.astype(jnp.bfloat16),           # (D, 2D) fused KV
            "bkv": b[D:].reshape(1, 2 * D).astype(jnp.float32),
            "wo_t": a["out_proj_w"].T.astype(jnp.bfloat16),  # (D, D)
            "bo": a["out_proj_b"].reshape(1, D).astype(jnp.float32),
        }

    mh = params["mlm_head"]
    prep = {
        "cross_attn": attn(params["cross_attn"]),
        "ln_pre_t": ln2(params["ln_pre_t"]),
        "ln_pre_i": ln2(params["ln_pre_i"]),
        "ln_post": ln2(params["ln_post"]),
        "blocks": [],
        "mlm_head": {
            "dense_w_t": mh["dense_w"].T.astype(jnp.bfloat16),
            "dense_b": mh["dense_b"].reshape(1, D).astype(jnp.float32),
            "ln": ln2(mh["ln"]),
            "fc_w_t": mh["fc_w"].T.astype(jnp.bfloat16),     # (D, V)
            "fc_b": mh["fc_b"].reshape(1, -1).astype(jnp.float32),
        },
    }
    for blk in params["blocks"]:
        prep["blocks"].append({
            "ln_1": ln2(blk["ln_1"]),
            "attn": attn(blk["attn"]),
            "ln_2": ln2(blk["ln_2"]),
            "w1_t": blk["dense1_w"].T.astype(jnp.bfloat16),  # (D, 4D)
            "b1": blk["dense1_b"].reshape(1, -1).astype(jnp.float32),
            "w2_t": blk["dense2_w"].T.astype(jnp.bfloat16),  # (4D, D)
            "b2": blk["dense2_b"].reshape(1, D).astype(jnp.float32),
        })
    return prep


# ----------------------------------------------------------------------------
# Forward pass (== MLM.forward)
# ----------------------------------------------------------------------------
def mlm_forward(params, text_feats, image_feats, *, num_heads, vocab_size):
    # cross_former: cross_attn(ln_pre_t(q), ln_pre_i(k), ln_pre_i(v)) — no residual
    x = mha_block(text_feats, params["ln_pre_t"], params["cross_attn"],
                  num_heads, kv_in=image_feats, ln_kv=params["ln_pre_i"],
                  add_residual=False)

    # residual encoder: pre-LN transformer blocks
    for blk in params["blocks"]:
        x = mha_block(x, blk["ln_1"], blk["attn"], num_heads,
                      add_residual=True)                      # x += attn(ln1(x))
        x = ffn_block(x, blk["ln_2"], blk["w1_t"], blk["b1"],
                      blk["w2_t"], blk["b2"])                 # x += mlp(ln2(x))

    B, Lt, D = x.shape
    mh = params["mlm_head"]
    h = mlm_head_pre(x.reshape(-1, D), params["ln_post"],
                     mh["dense_w_t"], mh["dense_b"], mh["ln"])
    scores = vocab_projection(h, mh["fc_w_t"], mh["fc_b"], vocab_size)
    return scores                                             # (B*Lt, V) float32


# ----------------------------------------------------------------------------
if __name__ == "__main__":
    embed_dim = 128          # -> num_heads = embed_dim // 64 = 2
    num_layers = 2
    vocab_size = 512
    B, Lt, Li = 2, 8, 16     # batch, text length, image-token length

    key = jax.random.PRNGKey(0)
    k_params, k_text, k_img = jax.random.split(key, 3)

    raw_params = init_params(k_params, embed_dim, num_layers, vocab_size)
    params = prepare_params(raw_params)

    text_feats = jax.random.normal(k_text, (B, Lt, embed_dim), dtype=jnp.float32)
    image_feats = jax.random.normal(k_img, (B, Li, embed_dim), dtype=jnp.float32)

    fwd = jax.jit(functools.partial(mlm_forward,
                                    num_heads=embed_dim // 64,
                                    vocab_size=vocab_size))
    scores = fwd(params, text_feats, image_feats)
    scores = jax.block_until_ready(scores)

    assert scores.shape == (B * Lt, vocab_size)
    assert scores.dtype == jnp.float32
    assert bool(jnp.all(jnp.isfinite(scores)))
    print("KERNEL_OK")
</pallas_src>

<mosaic_0001>
module attributes {stable_mosaic.version = 11 : i64} {
  func.func @_mha_kernel(%arg0: i32, %arg1: memref<1x8x128xf32, #tpu.memory_space<vmem>>, %arg2: memref<1x128xf32, #tpu.memory_space<vmem>>, %arg3: memref<1x128xf32, #tpu.memory_space<vmem>>, %arg4: memref<128x128xbf16, #tpu.memory_space<vmem>>, %arg5: memref<1x128xf32, #tpu.memory_space<vmem>>, %arg6: memref<128x256xbf16, #tpu.memory_space<vmem>>, %arg7: memref<1x256xf32, #tpu.memory_space<vmem>>, %arg8: memref<128x128xbf16, #tpu.memory_space<vmem>>, %arg9: memref<1x128xf32, #tpu.memory_space<vmem>>, %arg10: memref<1x8x128xf32, #tpu.memory_space<vmem>>) attributes {dimension_semantics = [#tpu.dimension_semantics<parallel>], iteration_bounds = array<i64: 2>, scalar_prefetch = 0 : i64, scratch_operands = 0 : i64, tpu.core_type = #tpu.core_type<tc>, window_params = [{transform_indices = @transform_0, window_bounds = array<i64: 1, 8, 128>}, {pipeline_mode = #tpu.pipeline_mode<synchronous>, transform_indices = @transform_1, window_bounds = array<i64: 1, 128>}, {pipeline_mode = #tpu.pipeline_mode<synchronous>, transform_indices = @transform_2, window_bounds = array<i64: 1, 128>}, {pipeline_mode = #tpu.pipeline_mode<synchronous>, transform_indices = @transform_3, window_bounds = array<i64: 128, 128>}, {pipeline_mode = #tpu.pipeline_mode<synchronous>, transform_indices = @transform_4, window_bounds = array<i64: 1, 128>}, {pipeline_mode = #tpu.pipeline_mode<synchronous>, transform_indices = @transform_5, window_bounds = array<i64: 128, 256>}, {pipeline_mode = #tpu.pipeline_mode<synchronous>, transform_indices = @transform_6, window_bounds = array<i64: 1, 256>}, {pipeline_mode = #tpu.pipeline_mode<synchronous>, transform_indices = @transform_7, window_bounds = array<i64: 128, 128>}, {pipeline_mode = #tpu.pipeline_mode<synchronous>, transform_indices = @transform_8, window_bounds = array<i64: 1, 128>}, {transform_indices = @transform_9, window_bounds = array<i64: 1, 8, 128>}]} {
    %c0 = arith.constant 0 : index
    %c0_0 = arith.constant 0 : index
    %c0_1 = arith.constant 0 : index
    %0 = vector.load %arg1[%c0, %c0_0, %c0_1] : memref<1x8x128xf32, #tpu.memory_space<vmem>>, vector<1x8x128xf32>
    %1 = vector.shape_cast %0 : vector<1x8x128xf32> to vector<8x128xf32>
    %c0_2 = arith.constant 0 : index
    %c0_3 = arith.constant 0 : index
    %2 = vector.load %arg2[%c0_2, %c0_3] : memref<1x128xf32, #tpu.memory_space<vmem>>, vector<1x128xf32>
    %c0_4 = arith.constant 0 : index
    %c0_5 = arith.constant 0 : index
    %3 = vector.load %arg3[%c0_4, %c0_5] : memref<1x128xf32, #tpu.memory_space<vmem>>, vector<1x128xf32>
    %cst = arith.constant dense<0.000000e+00> : vector<8xf32>
    %4 = vector.multi_reduction <add>, %1, %cst [1] : vector<8x128xf32> to vector<8xf32>
    %5 = vector.shape_cast %4 : vector<8xf32> to vector<8x1xf32>
    %cst_6 = arith.constant 1.280000e+02 : f32
    %6 = vector.broadcast %cst_6 : f32 to vector<8x1xf32>
    %7 = arith.divf %5, %6 : vector<8x1xf32>
    %8 = vector.broadcast %7 : vector<8x1xf32> to vector<8x128xf32>
    %9 = arith.subf %1, %8 : vector<8x128xf32>
    %10 = arith.mulf %9, %9 : vector<8x128xf32>
    %cst_7 = arith.constant dense<0.000000e+00> : vector<8xf32>
    %11 = vector.multi_reduction <add>, %10, %cst_7 [1] : vector<8x128xf32> to vector<8xf32>
    %12 = vector.shape_cast %11 : vector<8xf32> to vector<8x1xf32>
    %cst_8 = arith.constant 1.280000e+02 : f32
    %13 = vector.broadcast %cst_8 : f32 to vector<8x1xf32>
    %14 = arith.divf %12, %13 : vector<8x1xf32>
    %cst_9 = arith.constant 9.99999974E-6 : f32
    %15 = vector.broadcast %cst_9 : f32 to vector<8x1xf32>
    %16 = arith.addf %14, %15 : vector<8x1xf32>
    %17 = math.rsqrt %16 : vector<8x1xf32>
    %18 = vector.broadcast %17 : vector<8x1xf32> to vector<8x128xf32>
    %19 = arith.mulf %9, %18 : vector<8x128xf32>
    %20 = vector.broadcast %2 : vector<1x128xf32> to vector<8x128xf32>
    %21 = arith.mulf %19, %20 : vector<8x128xf32>
    %22 = vector.broadcast %3 : vector<1x128xf32> to vector<8x128xf32>
    %23 = arith.addf %21, %22 : vector<8x128xf32>
    %24 = arith.truncf %23 : vector<8x128xf32> to vector<8x128xbf16>
    %c0_10 = arith.constant 0 : index
    %c0_11 = arith.constant 0 : index
    %25 = vector.load %arg4[%c0_10, %c0_11] : memref<128x128xbf16, #tpu.memory_space<vmem>>, vector<128x128xbf16>
    %cst_12 = arith.constant dense<0.000000e+00> : vector<8x128xf32>
    %26 = tpu.matmul %24, %25, %cst_12 {dimension_numbers = #tpu.dot_dimension_numbers<[1], [0], [0], [1], [0, 0, 1, 1], [], []>} : vector<8x128xbf16>, vector<128x128xbf16>, vector<8x128xf32> -> vector<8x128xf32>
    %c0_13 = arith.constant 0 : index
    %c0_14 = arith.constant 0 : index
    %27 = vector.load %arg5[%c0_13, %c0_14] : memref<1x128xf32, #tpu.memory_space<vmem>>, vector<1x128xf32>
    %28 = vector.broadcast %27 : vector<1x128xf32> to vector<8x128xf32>
    %29 = arith.addf %26, %28 : vector<8x128xf32>
    %30 = arith.truncf %23 : vector<8x128xf32> to vector<8x128xbf16>
    %c0_15 = arith.constant 0 : index
    %c0_16 = arith.constant 0 : index
    %31 = vector.load %arg6[%c0_15, %c0_16] : memref<128x256xbf16, #tpu.memory_space<vmem>>, vector<128x256xbf16>
    %cst_17 = arith.constant dense<0.000000e+00> : vector<8x256xf32>
    %32 = tpu.matmul %30, %31, %cst_17 {dimension_numbers = #tpu.dot_dimension_numbers<[1], [0], [0], [1], [0, 0, 1, 1], [], []>} : vector<8x128xbf16>, vector<128x256xbf16>, vector<8x256xf32> -> vector<8x256xf32>
    %c0_18 = arith.constant 0 : index
    %c0_19 = arith.constant 0 : index
    %33 = vector.load %arg7[%c0_18, %c0_19] : memref<1x256xf32, #tpu.memory_space<vmem>>, vector<1x256xf32>
    %34 = vector.broadcast %33 : vector<1x256xf32> to vector<8x256xf32>
    %35 = arith.addf %32, %34 : vector<8x256xf32>
    %36 = vector.extract_strided_slice %35 {offsets = [0, 0], sizes = [8, 128], strides = [1, 1]} : vector<8x256xf32> to vector<8x128xf32>
    %37 = vector.extract_strided_slice %35 {offsets = [0, 128], sizes = [8, 128], strides = [1, 1]} : vector<8x256xf32> to vector<8x128xf32>
    %c0_20 = arith.constant 0 : index
    %c0_21 = arith.constant 0 : index
    %38 = vector.load %arg8[%c0_20, %c0_21] : memref<128x128xbf16, #tpu.memory_space<vmem>>, vector<128x128xbf16>
    %cst_22 = arith.constant 0.000000e+00 : f32
    %39 = vector.broadcast %cst_22 : f32 to vector<8x128xf32>
    %40 = vector.extract_strided_slice %29 {offsets = [0, 0], sizes = [8, 64], strides = [1, 1]} : vector<8x128xf32> to vector<8x64xf32>
    %41 = arith.truncf %40 : vector<8x64xf32> to vector<8x64xbf16>
    %42 = vector.extract_strided_slice %36 {offsets = [0, 0], sizes = [8, 64], strides = [1, 1]} : vector<8x128xf32> to vector<8x64xf32>
    %43 = arith.truncf %42 : vector<8x64xf32> to vector<8x64xbf16>
    %44 = vector.extract_strided_slice %37 {offsets = [0, 0], sizes = [8, 64], strides = [1, 1]} : vector<8x128xf32> to vector<8x64xf32>
    %45 = arith.truncf %44 : vector<8x64xf32> to vector<8x64xbf16>
    %cst_23 = arith.constant dense<0.000000e+00> : vector<8x8xf32>
    %46 = tpu.matmul %41, %43, %cst_23 {dimension_numbers = #tpu.dot_dimension_numbers<[1], [1], [0], [0], [0, 0, 1, 0], [], []>} : vector<8x64xbf16>, vector<8x64xbf16>, vector<8x8xf32> -> vector<8x8xf32>
    %cst_24 = arith.constant 1.250000e-01 : f32
    %47 = vector.broadcast %cst_24 : f32 to vector<8x8xf32>
    %48 = arith.mulf %46, %47 : vector<8x8xf32>
    %cst_25 = arith.constant dense<0xFF800000> : vector<8xf32>
    %49 = vector.multi_reduction <maximumf>, %48, %cst_25 [1] : vector<8x8xf32> to vector<8xf32>
    %50 = vector.shape_cast %49 : vector<8xf32> to vector<8x1xf32>
    %51 = vector.broadcast %50 : vector<8x1xf32> to vector<8x8xf32>
    %52 = arith.subf %48, %51 : vector<8x8xf32>
    %53 = math.exp %52 : vector<8x8xf32>
    %cst_26 = arith.constant dense<0.000000e+00> : vector<8xf32>
    %54 = vector.multi_reduction <add>, %53, %cst_26 [1] : vector<8x8xf32> to vector<8xf32>
    %55 = vector.shape_cast %54 : vector<8xf32> to vector<8x1xf32>
    %56 = tpu.reciprocal %55 {approx = true} : vector<8x1xf32> -> vector<8x1xf32>
    %57 = vector.broadcast %56 : vector<8x1xf32> to vector<8x8xf32>
    %58 = arith.mulf %53, %57 : vector<8x8xf32>
    %59 = arith.truncf %58 : vector<8x8xf32> to vector<8x8xbf16>
    %cst_27 = arith.constant dense<0.000000e+00> : vector<8x64xf32>
    %60 = tpu.matmul %59, %45, %cst_27 {dimension_numbers = #tpu.dot_dimension_numbers<[1], [0], [0], [1], [0, 0, 1, 1], [], []>} : vector<8x8xbf16>, vector<8x64xbf16>, vector<8x64xf32> -> vector<8x64xf32>
    %61 = arith.truncf %60 : vector<8x64xf32> to vector<8x64xbf16>
    %62 = vector.extract_strided_slice %38 {offsets = [0, 0], sizes = [64, 128], strides = [1, 1]} : vector<128x128xbf16> to vector<64x128xbf16>
    %cst_28 = arith.constant dense<0.000000e+00> : vector<8x128xf32>
    %63 = tpu.matmul %61, %62, %cst_28 {dimension_numbers = #tpu.dot_dimension_numbers<[1], [0], [0], [1], [0, 0, 1, 1], [], []>} : vector<8x64xbf16>, vector<64x128xbf16>, vector<8x128xf32> -> vector<8x128xf32>
    %64 = arith.addf %39, %63 : vector<8x128xf32>
    %65 = vector.extract_strided_slice %29 {offsets = [0, 64], sizes = [8, 64], strides = [1, 1]} : vector<8x128xf32> to vector<8x64xf32>
    %66 = arith.truncf %65 : vector<8x64xf32> to vector<8x64xbf16>
    %67 = vector.extract_strided_slice %36 {offsets = [0, 64], sizes = [8, 64], strides = [1, 1]} : vector<8x128xf32> to vector<8x64xf32>
    %68 = arith.truncf %67 : vector<8x64xf32> to vector<8x64xbf16>
    %69 = vector.extract_strided_slice %37 {offsets = [0, 64], sizes = [8, 64], strides = [1, 1]} : vector<8x128xf32> to vector<8x64xf32>
    %70 = arith.truncf %69 : vector<8x64xf32> to vector<8x64xbf16>
    %cst_29 = arith.constant dense<0.000000e+00> : vector<8x8xf32>
    %71 = tpu.matmul %66, %68, %cst_29 {dimension_numbers = #tpu.dot_dimension_numbers<[1], [1], [0], [0], [0, 0, 1, 0], [], []>} : vector<8x64xbf16>, vector<8x64xbf16>, vector<8x8xf32> -> vector<8x8xf32>
    %cst_30 = arith.constant 1.250000e-01 : f32
    %72 = vector.broadcast %cst_30 : f32 to vector<8x8xf32>
    %73 = arith.mulf %71, %72 : vector<8x8xf32>
    %cst_31 = arith.constant dense<0xFF800000> : vector<8xf32>
    %74 = vector.multi_reduction <maximumf>, %73, %cst_31 [1] : vector<8x8xf32> to vector<8xf32>
    %75 = vector.shape_cast %74 : vector<8xf32> to vector<8x1xf32>
    %76 = vector.broadcast %75 : vector<8x1xf32> to vector<8x8xf32>
    %77 = arith.subf %73, %76 : vector<8x8xf32>
    %78 = math.exp %77 : vector<8x8xf32>
    %cst_32 = arith.constant dense<0.000000e+00> : vector<8xf32>
    %79 = vector.multi_reduction <add>, %78, %cst_32 [1] : vector<8x8xf32> to vector<8xf32>
    %80 = vector.shape_cast %79 : vector<8xf32> to vector<8x1xf32>
    %81 = tpu.reciprocal %80 {approx = true} : vector<8x1xf32> -> vector<8x1xf32>
    %82 = vector.broadcast %81 : vector<8x1xf32> to vector<8x8xf32>
    %83 = arith.mulf %78, %82 : vector<8x8xf32>
    %84 = arith.truncf %83 : vector<8x8xf32> to vector<8x8xbf16>
    %cst_33 = arith.constant dense<0.000000e+00> : vector<8x64xf32>
    %85 = tpu.matmul %84, %70, %cst_33 {dimension_numbers = #tpu.dot_dimension_numbers<[1], [0], [0], [1], [0, 0, 1, 1], [], []>} : vector<8x8xbf16>, vector<8x64xbf16>, vector<8x64xf32> -> vector<8x64xf32>
    %86 = arith.truncf %85 : vector<8x64xf32> to vector<8x64xbf16>
    %87 = vector.extract_strided_slice %38 {offsets = [64, 0], sizes = [64, 128], strides = [1, 1]} : vector<128x128xbf16> to vector<64x128xbf16>
    %cst_34 = arith.constant dense<0.000000e+00> : vector<8x128xf32>
    %88 = tpu.matmul %86, %87, %cst_34 {dimension_numbers = #tpu.dot_dimension_numbers<[1], [0], [0], [1], [0, 0, 1, 1], [], []>} : vector<8x64xbf16>, vector<64x128xbf16>, vector<8x128xf32> -> vector<8x128xf32>
    %89 = arith.addf %64, %88 : vector<8x128xf32>
    %c0_35 = arith.constant 0 : index
    %c0_36 = arith.constant 0 : index
    %90 = vector.load %arg9[%c0_35, %c0_36] : memref<1x128xf32, #tpu.memory_space<vmem>>, vector<1x128xf32>
    %91 = vector.broadcast %90 : vector<1x128xf32> to vector<8x128xf32>
    %92 = arith.addf %89, %91 : vector<8x128xf32>
    %93 = arith.addf %92, %1 : vector<8x128xf32>
    %c0_37 = arith.constant 0 : index
    %c0_38 = arith.constant 0 : index
    %c0_39 = arith.constant 0 : index
    %94 = vector.load %arg10[%c0_37, %c0_38, %c0_39] : memref<1x8x128xf32, #tpu.memory_space<vmem>>, vector<1x8x128xf32>
    %95 = vector.shape_cast %94 : vector<1x8x128xf32> to vector<8x128xf32>
    %96 = vector.shape_cast %93 : vector<8x128xf32> to vector<1x8x128xf32>
    tpu.vector_store %arg10[%c0_37, %c0_38, %c0_39], %96 {strides = array<i32>} : memref<1x8x128xf32, #tpu.memory_space<vmem>>, vector<1x8x128xf32>,
    return
  }
  func.func @transform_0(%arg0: i32) -> (i32, i32, i32) {
    %c0_i32 = arith.constant 0 : i32
    %c0_i32_0 = arith.constant 0 : i32
    %c0_i32_1 = arith.constant 0 : i32
    return %arg0, %c0_i32, %c0_i32_0 : i32, i32, i32
  }
  func.func @transform_1(%arg0: i32) -> (i32, i32) {
    %c0_i32 = arith.constant 0 : i32
    %c0_i32_0 = arith.constant 0 : i32
    %c0_i32_1 = arith.constant 0 : i32
    return %c0_i32, %c0_i32_0 : i32, i32
  }
  func.func @transform_2(%arg0: i32) -> (i32, i32) {
    %c0_i32 = arith.constant 0 : i32
    %c0_i32_0 = arith.constant 0 : i32
    %c0_i32_1 = arith.constant 0 : i32
    return %c0_i32, %c0_i32_0 : i32, i32
  }
  func.func @transform_3(%arg0: i32) -> (i32, i32) {
    %c0_i32 = arith.constant 0 : i32
    %c0_i32_0 = arith.constant 0 : i32
    %c0_i32_1 = arith.constant 0 : i32
    return %c0_i32, %c0_i32_0 : i32, i32
  }
  func.func @transform_4(%arg0: i32) -> (i32, i32) {
    %c0_i32 = arith.constant 0 : i32
    %c0_i32_0 = arith.constant 0 : i32
    %c0_i32_1 = arith.constant 0 : i32
    return %c0_i32, %c0_i32_0 : i32, i32
  }
  func.func @transform_5(%arg0: i32) -> (i32, i32) {
    %c0_i32 = arith.constant 0 : i32
    %c0_i32_0 = arith.constant 0 : i32
    %c0_i32_1 = arith.constant 0 : i32
    return %c0_i32, %c0_i32_0 : i32, i32
  }
  func.func @transform_6(%arg0: i32) -> (i32, i32) {
    %c0_i32 = arith.constant 0 : i32
    %c0_i32_0 = arith.constant 0 : i32
    %c0_i32_1 = arith.constant 0 : i32
    return %c0_i32, %c0_i32_0 : i32, i32
  }
  func.func @transform_7(%arg0: i32) -> (i32, i32) {
    %c0_i32 = arith.constant 0 : i32
    %c0_i32_0 = arith.constant 0 : i32
    %c0_i32_1 = arith.constant 0 : i32
    return %c0_i32, %c0_i32_0 : i32, i32
  }
  func.func @transform_8(%arg0: i32) -> (i32, i32) {
    %c0_i32 = arith.constant 0 : i32
    %c0_i32_0 = arith.constant 0 : i32
    %c0_i32_1 = arith.constant 0 : i32
    return %c0_i32, %c0_i32_0 : i32, i32
  }
  func.func @transform_9(%arg0: i32) -> (i32, i32, i32) {
    %c0_i32 = arith.constant 0 : i32
    %c0_i32_0 = arith.constant 0 : i32
    %c0_i32_1 = arith.constant 0 : i32
    return %arg0, %c0_i32, %c0_i32_0 : i32, i32, i32
  }
}

module attributes {stable_mosaic.version = 11 : i64} {
  func.func @_mha_kernel(%arg0: i32, %arg1: memref<1x8x128xf32, #tpu.memory_space<vmem>>, %arg2: memref<1x128xf32, #tpu.memory_space<vmem>>, %arg3: memref<1x128xf32, #tpu.memory_space<vmem>>, %arg4: memref<128x128xbf16, #tpu.memory_space<vmem>>, %arg5: memref<1x128xf32, #tpu.memory_space<vmem>>, %arg6: memref<128x256xbf16, #tpu.memory_space<vmem>>, %arg7: memref<1x256xf32, #tpu.memory_space<vmem>>, %arg8: memref<128x128xbf16, #tpu.memory_space<vmem>>, %arg9: memref<1x128xf32, #tpu.memory_space<vmem>>, %arg10: memref<1x8x128xf32, #tpu.memory_space<vmem>>) attributes {dimension_semantics = [#tpu.dimension_semantics<parallel>], iteration_bounds = array<i64: 2>, scalar_prefetch = 0 : i64, scratch_operands = 0 : i64, tpu.core_type = #tpu.core_type<tc>, window_params = [{transform_indices = @transform_0, window_bounds = array<i64: 1, 8, 128>}, {pipeline_mode = #tpu.pipeline_mode<synchronous>, transform_indices = @transform_1, window_bounds = array<i64: 1, 128>}, {pipeline_mode = #tpu.pipeline_mode<synchronous>, transform_indices = @transform_2, window_bounds = array<i64: 1, 128>}, {pipeline_mode = #tpu.pipeline_mode<synchronous>, transform_indices = @transform_3, window_bounds = array<i64: 128, 128>}, {pipeline_mode = #tpu.pipeline_mode<synchronous>, transform_indices = @transform_4, window_bounds = array<i64: 1, 128>}, {pipeline_mode = #tpu.pipeline_mode<synchronous>, transform_indices = @transform_5, window_bounds = array<i64: 128, 256>}, {pipeline_mode = #tpu.pipeline_mode<synchronous>, transform_indices = @transform_6, window_bounds = array<i64: 1, 256>}, {pipeline_mode = #tpu.pipeline_mode<synchronous>, transform_indices = @transform_7, window_bounds = array<i64: 128, 128>}, {pipeline_mode = #tpu.pipeline_mode<synchronous>, transform_indices = @transform_8, window_bounds = array<i64: 1, 128>}, {transform_indices = @transform_9, window_bounds = array<i64: 1, 8, 128>}]} {
    %c0 = arith.constant 0 : index
    %c0_0 = arith.constant 0 : index
    %c0_1 = arith.constant 0 : index
    %0 = vector.load %arg1[%c0, %c0_0, %c0_1] : memref<1x8x128xf32, #tpu.memory_space<vmem>>, vector<1x8x128xf32>
    %1 = vector.shape_cast %0 : vector<1x8x128xf32> to vector<8x128xf32>
    %c0_2 = arith.constant 0 : index
    %c0_3 = arith.constant 0 : index
    %2 = vector.load %arg2[%c0_2, %c0_3] : memref<1x128xf32, #tpu.memory_space<vmem>>, vector<1x128xf32>
    %c0_4 = arith.constant 0 : index
    %c0_5 = arith.constant 0 : index
    %3 = vector.load %arg3[%c0_4, %c0_5] : memref<1x128xf32, #tpu.memory_space<vmem>>, vector<1x128xf32>
    %cst = arith.constant dense<0.000000e+00> : vector<8xf32>
    %4 = vector.multi_reduction <add>, %1, %cst [1] : vector<8x128xf32> to vector<8xf32>
    %5 = vector.shape_cast %4 : vector<8xf32> to vector<8x1xf32>
    %cst_6 = arith.constant 1.280000e+02 : f32
    %6 = vector.broadcast %cst_6 : f32 to vector<8x1xf32>
    %7 = arith.divf %5, %6 : vector<8x1xf32>
    %8 = vector.broadcast %7 : vector<8x1xf32> to vector<8x128xf32>
    %9 = arith.subf %1, %8 : vector<8x128xf32>
    %10 = arith.mulf %9, %9 : vector<8x128xf32>
    %cst_7 = arith.constant dense<0.000000e+00> : vector<8xf32>
    %11 = vector.multi_reduction <add>, %10, %cst_7 [1] : vector<8x128xf32> to vector<8xf32>
    %12 = vector.shape_cast %11 : vector<8xf32> to vector<8x1xf32>
    %cst_8 = arith.constant 1.280000e+02 : f32
    %13 = vector.broadcast %cst_8 : f32 to vector<8x1xf32>
    %14 = arith.divf %12, %13 : vector<8x1xf32>
    %cst_9 = arith.constant 9.99999974E-6 : f32
    %15 = vector.broadcast %cst_9 : f32 to vector<8x1xf32>
    %16 = arith.addf %14, %15 : vector<8x1xf32>
    %17 = math.rsqrt %16 : vector<8x1xf32>
    %18 = vector.broadcast %17 : vector<8x1xf32> to vector<8x128xf32>
    %19 = arith.mulf %9, %18 : vector<8x128xf32>
    %20 = vector.broadcast %2 : vector<1x128xf32> to vector<8x128xf32>
    %21 = arith.mulf %19, %20 : vector<8x128xf32>
    %22 = vector.broadcast %3 : vector<1x128xf32> to vector<8x128xf32>
    %23 = arith.addf %21, %22 : vector<8x128xf32>
    %24 = arith.truncf %23 : vector<8x128xf32> to vector<8x128xbf16>
    %c0_10 = arith.constant 0 : index
    %c0_11 = arith.constant 0 : index
    %25 = vector.load %arg4[%c0_10, %c0_11] : memref<128x128xbf16, #tpu.memory_space<vmem>>, vector<128x128xbf16>
    %cst_12 = arith.constant dense<0.000000e+00> : vector<8x128xf32>
    %26 = tpu.matmul %24, %25, %cst_12 {dimension_numbers = #tpu.dot_dimension_numbers<[1], [0], [0], [1], [0, 0, 1, 1], [], []>} : vector<8x128xbf16>, vector<128x128xbf16>, vector<8x128xf32> -> vector<8x128xf32>
    %c0_13 = arith.constant 0 : index
    %c0_14 = arith.constant 0 : index
    %27 = vector.load %arg5[%c0_13, %c0_14] : memref<1x128xf32, #tpu.memory_space<vmem>>, vector<1x128xf32>
    %28 = vector.broadcast %27 : vector<1x128xf32> to vector<8x128xf32>
    %29 = arith.addf %26, %28 : vector<8x128xf32>
    %30 = arith.truncf %23 : vector<8x128xf32> to vector<8x128xbf16>
    %c0_15 = arith.constant 0 : index
    %c0_16 = arith.constant 0 : index
    %31 = vector.load %arg6[%c0_15, %c0_16] : memref<128x256xbf16, #tpu.memory_space<vmem>>, vector<128x256xbf16>
    %cst_17 = arith.constant dense<0.000000e+00> : vector<8x256xf32>
    %32 = tpu.matmul %30, %31, %cst_17 {dimension_numbers = #tpu.dot_dimension_numbers<[1], [0], [0], [1], [0, 0, 1, 1], [], []>} : vector<8x128xbf16>, vector<128x256xbf16>, vector<8x256xf32> -> vector<8x256xf32>
    %c0_18 = arith.constant 0 : index
    %c0_19 = arith.constant 0 : index
    %33 = vector.load %arg7[%c0_18, %c0_19] : memref<1x256xf32, #tpu.memory_space<vmem>>, vector<1x256xf32>
    %34 = vector.broadcast %33 : vector<1x256xf32> to vector<8x256xf32>
    %35 = arith.addf %32, %34 : vector<8x256xf32>
    %36 = vector.extract_strided_slice %35 {offsets = [0, 0], sizes = [8, 128], strides = [1, 1]} : vector<8x256xf32> to vector<8x128xf32>
    %37 = vector.extract_strided_slice %35 {offsets = [0, 128], sizes = [8, 128], strides = [1, 1]} : vector<8x256xf32> to vector<8x128xf32>
    %c0_20 = arith.constant 0 : index
    %c0_21 = arith.constant 0 : index
    %38 = vector.load %arg8[%c0_20, %c0_21] : memref<128x128xbf16, #tpu.memory_space<vmem>>, vector<128x128xbf16>
    %cst_22 = arith.constant 0.000000e+00 : f32
    %39 = vector.broadcast %cst_22 : f32 to vector<8x128xf32>
    %40 = vector.extract_strided_slice %29 {offsets = [0, 0], sizes = [8, 64], strides = [1, 1]} : vector<8x128xf32> to vector<8x64xf32>
    %41 = arith.truncf %40 : vector<8x64xf32> to vector<8x64xbf16>
    %42 = vector.extract_strided_slice %36 {offsets = [0, 0], sizes = [8, 64], strides = [1, 1]} : vector<8x128xf32> to vector<8x64xf32>
    %43 = arith.truncf %42 : vector<8x64xf32> to vector<8x64xbf16>
    %44 = vector.extract_strided_slice %37 {offsets = [0, 0], sizes = [8, 64], strides = [1, 1]} : vector<8x128xf32> to vector<8x64xf32>
    %45 = arith.truncf %44 : vector<8x64xf32> to vector<8x64xbf16>
    %cst_23 = arith.constant dense<0.000000e+00> : vector<8x8xf32>
    %46 = tpu.matmul %41, %43, %cst_23 {dimension_numbers = #tpu.dot_dimension_numbers<[1], [1], [0], [0], [0, 0, 1, 0], [], []>} : vector<8x64xbf16>, vector<8x64xbf16>, vector<8x8xf32> -> vector<8x8xf32>
    %cst_24 = arith.constant 1.250000e-01 : f32
    %47 = vector.broadcast %cst_24 : f32 to vector<8x8xf32>
    %48 = arith.mulf %46, %47 : vector<8x8xf32>
    %cst_25 = arith.constant dense<0xFF800000> : vector<8xf32>
    %49 = vector.multi_reduction <maximumf>, %48, %cst_25 [1] : vector<8x8xf32> to vector<8xf32>
    %50 = vector.shape_cast %49 : vector<8xf32> to vector<8x1xf32>
    %51 = vector.broadcast %50 : vector<8x1xf32> to vector<8x8xf32>
    %52 = arith.subf %48, %51 : vector<8x8xf32>
    %53 = math.exp %52 : vector<8x8xf32>
    %cst_26 = arith.constant dense<0.000000e+00> : vector<8xf32>
    %54 = vector.multi_reduction <add>, %53, %cst_26 [1] : vector<8x8xf32> to vector<8xf32>
    %55 = vector.shape_cast %54 : vector<8xf32> to vector<8x1xf32>
    %56 = tpu.reciprocal %55 {approx = true} : vector<8x1xf32> -> vector<8x1xf32>
    %57 = vector.broadcast %56 : vector<8x1xf32> to vector<8x8xf32>
    %58 = arith.mulf %53, %57 : vector<8x8xf32>
    %59 = arith.truncf %58 : vector<8x8xf32> to vector<8x8xbf16>
    %cst_27 = arith.constant dense<0.000000e+00> : vector<8x64xf32>
    %60 = tpu.matmul %59, %45, %cst_27 {dimension_numbers = #tpu.dot_dimension_numbers<[1], [0], [0], [1], [0, 0, 1, 1], [], []>} : vector<8x8xbf16>, vector<8x64xbf16>, vector<8x64xf32> -> vector<8x64xf32>
    %61 = arith.truncf %60 : vector<8x64xf32> to vector<8x64xbf16>
    %62 = vector.extract_strided_slice %38 {offsets = [0, 0], sizes = [64, 128], strides = [1, 1]} : vector<128x128xbf16> to vector<64x128xbf16>
    %cst_28 = arith.constant dense<0.000000e+00> : vector<8x128xf32>
    %63 = tpu.matmul %61, %62, %cst_28 {dimension_numbers = #tpu.dot_dimension_numbers<[1], [0], [0], [1], [0, 0, 1, 1], [], []>} : vector<8x64xbf16>, vector<64x128xbf16>, vector<8x128xf32> -> vector<8x128xf32>
    %64 = arith.addf %39, %63 : vector<8x128xf32>
    %65 = vector.extract_strided_slice %29 {offsets = [0, 64], sizes = [8, 64], strides = [1, 1]} : vector<8x128xf32> to vector<8x64xf32>
    %66 = arith.truncf %65 : vector<8x64xf32> to vector<8x64xbf16>
    %67 = vector.extract_strided_slice %36 {offsets = [0, 64], sizes = [8, 64], strides = [1, 1]} : vector<8x128xf32> to vector<8x64xf32>
    %68 = arith.truncf %67 : vector<8x64xf32> to vector<8x64xbf16>
    %69 = vector.extract_strided_slice %37 {offsets = [0, 64], sizes = [8, 64], strides = [1, 1]} : vector<8x128xf32> to vector<8x64xf32>
    %70 = arith.truncf %69 : vector<8x64xf32> to vector<8x64xbf16>
    %cst_29 = arith.constant dense<0.000000e+00> : vector<8x8xf32>
    %71 = tpu.matmul %66, %68, %cst_29 {dimension_numbers = #tpu.dot_dimension_numbers<[1], [1], [0], [0], [0, 0, 1, 0], [], []>} : vector<8x64xbf16>, vector<8x64xbf16>, vector<8x8xf32> -> vector<8x8xf32>
    %cst_30 = arith.constant 1.250000e-01 : f32
    %72 = vector.broadcast %cst_30 : f32 to vector<8x8xf32>
    %73 = arith.mulf %71, %72 : vector<8x8xf32>
    %cst_31 = arith.constant dense<0xFF800000> : vector<8xf32>
    %74 = vector.multi_reduction <maximumf>, %73, %cst_31 [1] : vector<8x8xf32> to vector<8xf32>
    %75 = vector.shape_cast %74 : vector<8xf32> to vector<8x1xf32>
    %76 = vector.broadcast %75 : vector<8x1xf32> to vector<8x8xf32>
    %77 = arith.subf %73, %76 : vector<8x8xf32>
    %78 = math.exp %77 : vector<8x8xf32>
    %cst_32 = arith.constant dense<0.000000e+00> : vector<8xf32>
    %79 = vector.multi_reduction <add>, %78, %cst_32 [1] : vector<8x8xf32> to vector<8xf32>
    %80 = vector.shape_cast %79 : vector<8xf32> to vector<8x1xf32>
    %81 = tpu.reciprocal %80 {approx = true} : vector<8x1xf32> -> vector<8x1xf32>
    %82 = vector.broadcast %81 : vector<8x1xf32> to vector<8x8xf32>
    %83 = arith.mulf %78, %82 : vector<8x8xf32>
    %84 = arith.truncf %83 : vector<8x8xf32> to vector<8x8xbf16>
    %cst_33 = arith.constant dense<0.000000e+00> : vector<8x64xf32>
    %85 = tpu.matmul %84, %70, %cst_33 {dimension_numbers = #tpu.dot_dimension_numbers<[1], [0], [0], [1], [0, 0, 1, 1], [], []>} : vector<8x8xbf16>, vector<8x64xbf16>, vector<8x64xf32> -> vector<8x64xf32>
    %86 = arith.truncf %85 : vector<8x64xf32> to vector<8x64xbf16>
    %87 = vector.extract_strided_slice %38 {offsets = [64, 0], sizes = [64, 128], strides = [1, 1]} : vector<128x128xbf16> to vector<64x128xbf16>
    %cst_34 = arith.constant dense<0.000000e+00> : vector<8x128xf32>
    %88 = tpu.matmul %86, %87, %cst_34 {dimension_numbers = #tpu.dot_dimension_numbers<[1], [0], [0], [1], [0, 0, 1, 1], [], []>} : vector<8x64xbf16>, vector<64x128xbf16>, vector<8x128xf32> -> vector<8x128xf32>
    %89 = arith.addf %64, %88 : vector<8x128xf32>
    %c0_35 = arith.constant 0 : index
    %c0_36 = arith.constant 0 : index
    %90 = vector.load %arg9[%c0_35, %c0_36] : memref<1x128xf32, #tpu.memory_space<vmem>>, vector<1x128xf32>
    %91 = vector.broadcast %90 : vector<1x128xf32> to vector<8x128xf32>
    %92 = arith.addf %89, %91 : vector<8x128xf32>
    %93 = arith.addf %92, %1 : vector<8x128xf32>
    %c0_37 = arith.constant 0 : index
    %c0_38 = arith.constant 0 : index
    %c0_39 = arith.constant 0 : index
    %94 = vector.load %arg10[%c0_37, %c0_38, %c0_39] : memref<1x8x128xf32, #tpu.memory_space<vmem>>, vector<1x8x128xf32>
    %95 = vector.shape_cast %94 : vector<1x8x128xf32> to vector<8x128xf32>
    %96 = vector.shape_cast %93 : vector<8x128xf32> to vector<1x8x128xf32>
    tpu.vector_store %arg10[%c0_37, %c0_38, %c0_39], %96 {strides = array<i32>} : memref<1x8x128xf32, #tpu.memory_space<vmem>>, vector<1x8x128xf32>,
    return
  }
  func.func @transform_0(%arg0: i32) -> (i32, i32, i32) {
    %c0_i32 = arith.constant 0 : i32
    %c0_i32_0 = arith.constant 0 : i32
    %c0_i32_1 = arith.constant 0 : i32
    return %arg0, %c0_i32, %c0_i32_0 : i32, i32, i32
  }
  func.func @transform_1(%arg0: i32) -> (i32, i32) {
    %c0_i32 = arith.constant 0 : i32
    %c0_i32_0 = arith.constant 0 : i32
    %c0_i32_1 = arith.constant 0 : i32
    return %c0_i32, %c0_i32_0 : i32, i32
  }
  func.func @transform_2(%arg0: i32) -> (i32, i32) {
    %c0_i32 = arith.constant 0 : i32
    %c0_i32_0 = arith.constant 0 : i32
    %c0_i32_1 = arith.constant 0 : i32
    return %c0_i32, %c0_i32_0 : i32, i32
  }
  func.func @transform_3(%arg0: i32) -> (i32, i32) {
    %c0_i32 = arith.constant 0 : i32
    %c0_i32_0 = arith.constant 0 : i32
    %c0_i32_1 = arith.constant 0 : i32
    return %c0_i32, %c0_i32_0 : i32, i32
  }
  func.func @transform_4(%arg0: i32) -> (i32, i32) {
    %c0_i32 = arith.constant 0 : i32
    %c0_i32_0 = arith.constant 0 : i32
    %c0_i32_1 = arith.constant 0 : i32
    return %c0_i32, %c0_i32_0 : i32, i32
  }
  func.func @transform_5(%arg0: i32) -> (i32, i32) {
    %c0_i32 = arith.constant 0 : i32
    %c0_i32_0 = arith.constant 0 : i32
    %c0_i32_1 = arith.constant 0 : i32
    return %c0_i32, %c0_i32_0 : i32, i32
  }
  func.func @transform_6(%arg0: i32) -> (i32, i32) {
    %c0_i32 = arith.constant 0 : i32
    %c0_i32_0 = arith.constant 0 : i32
    %c0_i32_1 = arith.constant 0 : i32
    return %c0_i32, %c0_i32_0 : i32, i32
  }
  func.func @transform_7(%arg0: i32) -> (i32, i32) {
    %c0_i32 = arith.constant 0 : i32
    %c0_i32_0 = arith.constant 0 : i32
    %c0_i32_1 = arith.constant 0 : i32
    return %c0_i32, %c0_i32_0 : i32, i32
  }
  func.func @transform_8(%arg0: i32) -> (i32, i32) {
    %c0_i32 = arith.constant 0 : i32
    %c0_i32_0 = arith.constant 0 : i32
    %c0_i32_1 = arith.constant 0 : i32
    return %c0_i32, %c0_i32_0 : i32, i32
  }
  func.func @transform_9(%arg0: i32) -> (i32, i32, i32) {
    %c0_i32 = arith.constant 0 : i32
    %c0_i32_0 = arith.constant 0 : i32
    %c0_i32_1 = arith.constant 0 : i32
    return %arg0, %c0_i32, %c0_i32_0 : i32, i32, i32
  }
}

module attributes {stable_mosaic.version = 11 : i64} {
  func.func @_ffn_kernel(%arg0: i32, %arg1: memref<16x128xf32, #tpu.memory_space<vmem>>, %arg2: memref<1x128xf32, #tpu.memory_space<vmem>>, %arg3: memref<1x128xf32, #tpu.memory_space<vmem>>, %arg4: memref<128x512xbf16, #tpu.memory_space<vmem>>, %arg5: memref<1x512xf32, #tpu.memory_space<vmem>>, %arg6: memref<512x128xbf16, #tpu.memory_space<vmem>>, %arg7: memref<1x128xf32, #tpu.memory_space<vmem>>, %arg8: memref<16x128xf32, #tpu.memory_space<vmem>>) attributes {dimension_semantics = [#tpu.dimension_semantics<parallel>], iteration_bounds = array<i64: 1>, scalar_prefetch = 0 : i64, scratch_operands = 0 : i64, tpu.core_type = #tpu.core_type<tc>, window_params = [{transform_indices = @transform_0, window_bounds = array<i64: 16, 128>}, {pipeline_mode = #tpu.pipeline_mode<synchronous>, transform_indices = @transform_1, window_bounds = array<i64: 1, 128>}, {pipeline_mode = #tpu.pipeline_mode<synchronous>, transform_indices = @transform_2, window_bounds = array<i64: 1, 128>}, {pipeline_mode = #tpu.pipeline_mode<synchronous>, transform_indices = @transform_3, window_bounds = array<i64: 128, 512>}, {pipeline_mode = #tpu.pipeline_mode<synchronous>, transform_indices = @transform_4, window_bounds = array<i64: 1, 512>}, {pipeline_mode = #tpu.pipeline_mode<synchronous>, transform_indices = @transform_5, window_bounds = array<i64: 512, 128>}, {pipeline_mode = #tpu.pipeline_mode<synchronous>, transform_indices = @transform_6, window_bounds = array<i64: 1, 128>}, {transform_indices = @transform_7, window_bounds = array<i64: 16, 128>}]} {
    %c0 = arith.constant 0 : index
    %c0_0 = arith.constant 0 : index
    %0 = vector.load %arg1[%c0, %c0_0] : memref<16x128xf32, #tpu.memory_space<vmem>>, vector<16x128xf32>
    %c0_1 = arith.constant 0 : index
    %c0_2 = arith.constant 0 : index
    %1 = vector.load %arg2[%c0_1, %c0_2] : memref<1x128xf32, #tpu.memory_space<vmem>>, vector<1x128xf32>
    %c0_3 = arith.constant 0 : index
    %c0_4 = arith.constant 0 : index
    %2 = vector.load %arg3[%c0_3, %c0_4] : memref<1x128xf32, #tpu.memory_space<vmem>>, vector<1x128xf32>
    %cst = arith.constant dense<0.000000e+00> : vector<16xf32>
    %3 = vector.multi_reduction <add>, %0, %cst [1] : vector<16x128xf32> to vector<16xf32>
    %4 = vector.shape_cast %3 : vector<16xf32> to vector<16x1xf32>
    %cst_5 = arith.constant 1.280000e+02 : f32
    %5 = vector.broadcast %cst_5 : f32 to vector<16x1xf32>
    %6 = arith.divf %4, %5 : vector<16x1xf32>
    %7 = vector.broadcast %6 : vector<16x1xf32> to vector<16x128xf32>
    %8 = arith.subf %0, %7 : vector<16x128xf32>
    %9 = arith.mulf %8, %8 : vector<16x128xf32>
    %cst_6 = arith.constant dense<0.000000e+00> : vector<16xf32>
    %10 = vector.multi_reduction <add>, %9, %cst_6 [1] : vector<16x128xf32> to vector<16xf32>
    %11 = vector.shape_cast %10 : vector<16xf32> to vector<16x1xf32>
    %cst_7 = arith.constant 1.280000e+02 : f32
    %12 = vector.broadcast %cst_7 : f32 to vector<16x1xf32>
    %13 = arith.divf %11, %12 : vector<16x1xf32>
    %cst_8 = arith.constant 9.99999974E-6 : f32
    %14 = vector.broadcast %cst_8 : f32 to vector<16x1xf32>
    %15 = arith.addf %13, %14 : vector<16x1xf32>
    %16 = math.rsqrt %15 : vector<16x1xf32>
    %17 = vector.broadcast %16 : vector<16x1xf32> to vector<16x128xf32>
    %18 = arith.mulf %8, %17 : vector<16x128xf32>
    %19 = vector.broadcast %1 : vector<1x128xf32> to vector<16x128xf32>
    %20 = arith.mulf %18, %19 : vector<16x128xf32>
    %21 = vector.broadcast %2 : vector<1x128xf32> to vector<16x128xf32>
    %22 = arith.addf %20, %21 : vector<16x128xf32>
    %23 = arith.truncf %22 : vector<16x128xf32> to vector<16x128xbf16>
    %c0_9 = arith.constant 0 : index
    %c0_10 = arith.constant 0 : index
    %24 = vector.load %arg4[%c0_9, %c0_10] : memref<128x512xbf16, #tpu.memory_space<vmem>>, vector<128x512xbf16>
    %cst_11 = arith.constant dense<0.000000e+00> : vector<16x512xf32>
    %25 = tpu.matmul %23, %24, %cst_11 {dimension_numbers = #tpu.dot_dimension_numbers<[1], [0], [0], [1], [0, 0, 1, 1], [], []>} : vector<16x128xbf16>, vector<128x512xbf16>, vector<16x512xf32> -> vector<16x512xf32>
    %c0_12 = arith.constant 0 : index
    %c0_13 = arith.constant 0 : index
    %26 = vector.load %arg5[%c0_12, %c0_13] : memref<1x512xf32, #tpu.memory_space<vmem>>, vector<1x512xf32>
    %27 = vector.broadcast %26 : vector<1x512xf32> to vector<16x512xf32>
    %28 = arith.addf %25, %27 : vector<16x512xf32>
    %cst_14 = arith.constant 5.000000e-01 : f32
    %29 = vector.broadcast %cst_14 : f32 to vector<16x512xf32>
    %30 = arith.mulf %29, %28 : vector<16x512xf32>
    %cst_15 = arith.constant 4.471500e-02 : f32
    %31 = vector.broadcast %cst_15 : f32 to vector<16x512xf32>
    %32 = arith.mulf %31, %28 : vector<16x512xf32>
    %33 = arith.mulf %32, %28 : vector<16x512xf32>
    %34 = arith.mulf %33, %28 : vector<16x512xf32>
    %35 = arith.addf %28, %34 : vector<16x512xf32>
    %cst_16 = arith.constant 0.797884583 : f32
    %36 = vector.broadcast %cst_16 : f32 to vector<16x512xf32>
    %37 = arith.mulf %36, %35 : vector<16x512xf32>
    %38 = math.tanh %37 : vector<16x512xf32>
    %cst_17 = arith.constant 1.000000e+00 : f32
    %39 = vector.broadcast %cst_17 : f32 to vector<16x512xf32>
    %40 = arith.addf %39, %38 : vector<16x512xf32>
    %41 = arith.mulf %30, %40 : vector<16x512xf32>
    %42 = arith.truncf %41 : vector<16x512xf32> to vector<16x512xbf16>
    %c0_18 = arith.constant 0 : index
    %c0_19 = arith.constant 0 : index
    %43 = vector.load %arg6[%c0_18, %c0_19] : memref<512x128xbf16, #tpu.memory_space<vmem>>, vector<512x128xbf16>
    %cst_20 = arith.constant dense<0.000000e+00> : vector<16x128xf32>
    %44 = tpu.matmul %42, %43, %cst_20 {dimension_numbers = #tpu.dot_dimension_numbers<[1], [0], [0], [1], [0, 0, 1, 1], [], []>} : vector<16x512xbf16>, vector<512x128xbf16>, vector<16x128xf32> -> vector<16x128xf32>
    %c0_21 = arith.constant 0 : index
    %c0_22 = arith.constant 0 : index
    %45 = vector.load %arg7[%c0_21, %c0_22] : memref<1x128xf32, #tpu.memory_space<vmem>>, vector<1x128xf32>
    %46 = vector.broadcast %45 : vector<1x128xf32> to vector<16x128xf32>
    %47 = arith.addf %44, %46 : vector<16x128xf32>
    %48 = arith.addf %0, %47 : vector<16x128xf32>
    %c0_23 = arith.constant 0 : index
    %c0_24 = arith.constant 0 : index
    %49 = vector.load %arg8[%c0_23, %c0_24] : memref<16x128xf32, #tpu.memory_space<vmem>>, vector<16x128xf32>
    tpu.vector_store %arg8[%c0_23, %c0_24], %48 {strides = array<i32>} : memref<16x128xf32, #tpu.memory_space<vmem>>, vector<16x128xf32>,
    return
  }
  func.func @transform_0(%arg0: i32) -> (i32, i32) {
    %c0_i32 = arith.constant 0 : i32
    %c0_i32_0 = arith.constant 0 : i32
    return %arg0, %c0_i32 : i32, i32
  }
  func.func @transform_1(%arg0: i32) -> (i32, i32) {
    %c0_i32 = arith.constant 0 : i32
    %c0_i32_0 = arith.constant 0 : i32
    %c0_i32_1 = arith.constant 0 : i32
    return %c0_i32, %c0_i32_0 : i32, i32
  }
  func.func @transform_2(%arg0: i32) -> (i32, i32) {
    %c0_i32 = arith.constant 0 : i32
    %c0_i32_0 = arith.constant 0 : i32
    %c0_i32_1 = arith.constant 0 : i32
    return %c0_i32, %c0_i32_0 : i32, i32
  }
  func.func @transform_3(%arg0: i32) -> (i32, i32) {
    %c0_i32 = arith.constant 0 : i32
    %c0_i32_0 = arith.constant 0 : i32
    %c0_i32_1 = arith.constant 0 : i32
    return %c0_i32, %c0_i32_0 : i32, i32
  }
  func.func @transform_4(%arg0: i32) -> (i32, i32) {
    %c0_i32 = arith.constant 0 : i32
    %c0_i32_0 = arith.constant 0 : i32
    %c0_i32_1 = arith.constant 0 : i32
    return %c0_i32, %c0_i32_0 : i32, i32
  }
  func.func @transform_5(%arg0: i32) -> (i32, i32) {
    %c0_i32 = arith.constant 0 : i32
    %c0_i32_0 = arith.constant 0 : i32
    %c0_i32_1 = arith.constant 0 : i32
    return %c0_i32, %c0_i32_0 : i32, i32
  }
  func.func @transform_6(%arg0: i32) -> (i32, i32) {
    %c0_i32 = arith.constant 0 : i32
    %c0_i32_0 = arith.constant 0 : i32
    %c0_i32_1 = arith.constant 0 : i32
    return %c0_i32, %c0_i32_0 : i32, i32
  }
  func.func @transform_7(%arg0: i32) -> (i32, i32) {
    %c0_i32 = arith.constant 0 : i32
    %c0_i32_0 = arith.constant 0 : i32
    return %arg0, %c0_i32 : i32, i32
  }
}

module attributes {stable_mosaic.version = 11 : i64} {
  func.func @_mha_kernel(%arg0: i32, %arg1: memref<1x8x128xf32, #tpu.memory_space<vmem>>, %arg2: memref<1x16x128xf32, #tpu.memory_space<vmem>>, %arg3: memref<1x128xf32, #tpu.memory_space<vmem>>, %arg4: memref<1x128xf32, #tpu.memory_space<vmem>>, %arg5: memref<1x128xf32, #tpu.memory_space<vmem>>, %arg6: memref<1x128xf32, #tpu.memory_space<vmem>>, %arg7: memref<128x128xbf16, #tpu.memory_space<vmem>>, %arg8: memref<1x128xf32, #tpu.memory_space<vmem>>, %arg9: memref<128x256xbf16, #tpu.memory_space<vmem>>, %arg10: memref<1x256xf32, #tpu.memory_space<vmem>>, %arg11: memref<128x128xbf16, #tpu.memory_space<vmem>>, %arg12: memref<1x128xf32, #tpu.memory_space<vmem>>, %arg13: memref<1x8x128xf32, #tpu.memory_space<vmem>>) attributes {dimension_semantics = [#tpu.dimension_semantics<parallel>], iteration_bounds = array<i64: 2>, scalar_prefetch = 0 : i64, scratch_operands = 0 : i64, tpu.core_type = #tpu.core_type<tc>, window_params = [{transform_indices = @transform_0, window_bounds = array<i64: 1, 8, 128>}, {transform_indices = @transform_1, window_bounds = array<i64: 1, 16, 128>}, {pipeline_mode = #tpu.pipeline_mode<synchronous>, transform_indices = @transform_2, window_bounds = array<i64: 1, 128>}, {pipeline_mode = #tpu.pipeline_mode<synchronous>, transform_indices = @transform_3, window_bounds = array<i64: 1, 128>}, {pipeline_mode = #tpu.pipeline_mode<synchronous>, transform_indices = @transform_4, window_bounds = array<i64: 1, 128>}, {pipeline_mode = #tpu.pipeline_mode<synchronous>, transform_indices = @transform_5, window_bounds = array<i64: 1, 128>}, {pipeline_mode = #tpu.pipeline_mode<synchronous>, transform_indices = @transform_6, window_bounds = array<i64: 128, 128>}, {pipeline_mode = #tpu.pipeline_mode<synchronous>, transform_indices = @transform_7, window_bounds = array<i64: 1, 128>}, {pipeline_mode = #tpu.pipeline_mode<synchronous>, transform_indices = @transform_8, window_bounds = array<i64: 128, 256>}, {pipeline_mode = #tpu.pipeline_mode<synchronous>, transform_indices = @transform_9, window_bounds = array<i64: 1, 256>}, {pipeline_mode = #tpu.pipeline_mode<synchronous>, transform_indices = @transform_10, window_bounds = array<i64: 128, 128>}, {pipeline_mode = #tpu.pipeline_mode<synchronous>, transform_indices = @transform_11, window_bounds = array<i64: 1, 128>}, {transform_indices = @transform_12, window_bounds = array<i64: 1, 8, 128>}]} {
    %c0 = arith.constant 0 : index
    %c0_0 = arith.constant 0 : index
    %c0_1 = arith.constant 0 : index
    %0 = vector.load %arg1[%c0, %c0_0, %c0_1] : memref<1x8x128xf32, #tpu.memory_space<vmem>>, vector<1x8x128xf32>
    %1 = vector.shape_cast %0 : vector<1x8x128xf32> to vector<8x128xf32>
    %c0_2 = arith.constant 0 : index
    %c0_3 = arith.constant 0 : index
    %2 = vector.load %arg3[%c0_2, %c0_3] : memref<1x128xf32, #tpu.memory_space<vmem>>, vector<1x128xf32>
    %c0_4 = arith.constant 0 : index
    %c0_5 = arith.constant 0 : index
    %3 = vector.load %arg4[%c0_4, %c0_5] : memref<1x128xf32, #tpu.memory_space<vmem>>, vector<1x128xf32>
    %cst = arith.constant dense<0.000000e+00> : vector<8xf32>
    %4 = vector.multi_reduction <add>, %1, %cst [1] : vector<8x128xf32> to vector<8xf32>
    %5 = vector.shape_cast %4 : vector<8xf32> to vector<8x1xf32>
    %cst_6 = arith.constant 1.280000e+02 : f32
    %6 = vector.broadcast %cst_6 : f32 to vector<8x1xf32>
    %7 = arith.divf %5, %6 : vector<8x1xf32>
    %8 = vector.broadcast %7 : vector<8x1xf32> to vector<8x128xf32>
    %9 = arith.subf %1, %8 : vector<8x128xf32>
    %10 = arith.mulf %9, %9 : vector<8x128xf32>
    %cst_7 = arith.constant dense<0.000000e+00> : vector<8xf32>
    %11 = vector.multi_reduction <add>, %10, %cst_7 [1] : vector<8x128xf32> to vector<8xf32>
    %12 = vector.shape_cast %11 : vector<8xf32> to vector<8x1xf32>
    %cst_8 = arith.constant 1.280000e+02 : f32
    %13 = vector.broadcast %cst_8 : f32 to vector<8x1xf32>
    %14 = arith.divf %12, %13 : vector<8x1xf32>
    %cst_9 = arith.constant 9.99999974E-6 : f32
    %15 = vector.broadcast %cst_9 : f32 to vector<8x1xf32>
    %16 = arith.addf %14, %15 : vector<8x1xf32>
    %17 = math.rsqrt %16 : vector<8x1xf32>
    %18 = vector.broadcast %17 : vector<8x1xf32> to vector<8x128xf32>
    %19 = arith.mulf %9, %18 : vector<8x128xf32>
    %20 = vector.broadcast %2 : vector<1x128xf32> to vector<8x128xf32>
    %21 = arith.mulf %19, %20 : vector<8x128xf32>
    %22 = vector.broadcast %3 : vector<1x128xf32> to vector<8x128xf32>
    %23 = arith.addf %21, %22 : vector<8x128xf32>
    %c0_10 = arith.constant 0 : index
    %c0_11 = arith.constant 0 : index
    %c0_12 = arith.constant 0 : index
    %24 = vector.load %arg2[%c0_10, %c0_11, %c0_12] : memref<1x16x128xf32, #tpu.memory_space<vmem>>, vector<1x16x128xf32>
    %25 = vector.shape_cast %24 : vector<1x16x128xf32> to vector<16x128xf32>
    %c0_13 = arith.constant 0 : index
    %c0_14 = arith.constant 0 : index
    %26 = vector.load %arg5[%c0_13, %c0_14] : memref<1x128xf32, #tpu.memory_space<vmem>>, vector<1x128xf32>
    %c0_15 = arith.constant 0 : index
    %c0_16 = arith.constant 0 : index
    %27 = vector.load %arg6[%c0_15, %c0_16] : memref<1x128xf32, #tpu.memory_space<vmem>>, vector<1x128xf32>
    %cst_17 = arith.constant dense<0.000000e+00> : vector<16xf32>
    %28 = vector.multi_reduction <add>, %25, %cst_17 [1] : vector<16x128xf32> to vector<16xf32>
    %29 = vector.shape_cast %28 : vector<16xf32> to vector<16x1xf32>
    %cst_18 = arith.constant 1.280000e+02 : f32
    %30 = vector.broadcast %cst_18 : f32 to vector<16x1xf32>
    %31 = arith.divf %29, %30 : vector<16x1xf32>
    %32 = vector.broadcast %31 : vector<16x1xf32> to vector<16x128xf32>
    %33 = arith.subf %25, %32 : vector<16x128xf32>
    %34 = arith.mulf %33, %33 : vector<16x128xf32>
    %cst_19 = arith.constant dense<0.000000e+00> : vector<16xf32>
    %35 = vector.multi_reduction <add>, %34, %cst_19 [1] : vector<16x128xf32> to vector<16xf32>
    %36 = vector.shape_cast %35 : vector<16xf32> to vector<16x1xf32>
    %cst_20 = arith.constant 1.280000e+02 : f32
    %37 = vector.broadcast %cst_20 : f32 to vector<16x1xf32>
    %38 = arith.divf %36, %37 : vector<16x1xf32>
    %cst_21 = arith.constant 9.99999974E-6 : f32
    %39 = vector.broadcast %cst_21 : f32 to vector<16x1xf32>
    %40 = arith.addf %38, %39 : vector<16x1xf32>
    %41 = math.rsqrt %40 : vector<16x1xf32>
    %42 = vector.broadcast %41 : vector<16x1xf32> to vector<16x128xf32>
    %43 = arith.mulf %33, %42 : vector<16x128xf32>
    %44 = vector.broadcast %26 : vector<1x128xf32> to vector<16x128xf32>
    %45 = arith.mulf %43, %44 : vector<16x128xf32>
    %46 = vector.broadcast %27 : vector<1x128xf32> to vector<16x128xf32>
    %47 = arith.addf %45, %46 : vector<16x128xf32>
    %48 = arith.truncf %23 : vector<8x128xf32> to vector<8x128xbf16>
    %c0_22 = arith.constant 0 : index
    %c0_23 = arith.constant 0 : index
    %49 = vector.load %arg7[%c0_22, %c0_23] : memref<128x128xbf16, #tpu.memory_space<vmem>>, vector<128x128xbf16>
    %cst_24 = arith.constant dense<0.000000e+00> : vector<8x128xf32>
    %50 = tpu.matmul %48, %49, %cst_24 {dimension_numbers = #tpu.dot_dimension_numbers<[1], [0], [0], [1], [0, 0, 1, 1], [], []>} : vector<8x128xbf16>, vector<128x128xbf16>, vector<8x128xf32> -> vector<8x128xf32>
    %c0_25 = arith.constant 0 : index
    %c0_26 = arith.constant 0 : index
    %51 = vector.load %arg8[%c0_25, %c0_26] : memref<1x128xf32, #tpu.memory_space<vmem>>, vector<1x128xf32>
    %52 = vector.broadcast %51 : vector<1x128xf32> to vector<8x128xf32>
    %53 = arith.addf %50, %52 : vector<8x128xf32>
    %54 = arith.truncf %47 : vector<16x128xf32> to vector<16x128xbf16>
    %c0_27 = arith.constant 0 : index
    %c0_28 = arith.constant 0 : index
    %55 = vector.load %arg9[%c0_27, %c0_28] : memref<128x256xbf16, #tpu.memory_space<vmem>>, vector<128x256xbf16>
    %cst_29 = arith.constant dense<0.000000e+00> : vector<16x256xf32>
    %56 = tpu.matmul %54, %55, %cst_29 {dimension_numbers = #tpu.dot_dimension_numbers<[1], [0], [0], [1], [0, 0, 1, 1], [], []>} : vector<16x128xbf16>, vector<128x256xbf16>, vector<16x256xf32> -> vector<16x256xf32>
    %c0_30 = arith.constant 0 : index
    %c0_31 = arith.constant 0 : index
    %57 = vector.load %arg10[%c0_30, %c0_31] : memref<1x256xf32, #tpu.memory_space<vmem>>, vector<1x256xf32>
    %58 = vector.broadcast %57 : vector<1x256xf32> to vector<16x256xf32>
    %59 = arith.addf %56, %58 : vector<16x256xf32>
    %60 = vector.extract_strided_slice %59 {offsets = [0, 0], sizes = [16, 128], strides = [1, 1]} : vector<16x256xf32> to vector<16x128xf32>
    %61 = vector.extract_strided_slice %59 {offsets = [0, 128], sizes = [16, 128], strides = [1, 1]} : vector<16x256xf32> to vector<16x128xf32>
    %c0_32 = arith.constant 0 : index
    %c0_33 = arith.constant 0 : index
    %62 = vector.load %arg11[%c0_32, %c0_33] : memref<128x128xbf16, #tpu.memory_space<vmem>>, vector<128x128xbf16>
    %cst_34 = arith.constant 0.000000e+00 : f32
    %63 = vector.broadcast %cst_34 : f32 to vector<8x128xf32>
    %64 = vector.extract_strided_slice %53 {offsets = [0, 0], sizes = [8, 64], strides = [1, 1]} : vector<8x128xf32> to vector<8x64xf32>
    %65 = arith.truncf %64 : vector<8x64xf32> to vector<8x64xbf16>
    %66 = vector.extract_strided_slice %60 {offsets = [0, 0], sizes = [16, 64], strides = [1, 1]} : vector<16x128xf32> to vector<16x64xf32>
    %67 = arith.truncf %66 : vector<16x64xf32> to vector<16x64xbf16>
    %68 = vector.extract_strided_slice %61 {offsets = [0, 0], sizes = [16, 64], strides = [1, 1]} : vector<16x128xf32> to vector<16x64xf32>
    %69 = arith.truncf %68 : vector<16x64xf32> to vector<16x64xbf16>
    %cst_35 = arith.constant dense<0.000000e+00> : vector<8x16xf32>
    %70 = tpu.matmul %65, %67, %cst_35 {dimension_numbers = #tpu.dot_dimension_numbers<[1], [1], [0], [0], [0, 0, 1, 0], [], []>} : vector<8x64xbf16>, vector<16x64xbf16>, vector<8x16xf32> -> vector<8x16xf32>
    %cst_36 = arith.constant 1.250000e-01 : f32
    %71 = vector.broadcast %cst_36 : f32 to vector<8x16xf32>
    %72 = arith.mulf %70, %71 : vector<8x16xf32>
    %cst_37 = arith.constant dense<0xFF800000> : vector<8xf32>
    %73 = vector.multi_reduction <maximumf>, %72, %cst_37 [1] : vector<8x16xf32> to vector<8xf32>
    %74 = vector.shape_cast %73 : vector<8xf32> to vector<8x1xf32>
    %75 = vector.broadcast %74 : vector<8x1xf32> to vector<8x16xf32>
    %76 = arith.subf %72, %75 : vector<8x16xf32>
    %77 = math.exp %76 : vector<8x16xf32>
    %cst_38 = arith.constant dense<0.000000e+00> : vector<8xf32>
    %78 = vector.multi_reduction <add>, %77, %cst_38 [1] : vector<8x16xf32> to vector<8xf32>
    %79 = vector.shape_cast %78 : vector<8xf32> to vector<8x1xf32>
    %80 = tpu.reciprocal %79 {approx = true} : vector<8x1xf32> -> vector<8x1xf32>
    %81 = vector.broadcast %80 : vector<8x1xf32> to vector<8x16xf32>
    %82 = arith.mulf %77, %81 : vector<8x16xf32>
    %83 = arith.truncf %82 : vector<8x16xf32> to vector<8x16xbf16>
    %cst_39 = arith.constant dense<0.000000e+00> : vector<8x64xf32>
    %84 = tpu.matmul %83, %69, %cst_39 {dimension_numbers = #tpu.dot_dimension_numbers<[1], [0], [0], [1], [0, 0, 1, 1], [], []>} : vector<8x16xbf16>, vector<16x64xbf16>, vector<8x64xf32> -> vector<8x64xf32>
    %85 = arith.truncf %84 : vector<8x64xf32> to vector<8x64xbf16>
    %86 = vector.extract_strided_slice %62 {offsets = [0, 0], sizes = [64, 128], strides = [1, 1]} : vector<128x128xbf16> to vector<64x128xbf16>
    %cst_40 = arith.constant dense<0.000000e+00> : vector<8x128xf32>
    %87 = tpu.matmul %85, %86, %cst_40 {dimension_numbers = #tpu.dot_dimension_numbers<[1], [0], [0], [1], [0, 0, 1, 1], [], []>} : vector<8x64xbf16>, vector<64x128xbf16>, vector<8x128xf32> -> vector<8x128xf32>
    %88 = arith.addf %63, %87 : vector<8x128xf32>
    %89 = vector.extract_strided_slice %53 {offsets = [0, 64], sizes = [8, 64], strides = [1, 1]} : vector<8x128xf32> to vector<8x64xf32>
    %90 = arith.truncf %89 : vector<8x64xf32> to vector<8x64xbf16>
    %91 = vector.extract_strided_slice %60 {offsets = [0, 64], sizes = [16, 64], strides = [1, 1]} : vector<16x128xf32> to vector<16x64xf32>
    %92 = arith.truncf %91 : vector<16x64xf32> to vector<16x64xbf16>
    %93 = vector.extract_strided_slice %61 {offsets = [0, 64], sizes = [16, 64], strides = [1, 1]} : vector<16x128xf32> to vector<16x64xf32>
    %94 = arith.truncf %93 : vector<16x64xf32> to vector<16x64xbf16>
    %cst_41 = arith.constant dense<0.000000e+00> : vector<8x16xf32>
    %95 = tpu.matmul %90, %92, %cst_41 {dimension_numbers = #tpu.dot_dimension_numbers<[1], [1], [0], [0], [0, 0, 1, 0], [], []>} : vector<8x64xbf16>, vector<16x64xbf16>, vector<8x16xf32> -> vector<8x16xf32>
    %cst_42 = arith.constant 1.250000e-01 : f32
    %96 = vector.broadcast %cst_42 : f32 to vector<8x16xf32>
    %97 = arith.mulf %95, %96 : vector<8x16xf32>
    %cst_43 = arith.constant dense<0xFF800000> : vector<8xf32>
    %98 = vector.multi_reduction <maximumf>, %97, %cst_43 [1] : vector<8x16xf32> to vector<8xf32>
    %99 = vector.shape_cast %98 : vector<8xf32> to vector<8x1xf32>
    %100 = vector.broadcast %99 : vector<8x1xf32> to vector<8x16xf32>
    %101 = arith.subf %97, %100 : vector<8x16xf32>
    %102 = math.exp %101 : vector<8x16xf32>
    %cst_44 = arith.constant dense<0.000000e+00> : vector<8xf32>
    %103 = vector.multi_reduction <add>, %102, %cst_44 [1] : vector<8x16xf32> to vector<8xf32>
    %104 = vector.shape_cast %103 : vector<8xf32> to vector<8x1xf32>
    %105 = tpu.reciprocal %104 {approx = true} : vector<8x1xf32> -> vector<8x1xf32>
    %106 = vector.broadcast %105 : vector<8x1xf32> to vector<8x16xf32>
    %107 = arith.mulf %102, %106 : vector<8x16xf32>
    %108 = arith.truncf %107 : vector<8x16xf32> to vector<8x16xbf16>
    %cst_45 = arith.constant dense<0.000000e+00> : vector<8x64xf32>
    %109 = tpu.matmul %108, %94, %cst_45 {dimension_numbers = #tpu.dot_dimension_numbers<[1], [0], [0], [1], [0, 0, 1, 1], [], []>} : vector<8x16xbf16>, vector<16x64xbf16>, vector<8x64xf32> -> vector<8x64xf32>
    %110 = arith.truncf %109 : vector<8x64xf32> to vector<8x64xbf16>
    %111 = vector.extract_strided_slice %62 {offsets = [64, 0], sizes = [64, 128], strides = [1, 1]} : vector<128x128xbf16> to vector<64x128xbf16>
    %cst_46 = arith.constant dense<0.000000e+00> : vector<8x128xf32>
    %112 = tpu.matmul %110, %111, %cst_46 {dimension_numbers = #tpu.dot_dimension_numbers<[1], [0], [0], [1], [0, 0, 1, 1], [], []>} : vector<8x64xbf16>, vector<64x128xbf16>, vector<8x128xf32> -> vector<8x128xf32>
    %113 = arith.addf %88, %112 : vector<8x128xf32>
    %c0_47 = arith.constant 0 : index
    %c0_48 = arith.constant 0 : index
    %114 = vector.load %arg12[%c0_47, %c0_48] : memref<1x128xf32, #tpu.memory_space<vmem>>, vector<1x128xf32>
    %115 = vector.broadcast %114 : vector<1x128xf32> to vector<8x128xf32>
    %116 = arith.addf %113, %115 : vector<8x128xf32>
    %c0_49 = arith.constant 0 : index
    %c0_50 = arith.constant 0 : index
    %c0_51 = arith.constant 0 : index
    %117 = vector.load %arg13[%c0_49, %c0_50, %c0_51] : memref<1x8x128xf32, #tpu.memory_space<vmem>>, vector<1x8x128xf32>
    %118 = vector.shape_cast %117 : vector<1x8x128xf32> to vector<8x128xf32>
    %119 = vector.shape_cast %116 : vector<8x128xf32> to vector<1x8x128xf32>
    tpu.vector_store %arg13[%c0_49, %c0_50, %c0_51], %119 {strides = array<i32>} : memref<1x8x128xf32, #tpu.memory_space<vmem>>, vector<1x8x128xf32>,
    return
  }
  func.func @transform_0(%arg0: i32) -> (i32, i32, i32) {
    %c0_i32 = arith.constant 0 : i32
    %c0_i32_0 = arith.constant 0 : i32
    %c0_i32_1 = arith.constant 0 : i32
    return %arg0, %c0_i32, %c0_i32_0 : i32, i32, i32
  }
  func.func @transform_1(%arg0: i32) -> (i32, i32, i32) {
    %c0_i32 = arith.constant 0 : i32
    %c0_i32_0 = arith.constant 0 : i32
    %c0_i32_1 = arith.constant 0 : i32
    return %arg0, %c0_i32, %c0_i32_0 : i32, i32, i32
  }
  func.func @transform_2(%arg0: i32) -> (i32, i32) {
    %c0_i32 = arith.constant 0 : i32
    %c0_i32_0 = arith.constant 0 : i32
    %c0_i32_1 = arith.constant 0 : i32
    return %c0_i32, %c0_i32_0 : i32, i32
  }
  func.func @transform_3(%arg0: i32) -> (i32, i32) {
    %c0_i32 = arith.constant 0 : i32
    %c0_i32_0 = arith.constant 0 : i32
    %c0_i32_1 = arith.constant 0 : i32
    return %c0_i32, %c0_i32_0 : i32, i32
  }
  func.func @transform_4(%arg0: i32) -> (i32, i32) {
    %c0_i32 = arith.constant 0 : i32
    %c0_i32_0 = arith.constant 0 : i32
    %c0_i32_1 = arith.constant 0 : i32
    return %c0_i32, %c0_i32_0 : i32, i32
  }
  func.func @transform_5(%arg0: i32) -> (i32, i32) {
    %c0_i32 = arith.constant 0 : i32
    %c0_i32_0 = arith.constant 0 : i32
    %c0_i32_1 = arith.constant 0 : i32
    return %c0_i32, %c0_i32_0 : i32, i32
  }
  func.func @transform_6(%arg0: i32) -> (i32, i32) {
    %c0_i32 = arith.constant 0 : i32
    %c0_i32_0 = arith.constant 0 : i32
    %c0_i32_1 = arith.constant 0 : i32
    return %c0_i32, %c0_i32_0 : i32, i32
  }
  func.func @transform_7(%arg0: i32) -> (i32, i32) {
    %c0_i32 = arith.constant 0 : i32
    %c0_i32_0 = arith.constant 0 : i32
    %c0_i32_1 = arith.constant 0 : i32
    return %c0_i32, %c0_i32_0 : i32, i32
  }
  func.func @transform_8(%arg0: i32) -> (i32, i32) {
    %c0_i32 = arith.constant 0 : i32
    %c0_i32_0 = arith.constant 0 : i32
    %c0_i32_1 = arith.constant 0 : i32
    return %c0_i32, %c0_i32_0 : i32, i32
  }
  func.func @transform_9(%arg0: i32) -> (i32, i32) {
    %c0_i32 = arith.constant 0 : i32
    %c0_i32_0 = arith.constant 0 : i32
    %c0_i32_1 = arith.constant 0 : i32
    return %c0_i32, %c0_i32_0 : i32, i32
  }
  func.func @transform_10(%arg0: i32) -> (i32, i32) {
    %c0_i32 = arith.constant 0 : i32
    %c0_i32_0 = arith.constant 0 : i32
    %c0_i32_1 = arith.constant 0 : i32
    return %c0_i32, %c0_i32_0 : i32, i32
  }
  func.func @transform_11(%arg0: i32) -> (i32, i32) {
    %c0_i32 = arith.constant 0 : i32
    %c0_i32_0 = arith.constant 0 : i32
    %c0_i32_1 = arith.constant 0 : i32
    return %c0_i32, %c0_i32_0 : i32, i32
  }
  func.func @transform_12(%arg0: i32) -> (i32, i32, i32) {
    %c0_i32 = arith.constant 0 : i32
    %c0_i32_0 = arith.constant 0 : i32
    %c0_i32_1 = arith.constant 0 : i32
    return %arg0, %c0_i32, %c0_i32_0 : i32, i32, i32
  }
}

module attributes {stable_mosaic.version = 11 : i64} {
  func.func @_vocab_kernel(%arg0: i32, %arg1: i32, %arg2: memref<16x128xf32, #tpu.memory_space<vmem>>, %arg3: memref<128x512xbf16, #tpu.memory_space<vmem>>, %arg4: memref<1x512xf32, #tpu.memory_space<vmem>>, %arg5: memref<16x512xf32, #tpu.memory_space<vmem>>) attributes {dimension_semantics = [#tpu.dimension_semantics<parallel>, #tpu.dimension_semantics<parallel>], iteration_bounds = array<i64: 1, 1>, scalar_prefetch = 0 : i64, scratch_operands = 0 : i64, tpu.core_type = #tpu.core_type<tc>, window_params = [{transform_indices = @transform_0, window_bounds = array<i64: 16, 128>}, {transform_indices = @transform_1, window_bounds = array<i64: 128, 512>}, {transform_indices = @transform_2, window_bounds = array<i64: 1, 512>}, {transform_indices = @transform_3, window_bounds = array<i64: 16, 512>}]} {
    %c0 = arith.constant 0 : index
    %c0_0 = arith.constant 0 : index
    %0 = vector.load %arg2[%c0, %c0_0] : memref<16x128xf32, #tpu.memory_space<vmem>>, vector<16x128xf32>
    %1 = arith.truncf %0 : vector<16x128xf32> to vector<16x128xbf16>
    %c0_1 = arith.constant 0 : index
    %c0_2 = arith.constant 0 : index
    %2 = vector.load %arg3[%c0_1, %c0_2] : memref<128x512xbf16, #tpu.memory_space<vmem>>, vector<128x512xbf16>
    %cst = arith.constant dense<0.000000e+00> : vector<16x512xf32>
    %3 = tpu.matmul %1, %2, %cst {dimension_numbers = #tpu.dot_dimension_numbers<[1], [0], [0], [1], [0, 0, 1, 1], [], []>} : vector<16x128xbf16>, vector<128x512xbf16>, vector<16x512xf32> -> vector<16x512xf32>
    %c0_3 = arith.constant 0 : index
    %c0_4 = arith.constant 0 : index
    %4 = vector.load %arg4[%c0_3, %c0_4] : memref<1x512xf32, #tpu.memory_space<vmem>>, vector<1x512xf32>
    %5 = vector.broadcast %4 : vector<1x512xf32> to vector<16x512xf32>
    %6 = arith.addf %3, %5 : vector<16x512xf32>
    %c0_5 = arith.constant 0 : index
    %c0_6 = arith.constant 0 : index
    %7 = vector.load %arg5[%c0_5, %c0_6] : memref<16x512xf32, #tpu.memory_space<vmem>>, vector<16x512xf32>
    tpu.vector_store %arg5[%c0_5, %c0_6], %6 {strides = array<i32>} : memref<16x512xf32, #tpu.memory_space<vmem>>, vector<16x512xf32>,
    return
  }
  func.func @transform_0(%arg0: i32, %arg1: i32) -> (i32, i32) {
    %c0_i32 = arith.constant 0 : i32
    %c0_i32_0 = arith.constant 0 : i32
    return %arg0, %c0_i32 : i32, i32
  }
  func.func @transform_1(%arg0: i32, %arg1: i32) -> (i32, i32) {
    %c0_i32 = arith.constant 0 : i32
    %c0_i32_0 = arith.constant 0 : i32
    return %c0_i32, %arg1 : i32, i32
  }
  func.func @transform_2(%arg0: i32, %arg1: i32) -> (i32, i32) {
    %c0_i32 = arith.constant 0 : i32
    %c0_i32_0 = arith.constant 0 : i32
    return %c0_i32, %arg1 : i32, i32
  }
  func.func @transform_3(%arg0: i32, %arg1: i32) -> (i32, i32) {
    %c0_i32 = arith.constant 0 : i32
    return %arg0, %arg1 : i32, i32
  }
}

module attributes {stable_mosaic.version = 11 : i64} {
  func.func @_ffn_kernel(%arg0: i32, %arg1: memref<16x128xf32, #tpu.memory_space<vmem>>, %arg2: memref<1x128xf32, #tpu.memory_space<vmem>>, %arg3: memref<1x128xf32, #tpu.memory_space<vmem>>, %arg4: memref<128x512xbf16, #tpu.memory_space<vmem>>, %arg5: memref<1x512xf32, #tpu.memory_space<vmem>>, %arg6: memref<512x128xbf16, #tpu.memory_space<vmem>>, %arg7: memref<1x128xf32, #tpu.memory_space<vmem>>, %arg8: memref<16x128xf32, #tpu.memory_space<vmem>>) attributes {dimension_semantics = [#tpu.dimension_semantics<parallel>], iteration_bounds = array<i64: 1>, scalar_prefetch = 0 : i64, scratch_operands = 0 : i64, tpu.core_type = #tpu.core_type<tc>, window_params = [{transform_indices = @transform_0, window_bounds = array<i64: 16, 128>}, {pipeline_mode = #tpu.pipeline_mode<synchronous>, transform_indices = @transform_1, window_bounds = array<i64: 1, 128>}, {pipeline_mode = #tpu.pipeline_mode<synchronous>, transform_indices = @transform_2, window_bounds = array<i64: 1, 128>}, {pipeline_mode = #tpu.pipeline_mode<synchronous>, transform_indices = @transform_3, window_bounds = array<i64: 128, 512>}, {pipeline_mode = #tpu.pipeline_mode<synchronous>, transform_indices = @transform_4, window_bounds = array<i64: 1, 512>}, {pipeline_mode = #tpu.pipeline_mode<synchronous>, transform_indices = @transform_5, window_bounds = array<i64: 512, 128>}, {pipeline_mode = #tpu.pipeline_mode<synchronous>, transform_indices = @transform_6, window_bounds = array<i64: 1, 128>}, {transform_indices = @transform_7, window_bounds = array<i64: 16, 128>}]} {
    %c0 = arith.constant 0 : index
    %c0_0 = arith.constant 0 : index
    %0 = vector.load %arg1[%c0, %c0_0] : memref<16x128xf32, #tpu.memory_space<vmem>>, vector<16x128xf32>
    %c0_1 = arith.constant 0 : index
    %c0_2 = arith.constant 0 : index
    %1 = vector.load %arg2[%c0_1, %c0_2] : memref<1x128xf32, #tpu.memory_space<vmem>>, vector<1x128xf32>
    %c0_3 = arith.constant 0 : index
    %c0_4 = arith.constant 0 : index
    %2 = vector.load %arg3[%c0_3, %c0_4] : memref<1x128xf32, #tpu.memory_space<vmem>>, vector<1x128xf32>
    %cst = arith.constant dense<0.000000e+00> : vector<16xf32>
    %3 = vector.multi_reduction <add>, %0, %cst [1] : vector<16x128xf32> to vector<16xf32>
    %4 = vector.shape_cast %3 : vector<16xf32> to vector<16x1xf32>
    %cst_5 = arith.constant 1.280000e+02 : f32
    %5 = vector.broadcast %cst_5 : f32 to vector<16x1xf32>
    %6 = arith.divf %4, %5 : vector<16x1xf32>
    %7 = vector.broadcast %6 : vector<16x1xf32> to vector<16x128xf32>
    %8 = arith.subf %0, %7 : vector<16x128xf32>
    %9 = arith.mulf %8, %8 : vector<16x128xf32>
    %cst_6 = arith.constant dense<0.000000e+00> : vector<16xf32>
    %10 = vector.multi_reduction <add>, %9, %cst_6 [1] : vector<16x128xf32> to vector<16xf32>
    %11 = vector.shape_cast %10 : vector<16xf32> to vector<16x1xf32>
    %cst_7 = arith.constant 1.280000e+02 : f32
    %12 = vector.broadcast %cst_7 : f32 to vector<16x1xf32>
    %13 = arith.divf %11, %12 : vector<16x1xf32>
    %cst_8 = arith.constant 9.99999974E-6 : f32
    %14 = vector.broadcast %cst_8 : f32 to vector<16x1xf32>
    %15 = arith.addf %13, %14 : vector<16x1xf32>
    %16 = math.rsqrt %15 : vector<16x1xf32>
    %17 = vector.broadcast %16 : vector<16x1xf32> to vector<16x128xf32>
    %18 = arith.mulf %8, %17 : vector<16x128xf32>
    %19 = vector.broadcast %1 : vector<1x128xf32> to vector<16x128xf32>
    %20 = arith.mulf %18, %19 : vector<16x128xf32>
    %21 = vector.broadcast %2 : vector<1x128xf32> to vector<16x128xf32>
    %22 = arith.addf %20, %21 : vector<16x128xf32>
    %23 = arith.truncf %22 : vector<16x128xf32> to vector<16x128xbf16>
    %c0_9 = arith.constant 0 : index
    %c0_10 = arith.constant 0 : index
    %24 = vector.load %arg4[%c0_9, %c0_10] : memref<128x512xbf16, #tpu.memory_space<vmem>>, vector<128x512xbf16>
    %cst_11 = arith.constant dense<0.000000e+00> : vector<16x512xf32>
    %25 = tpu.matmul %23, %24, %cst_11 {dimension_numbers = #tpu.dot_dimension_numbers<[1], [0], [0], [1], [0, 0, 1, 1], [], []>} : vector<16x128xbf16>, vector<128x512xbf16>, vector<16x512xf32> -> vector<16x512xf32>
    %c0_12 = arith.constant 0 : index
    %c0_13 = arith.constant 0 : index
    %26 = vector.load %arg5[%c0_12, %c0_13] : memref<1x512xf32, #tpu.memory_space<vmem>>, vector<1x512xf32>
    %27 = vector.broadcast %26 : vector<1x512xf32> to vector<16x512xf32>
    %28 = arith.addf %25, %27 : vector<16x512xf32>
    %cst_14 = arith.constant 5.000000e-01 : f32
    %29 = vector.broadcast %cst_14 : f32 to vector<16x512xf32>
    %30 = arith.mulf %29, %28 : vector<16x512xf32>
    %cst_15 = arith.constant 4.471500e-02 : f32
    %31 = vector.broadcast %cst_15 : f32 to vector<16x512xf32>
    %32 = arith.mulf %31, %28 : vector<16x512xf32>
    %33 = arith.mulf %32, %28 : vector<16x512xf32>
    %34 = arith.mulf %33, %28 : vector<16x512xf32>
    %35 = arith.addf %28, %34 : vector<16x512xf32>
    %cst_16 = arith.constant 0.797884583 : f32
    %36 = vector.broadcast %cst_16 : f32 to vector<16x512xf32>
    %37 = arith.mulf %36, %35 : vector<16x512xf32>
    %38 = math.tanh %37 : vector<16x512xf32>
    %cst_17 = arith.constant 1.000000e+00 : f32
    %39 = vector.broadcast %cst_17 : f32 to vector<16x512xf32>
    %40 = arith.addf %39, %38 : vector<16x512xf32>
    %41 = arith.mulf %30, %40 : vector<16x512xf32>
    %42 = arith.truncf %41 : vector<16x512xf32> to vector<16x512xbf16>
    %c0_18 = arith.constant 0 : index
    %c0_19 = arith.constant 0 : index
    %43 = vector.load %arg6[%c0_18, %c0_19] : memref<512x128xbf16, #tpu.memory_space<vmem>>, vector<512x128xbf16>
    %cst_20 = arith.constant dense<0.000000e+00> : vector<16x128xf32>
    %44 = tpu.matmul %42, %43, %cst_20 {dimension_numbers = #tpu.dot_dimension_numbers<[1], [0], [0], [1], [0, 0, 1, 1], [], []>} : vector<16x512xbf16>, vector<512x128xbf16>, vector<16x128xf32> -> vector<16x128xf32>
    %c0_21 = arith.constant 0 : index
    %c0_22 = arith.constant 0 : index
    %45 = vector.load %arg7[%c0_21, %c0_22] : memref<1x128xf32, #tpu.memory_space<vmem>>, vector<1x128xf32>
    %46 = vector.broadcast %45 : vector<1x128xf32> to vector<16x128xf32>
    %47 = arith.addf %44, %46 : vector<16x128xf32>
    %48 = arith.addf %0, %47 : vector<16x128xf32>
    %c0_23 = arith.constant 0 : index
    %c0_24 = arith.constant 0 : index
    %49 = vector.load %arg8[%c0_23, %c0_24] : memref<16x128xf32, #tpu.memory_space<vmem>>, vector<16x128xf32>
    tpu.vector_store %arg8[%c0_23, %c0_24], %48 {strides = array<i32>} : memref<16x128xf32, #tpu.memory_space<vmem>>, vector<16x128xf32>,
    return
  }
  func.func @transform_0(%arg0: i32) -> (i32, i32) {
    %c0_i32 = arith.constant 0 : i32
    %c0_i32_0 = arith.constant 0 : i32
    return %arg0, %c0_i32 : i32, i32
  }
  func.func @transform_1(%arg0: i32) -> (i32, i32) {
    %c0_i32 = arith.constant 0 : i32
    %c0_i32_0 = arith.constant 0 : i32
    %c0_i32_1 = arith.constant 0 : i32
    return %c0_i32, %c0_i32_0 : i32, i32
  }
  func.func @transform_2(%arg0: i32) -> (i32, i32) {
    %c0_i32 = arith.constant 0 : i32
    %c0_i32_0 = arith.constant 0 : i32
    %c0_i32_1 = arith.constant 0 : i32
    return %c0_i32, %c0_i32_0 : i32, i32
  }
  func.func @transform_3(%arg0: i32) -> (i32, i32) {
    %c0_i32 = arith.constant 0 : i32
    %c0_i32_0 = arith.constant 0 : i32
    %c0_i32_1 = arith.constant 0 : i32
    return %c0_i32, %c0_i32_0 : i32, i32
  }
  func.func @transform_4(%arg0: i32) -> (i32, i32) {
    %c0_i32 = arith.constant 0 : i32
    %c0_i32_0 = arith.constant 0 : i32
    %c0_i32_1 = arith.constant 0 : i32
    return %c0_i32, %c0_i32_0 : i32, i32
  }
  func.func @transform_5(%arg0: i32) -> (i32, i32) {
    %c0_i32 = arith.constant 0 : i32
    %c0_i32_0 = arith.constant 0 : i32
    %c0_i32_1 = arith.constant 0 : i32
    return %c0_i32, %c0_i32_0 : i32, i32
  }
  func.func @transform_6(%arg0: i32) -> (i32, i32) {
    %c0_i32 = arith.constant 0 : i32
    %c0_i32_0 = arith.constant 0 : i32
    %c0_i32_1 = arith.constant 0 : i32
    return %c0_i32, %c0_i32_0 : i32, i32
  }
  func.func @transform_7(%arg0: i32) -> (i32, i32) {
    %c0_i32 = arith.constant 0 : i32
    %c0_i32_0 = arith.constant 0 : i32
    return %arg0, %c0_i32 : i32, i32
  }
}

module attributes {stable_mosaic.version = 11 : i64} {
  func.func @_head_pre_kernel(%arg0: i32, %arg1: memref<16x128xf32, #tpu.memory_space<vmem>>, %arg2: memref<1x128xf32, #tpu.memory_space<vmem>>, %arg3: memref<1x128xf32, #tpu.memory_space<vmem>>, %arg4: memref<128x128xbf16, #tpu.memory_space<vmem>>, %arg5: memref<1x128xf32, #tpu.memory_space<vmem>>, %arg6: memref<1x128xf32, #tpu.memory_space<vmem>>, %arg7: memref<1x128xf32, #tpu.memory_space<vmem>>, %arg8: memref<16x128xf32, #tpu.memory_space<vmem>>) attributes {dimension_semantics = [#tpu.dimension_semantics<parallel>], iteration_bounds = array<i64: 1>, scalar_prefetch = 0 : i64, scratch_operands = 0 : i64, tpu.core_type = #tpu.core_type<tc>, window_params = [{transform_indices = @transform_0, window_bounds = array<i64: 16, 128>}, {pipeline_mode = #tpu.pipeline_mode<synchronous>, transform_indices = @transform_1, window_bounds = array<i64: 1, 128>}, {pipeline_mode = #tpu.pipeline_mode<synchronous>, transform_indices = @transform_2, window_bounds = array<i64: 1, 128>}, {pipeline_mode = #tpu.pipeline_mode<synchronous>, transform_indices = @transform_3, window_bounds = array<i64: 128, 128>}, {pipeline_mode = #tpu.pipeline_mode<synchronous>, transform_indices = @transform_4, window_bounds = array<i64: 1, 128>}, {pipeline_mode = #tpu.pipeline_mode<synchronous>, transform_indices = @transform_5, window_bounds = array<i64: 1, 128>}, {pipeline_mode = #tpu.pipeline_mode<synchronous>, transform_indices = @transform_6, window_bounds = array<i64: 1, 128>}, {transform_indices = @transform_7, window_bounds = array<i64: 16, 128>}]} {
    %c0 = arith.constant 0 : index
    %c0_0 = arith.constant 0 : index
    %0 = vector.load %arg1[%c0, %c0_0] : memref<16x128xf32, #tpu.memory_space<vmem>>, vector<16x128xf32>
    %c0_1 = arith.constant 0 : index
    %c0_2 = arith.constant 0 : index
    %1 = vector.load %arg2[%c0_1, %c0_2] : memref<1x128xf32, #tpu.memory_space<vmem>>, vector<1x128xf32>
    %c0_3 = arith.constant 0 : index
    %c0_4 = arith.constant 0 : index
    %2 = vector.load %arg3[%c0_3, %c0_4] : memref<1x128xf32, #tpu.memory_space<vmem>>, vector<1x128xf32>
    %cst = arith.constant dense<0.000000e+00> : vector<16xf32>
    %3 = vector.multi_reduction <add>, %0, %cst [1] : vector<16x128xf32> to vector<16xf32>
    %4 = vector.shape_cast %3 : vector<16xf32> to vector<16x1xf32>
    %cst_5 = arith.constant 1.280000e+02 : f32
    %5 = vector.broadcast %cst_5 : f32 to vector<16x1xf32>
    %6 = arith.divf %4, %5 : vector<16x1xf32>
    %7 = vector.broadcast %6 : vector<16x1xf32> to vector<16x128xf32>
    %8 = arith.subf %0, %7 : vector<16x128xf32>
    %9 = arith.mulf %8, %8 : vector<16x128xf32>
    %cst_6 = arith.constant dense<0.000000e+00> : vector<16xf32>
    %10 = vector.multi_reduction <add>, %9, %cst_6 [1] : vector<16x128xf32> to vector<16xf32>
    %11 = vector.shape_cast %10 : vector<16xf32> to vector<16x1xf32>
    %cst_7 = arith.constant 1.280000e+02 : f32
    %12 = vector.broadcast %cst_7 : f32 to vector<16x1xf32>
    %13 = arith.divf %11, %12 : vector<16x1xf32>
    %cst_8 = arith.constant 9.99999974E-6 : f32
    %14 = vector.broadcast %cst_8 : f32 to vector<16x1xf32>
    %15 = arith.addf %13, %14 : vector<16x1xf32>
    %16 = math.rsqrt %15 : vector<16x1xf32>
    %17 = vector.broadcast %16 : vector<16x1xf32> to vector<16x128xf32>
    %18 = arith.mulf %8, %17 : vector<16x128xf32>
    %19 = vector.broadcast %1 : vector<1x128xf32> to vector<16x128xf32>
    %20 = arith.mulf %18, %19 : vector<16x128xf32>
    %21 = vector.broadcast %2 : vector<1x128xf32> to vector<16x128xf32>
    %22 = arith.addf %20, %21 : vector<16x128xf32>
    %23 = arith.truncf %22 : vector<16x128xf32> to vector<16x128xbf16>
    %c0_9 = arith.constant 0 : index
    %c0_10 = arith.constant 0 : index
    %24 = vector.load %arg4[%c0_9, %c0_10] : memref<128x128xbf16, #tpu.memory_space<vmem>>, vector<128x128xbf16>
    %cst_11 = arith.constant dense<0.000000e+00> : vector<16x128xf32>
    %25 = tpu.matmul %23, %24, %cst_11 {dimension_numbers = #tpu.dot_dimension_numbers<[1], [0], [0], [1], [0, 0, 1, 1], [], []>} : vector<16x128xbf16>, vector<128x128xbf16>, vector<16x128xf32> -> vector<16x128xf32>
    %c0_12 = arith.constant 0 : index
    %c0_13 = arith.constant 0 : index
    %26 = vector.load %arg5[%c0_12, %c0_13] : memref<1x128xf32, #tpu.memory_space<vmem>>, vector<1x128xf32>
    %27 = vector.broadcast %26 : vector<1x128xf32> to vector<16x128xf32>
    %28 = arith.addf %25, %27 : vector<16x128xf32>
    %cst_14 = arith.constant 5.000000e-01 : f32
    %29 = vector.broadcast %cst_14 : f32 to vector<16x128xf32>
    %30 = arith.mulf %29, %28 : vector<16x128xf32>
    %cst_15 = arith.constant 4.471500e-02 : f32
    %31 = vector.broadcast %cst_15 : f32 to vector<16x128xf32>
    %32 = arith.mulf %31, %28 : vector<16x128xf32>
    %33 = arith.mulf %32, %28 : vector<16x128xf32>
    %34 = arith.mulf %33, %28 : vector<16x128xf32>
    %35 = arith.addf %28, %34 : vector<16x128xf32>
    %cst_16 = arith.constant 0.797884583 : f32
    %36 = vector.broadcast %cst_16 : f32 to vector<16x128xf32>
    %37 = arith.mulf %36, %35 : vector<16x128xf32>
    %38 = math.tanh %37 : vector<16x128xf32>
    %cst_17 = arith.constant 1.000000e+00 : f32
    %39 = vector.broadcast %cst_17 : f32 to vector<16x128xf32>
    %40 = arith.addf %39, %38 : vector<16x128xf32>
    %41 = arith.mulf %30, %40 : vector<16x128xf32>
    %c0_18 = arith.constant 0 : index
    %c0_19 = arith.constant 0 : index
    %42 = vector.load %arg6[%c0_18, %c0_19] : memref<1x128xf32, #tpu.memory_space<vmem>>, vector<1x128xf32>
    %c0_20 = arith.constant 0 : index
    %c0_21 = arith.constant 0 : index
    %43 = vector.load %arg7[%c0_20, %c0_21] : memref<1x128xf32, #tpu.memory_space<vmem>>, vector<1x128xf32>
    %cst_22 = arith.constant dense<0.000000e+00> : vector<16xf32>
    %44 = vector.multi_reduction <add>, %41, %cst_22 [1] : vector<16x128xf32> to vector<16xf32>
    %45 = vector.shape_cast %44 : vector<16xf32> to vector<16x1xf32>
    %cst_23 = arith.constant 1.280000e+02 : f32
    %46 = vector.broadcast %cst_23 : f32 to vector<16x1xf32>
    %47 = arith.divf %45, %46 : vector<16x1xf32>
    %48 = vector.broadcast %47 : vector<16x1xf32> to vector<16x128xf32>
    %49 = arith.subf %41, %48 : vector<16x128xf32>
    %50 = arith.mulf %49, %49 : vector<16x128xf32>
    %cst_24 = arith.constant dense<0.000000e+00> : vector<16xf32>
    %51 = vector.multi_reduction <add>, %50, %cst_24 [1] : vector<16x128xf32> to vector<16xf32>
    %52 = vector.shape_cast %51 : vector<16xf32> to vector<16x1xf32>
    %cst_25 = arith.constant 1.280000e+02 : f32
    %53 = vector.broadcast %cst_25 : f32 to vector<16x1xf32>
    %54 = arith.divf %52, %53 : vector<16x1xf32>
    %cst_26 = arith.constant 9.99999974E-6 : f32
    %55 = vector.broadcast %cst_26 : f32 to vector<16x1xf32>
    %56 = arith.addf %54, %55 : vector<16x1xf32>
    %57 = math.rsqrt %56 : vector<16x1xf32>
    %58 = vector.broadcast %57 : vector<16x1xf32> to vector<16x128xf32>
    %59 = arith.mulf %49, %58 : vector<16x128xf32>
    %60 = vector.broadcast %42 : vector<1x128xf32> to vector<16x128xf32>
    %61 = arith.mulf %59, %60 : vector<16x128xf32>
    %62 = vector.broadcast %43 : vector<1x128xf32> to vector<16x128xf32>
    %63 = arith.addf %61, %62 : vector<16x128xf32>
    %c0_27 = arith.constant 0 : index
    %c0_28 = arith.constant 0 : index
    %64 = vector.load %arg8[%c0_27, %c0_28] : memref<16x128xf32, #tpu.memory_space<vmem>>, vector<16x128xf32>
    tpu.vector_store %arg8[%c0_27, %c0_28], %63 {strides = array<i32>} : memref<16x128xf32, #tpu.memory_space<vmem>>, vector<16x128xf32>,
    return
  }
  func.func @transform_0(%arg0: i32) -> (i32, i32) {
    %c0_i32 = arith.constant 0 : i32
    %c0_i32_0 = arith.constant 0 : i32
    return %arg0, %c0_i32 : i32, i32
  }
  func.func @transform_1(%arg0: i32) -> (i32, i32) {
    %c0_i32 = arith.constant 0 : i32
    %c0_i32_0 = arith.constant 0 : i32
    %c0_i32_1 = arith.constant 0 : i32
    return %c0_i32, %c0_i32_0 : i32, i32
  }
  func.func @transform_2(%arg0: i32) -> (i32, i32) {
    %c0_i32 = arith.constant 0 : i32
    %c0_i32_0 = arith.constant 0 : i32
    %c0_i32_1 = arith.constant 0 : i32
    return %c0_i32, %c0_i32_0 : i32, i32
  }
  func.func @transform_3(%arg0: i32) -> (i32, i32) {
    %c0_i32 = arith.constant 0 : i32
    %c0_i32_0 = arith.constant 0 : i32
    %c0_i32_1 = arith.constant 0 : i32
    return %c0_i32, %c0_i32_0 : i32, i32
  }
  func.func @transform_4(%arg0: i32) -> (i32, i32) {
    %c0_i32 = arith.constant 0 : i32
    %c0_i32_0 = arith.constant 0 : i32
    %c0_i32_1 = arith.constant 0 : i32
    return %c0_i32, %c0_i32_0 : i32, i32
  }
  func.func @transform_5(%arg0: i32) -> (i32, i32) {
    %c0_i32 = arith.constant 0 : i32
    %c0_i32_0 = arith.constant 0 : i32
    %c0_i32_1 = arith.constant 0 : i32
    return %c0_i32, %c0_i32_0 : i32, i32
  }
  func.func @transform_6(%arg0: i32) -> (i32, i32) {
    %c0_i32 = arith.constant 0 : i32
    %c0_i32_0 = arith.constant 0 : i32
    %c0_i32_1 = arith.constant 0 : i32
    return %c0_i32, %c0_i32_0 : i32, i32
  }
  func.func @transform_7(%arg0: i32) -> (i32, i32) {
    %c0_i32 = arith.constant 0 : i32
    %c0_i32_0 = arith.constant 0 : i32
    return %arg0, %c0_i32 : i32, i32
  }
}

</mosaic_0001>

<bundles_post_ra>
// kernel: mlm_forward.9
= control target key start
LH: loop header
LB: loop body
LE: loop exit
PB: predicated region body
PF: predicated region fallthrough
CT: control target
= control target key end

     0   :  { %12 = vsyncpa [#allocation3], 0  ;;  %s1519_s0 = inlined_call_operand.vmem [shape: f32[16,128], index: 0, kind: input, shape index: {}]   ;;  %s1520_s1 = inlined_call_operand.hbm [shape: f32[1,128], index: 1, kind: input, shape index: {}]   ;;  %s1521_s2 = inlined_call_operand.hbm [shape: f32[1,128], index: 2, kind: input, shape index: {}]   ;;  %s1522_s3 = inlined_call_operand.vmem [shape: bf16[128,512], index: 3, kind: input, shape index: {}]   ;;  %s1523_s4 = inlined_call_operand.hbm [shape: f32[1,512], index: 4, kind: input, shape index: {}]   ;;  %s1524_s5 = inlined_call_operand.vmem [shape: bf16[512,128], index: 5, kind: input, shape index: {}]   ;;  %s1525_s6 = inlined_call_operand.hbm [shape: f32[1,128], index: 6, kind: input, shape index: {}]   ;;  %s1526_s7 = inlined_call_operand.vmem [shape: f32[16,128], index: 7, kind: output, shape index: {}]  }
   0x1   :  { %13 = vsyncpa [#allocation5], 0 }
   0x2   :  { %14 = vsyncpa [#allocation8], 0  ;;  %s1160_s24 = smov [#allocation4]   ;;  %s1161_s26 = smov [#allocation2]  }
   0x3   :  { %s33_s25 = sshll.u32 %s1160_s24, 4  ;;  %s23_s27 = sshll.u32 %s1161_s26, 4  ;;  %s34_s25 = int_to_ptr.vmem [resolvable:$true] %s33_s25  ;;  %s24_s27 = int_to_ptr.vmem [resolvable:$true] %s23_s27 }
   0x4   :  { %s1066_s30 = scalar_lea.hbm %s1521_s2, 16 }
   0x5   :  { %p1067_p0 = scmp.ne.s32.totalorder %s1521_s2, %s1066_s30  ;;  %p1070_p1 = scmp.lt.u32.totalorder %s1066_s30, %s1521_s2 }
   0x7   :  { %p1072_p2 = pnand %p1070_p1, %p1067_p0 }
   0x9   :  { %1075 = shalt.err (!%p1072_p2)
}
   0xa   :  { %s1076_s12 = scalar_lea.vmem %s34_s25, 16  ;;  %s1080_s13 = scalar_lea.vmem %s34_s25, 32 }
   0xb   :  { %p1077_p3 = scmp.ne.s32.totalorder %s34_s25, %s1076_s12  ;;  %p1081_p4 = scmp.lt.s32.totalorder %s34_s25, %s34_s25 }
   0xc   :  { %p1082_p5 = scmp.lt.s32.totalorder %s1080_s13, %s1076_s12 }
   0xe   :  { %p1083_p6 = por %p1082_p5, %p1081_p4 }
  0x10   :  { %p1084_p7 = pnand %p1083_p6, %p1077_p3 }
  0x12   :  { %1087 = shalt.err (!%p1084_p7)
}
  0x13   :  { %36 = dma.hbm_to_vmem [thread:$0]  %s1521_s2, 16, %s34_s25, [#allocation5]  }
  0x14   :  { %s1088_s18 = scalar_lea.hbm %s1520_s1, 16 }
  0x15   :  { %p1089_p8 = scmp.ne.s32.totalorder %s1520_s1, %s1088_s18  ;;  %p1092_p9 = scmp.lt.u32.totalorder %s1088_s18, %s1520_s1 }
  0x17   :  { %p1094_p10 = pnand %p1092_p9, %p1089_p8 }
  0x19   :  { %1097 = shalt.err (!%p1094_p10)
}
  0x1a   :  { %s1098_s23 = scalar_lea.vmem %s24_s27, 16  ;;  %s1102_s24 = scalar_lea.vmem %s24_s27, 32 }
  0x1b   :  { %p1099_p11 = scmp.ne.s32.totalorder %s24_s27, %s1098_s23  ;;  %p1103_p12 = scmp.lt.s32.totalorder %s24_s27, %s24_s27 }
  0x1c   :  { %p1104_p13 = scmp.lt.s32.totalorder %s1102_s24, %s1098_s23 }
  0x1e   :  { %p1105_p0 = por %p1104_p13, %p1103_p12 }
  0x20   :  { %p1106_p1 = pnand %p1105_p0, %p1099_p11 }
  0x22   :  { %1109 = shalt.err (!%p1106_p1)
}
  0x23   :  { %26 = dma.hbm_to_vmem [thread:$0]  %s1520_s1, 16, %s24_s27, [#allocation3]  }
  0x24   :  { %s1162_s26 = smov [#allocation6]   ;;  %s1163_s29 = smov [#allocation7]  }
  0x25   :  { %s45_s28 = sshll.u32 %s1162_s26, 4  ;;  %s57_s30 = sshll.u32 %s1163_s29, 4  ;;  %s46_s28 = int_to_ptr.vmem [resolvable:$true] %s45_s28  ;;  %s58_s30 = int_to_ptr.vmem [resolvable:$true] %s57_s30 }
  0x26   :  { %s1110_s10 = scalar_lea.hbm %s1523_s4, 64 }
  0x27   :  { %p1111_p2 = scmp.ne.s32.totalorder %s1523_s4, %s1110_s10  ;;  %p1114_p3 = scmp.lt.u32.totalorder %s1110_s10, %s1523_s4 }
  0x29   :  { %p1116_p4 = pnand %p1114_p3, %p1111_p2 }
  0x2b   :  { %1119 = shalt.err (!%p1116_p4)
}
  0x2c   :  { %s1120_s1 = scalar_lea.vmem %s46_s28, 64  ;;  %p1125_p6 = scmp.lt.s32.totalorder %s46_s28, %s46_s28 }
  0x2d   :  { %p1121_p5 = scmp.ne.s32.totalorder %s46_s28, %s1120_s1  ;;  %p1126_p7 = scmp.lt.s32.totalorder %s1120_s1, %s1120_s1 }
  0x2f   :  { %p1127_p8 = por %p1126_p7, %p1125_p6 }
  0x31   :  { %p1128_p9 = pnand %p1127_p8, %p1121_p5 }
  0x33   :  { %1131 = shalt.err (!%p1128_p9)
}
  0x34   :  { %48 = dma.hbm_to_vmem [thread:$0]  %s1523_s4, 64, %s46_s28, [#allocation5]  }
  0x35   :  { %s1132_s18 = scalar_lea.hbm %s1525_s6, 16 }
  0x36   :  { %p1133_p10 = scmp.ne.s32.totalorder %s1525_s6, %s1132_s18  ;;  %p1136_p11 = scmp.lt.u32.totalorder %s1132_s18, %s1525_s6 }
  0x38   :  { %p1138_p12 = pnand %p1136_p11, %p1133_p10 }
  0x3a   :  { %1141 = shalt.err (!%p1138_p12)
}
  0x3b   :  { %s1142_s23 = scalar_lea.vmem %s58_s30, 16  ;;  %s1146_s24 = scalar_lea.vmem %s58_s30, 32 }
  0x3c   :  { %p1143_p13 = scmp.ne.s32.totalorder %s58_s30, %s1142_s23  ;;  %p1147_p0 = scmp.lt.s32.totalorder %s58_s30, %s58_s30 }
  0x3d   :  { %p1148_p1 = scmp.lt.s32.totalorder %s1146_s24, %s1142_s23 }
  0x3f   :  { %p1149_p2 = por %p1148_p1, %p1147_p0 }
  0x41   :  { %p1150_p3 = pnand %p1149_p2, %p1143_p13 }
  0x43   :  { %1153 = shalt.err (!%p1150_p3)
}
  0x44   :  { %60 = dma.hbm_to_vmem [thread:$0]  %s1525_s6, 16, %s58_s30, [#allocation8]  }
  0x45   :  { %1154 = dma.done.wait [#allocation3], 16  }
  0x46   :  { %1155 = vsyncadd [#allocation3], 4294967280 }
  0x47   :  { %1156 = dma.done.wait [#allocation5], 80  }
  0x48   :  { %1157 = vsyncadd [#allocation5], 4294967216 }
  0x49   :  { %1158 = dma.done.wait [#allocation8], 16  }
  0x4a   :  { %1159 = vsyncadd [#allocation8], 4294967280  ;;  %v1256_v0 = vld [vmem:[%s1519_s0] sm:$0xff]  ;;  %v1261_v1 = vld [vmem:[%s1519_s0 + $0x8] sm:$0xff]  ;;  %v1164_v36 = vmov 0  }
  0x4b   :  { %78 = vadd.xlane.f32.xlu0 %v1256_v0  ;;  %v966_v2 = vld [vmem:[%s1522_s3 + $0x4] ss:$16 sps:$4 sm:$0xff]   ;;  %v968_v3 = vld [vmem:[%s1522_s3 + $0xc] ss:$16 sps:$4 sm:$0xff]   ;;  %v970_v4 = vld [vmem:[%s1522_s3] ss:$16 sps:$4 sm:$0xff]   ;;  %364 = vmatprep.mubr.bf16.mxu0 %v1164_v36 }
  0x4c   :  { %v971_v5 = vld [vmem:[%s1522_s3 + $0x8] ss:$16 sps:$4 sm:$0xff]   ;;  %v972_v6 = vld [vmem:[%s1522_s3 + $0x24] ss:$16 sps:$4 sm:$0xff]   ;;  %v974_v7 = vld [vmem:[%s1522_s3 + $0x2c] ss:$16 sps:$4 sm:$0xff]   ;;  %332 = vmatprep.subr.bf16.mxu0 %v966_v2  ;;  %375 = vmatprep.subr.bf16.mxu1 %v968_v3 }
  0x4d   :  { %333 = vmatpush1.bf16.msra.mxu0 %v970_v4  ;;  %376 = vmatpush1.bf16.msra.mxu1 %v971_v5  ;;  %v976_v16 = vld [vmem:[%s1522_s3 + $0x20] ss:$16 sps:$4 sm:$0xff]   ;;  %v977_v17 = vld [vmem:[%s1522_s3 + $0x28] ss:$16 sps:$4 sm:$0xff]   ;;  %v978_v18 = vld [vmem:[%s1522_s3 + $0x44] ss:$16 sps:$4 sm:$0xff]  }
  0x4e   :  { %334 = vmatprep.subr.bf16.mxu0 %v972_v6  ;;  %377 = vmatprep.subr.bf16.mxu1 %v974_v7  ;;  %v980_v19 = vld [vmem:[%s1522_s3 + $0x4c] ss:$16 sps:$4 sm:$0xff]   ;;  %v982_v20 = vld [vmem:[%s1522_s3 + $0x40] ss:$16 sps:$4 sm:$0xff]   ;;  %v983_v21 = vld [vmem:[%s1522_s3 + $0x48] ss:$16 sps:$4 sm:$0xff]  }
  0x4f   :  { %80 = vadd.xlane.f32.xlu0 %v1261_v1  ;;  %v984_v22 = vld [vmem:[%s1522_s3 + $0x64] ss:$16 sps:$4 sm:$0xff]   ;;  %v986_v23 = vld [vmem:[%s1522_s3 + $0x6c] ss:$16 sps:$4 sm:$0xff]   ;;  %v988_v24 = vld [vmem:[%s1522_s3 + $0x60] ss:$16 sps:$4 sm:$0xff]   ;;  %407 = vmatprep.mubr.bf16.mxu1 %v1164_v36 }
  0x50   :  { %v989_v25 = vld [vmem:[%s1522_s3 + $0x68] ss:$16 sps:$4 sm:$0xff]   ;;  %v990_v26 = vld [vmem:[%s1522_s3 + $0x84] ss:$16 sps:$4 sm:$0xff]   ;;  %v992_v27 = vld [vmem:[%s1522_s3 + $0x8c] ss:$16 sps:$4 sm:$0xff]  }
  0x51   :  { %335 = vmatpush1.bf16.msra.mxu0 %v976_v16  ;;  %378 = vmatpush1.bf16.msra.mxu1 %v977_v17  ;;  %v994_v28 = vld [vmem:[%s1522_s3 + $0x80] ss:$16 sps:$4 sm:$0xff]   ;;  %v995_v29 = vld [vmem:[%s1522_s3 + $0x88] ss:$16 sps:$4 sm:$0xff]   ;;  %v996_v30 = vld [vmem:[%s1522_s3 + $0xa4] ss:$16 sps:$4 sm:$0xff]  }
  0x52   :  { %336 = vmatprep.subr.bf16.mxu0 %v978_v18  ;;  %379 = vmatprep.subr.bf16.mxu1 %v980_v19  ;;  %v998_v31 = vld [vmem:[%s1522_s3 + $0xac] ss:$16 sps:$4 sm:$0xff]   ;;  %v1000_v32 = vld [vmem:[%s1522_s3 + $0xa0] ss:$16 sps:$4 sm:$0xff]   ;;  %v1001_v33 = vld [vmem:[%s1522_s3 + $0xa8] ss:$16 sps:$4 sm:$0xff]  }
  0x53   :  { %v1002_v34 = vld [vmem:[%s1522_s3 + $0xc4] ss:$16 sps:$4 sm:$0xff]   ;;  %v1004_v35 = vld [vmem:[%s1522_s3 + $0xcc] ss:$16 sps:$4 sm:$0xff]   ;;  %v1006_v37 = vld [vmem:[%s1522_s3 + $0xc0] ss:$16 sps:$4 sm:$0xff]  }
  0x54   :  { %v1007_v38 = vld [vmem:[%s1522_s3 + $0xc8] ss:$16 sps:$4 sm:$0xff]   ;;  %v1008_v39 = vld [vmem:[%s1522_s3 + $0xe4] ss:$16 sps:$4 sm:$0xff]   ;;  %v1010_v40 = vld [vmem:[%s1522_s3 + $0xec] ss:$16 sps:$4 sm:$0xff]  }
  0x55   :  { %337 = vmatpush1.bf16.msra.mxu0 %v982_v20  ;;  %380 = vmatpush1.bf16.msra.mxu1 %v983_v21  ;;  %v1012_v41 = vld [vmem:[%s1522_s3 + $0xe0] ss:$16 sps:$4 sm:$0xff]   ;;  %v1013_v42 = vld [vmem:[%s1522_s3 + $0xe8] ss:$16 sps:$4 sm:$0xff]  }
  0x56   :  { %338 = vmatprep.subr.bf16.mxu0 %v984_v22  ;;  %381 = vmatprep.subr.bf16.mxu1 %v986_v23  ;;  %v850_v51 = vld [vmem:[#allocation2] ss:$0 sm:$0xff]  ;;  %v851_v55 = vld [vmem:[#allocation4] ss:$0 sm:$0xff]  ;;  %v1018_v2 = vld [vmem:[%s1524_s5 + $0x48] sm:$0xff]  }
  0x57   :  { %v1014_v60 = vld [vmem:[%s1524_s5 + $0x40] sm:$0xff]   ;;  %v1019_v3 = vld [vmem:[%s1524_s5 + $0xc8] sm:$0xff]   ;;  %v1022_v6 = vld [vmem:[%s1524_s5 + $0x50] sm:$0xff]  }
  0x58   :  { %v1015_v61 = vld [vmem:[%s1524_s5 + $0xc0] sm:$0xff]   ;;  %v1020_v4 = vld [vmem:[%s1524_s5 + $0x8] sm:$0xff]   ;;  %v1023_v7 = vld [vmem:[%s1524_s5 + $0xd0] sm:$0xff]  }
  0x59   :  { %339 = vmatpush1.bf16.msra.mxu0 %v988_v24  ;;  %382 = vmatpush1.bf16.msra.mxu1 %v989_v25  ;;  %v1016_v62 = vld [vmem:[%s1524_s5] sm:$0xff]   ;;  %v1021_v5 = vld [vmem:[%s1524_s5 + $0x88] sm:$0xff]   ;;  %v1038_v22 = vld [vmem:[%s1524_s5 + $0x70] sm:$0xff]  }
  0x5a   :  { %340 = vmatprep.subr.bf16.mxu0 %v990_v26  ;;  %383 = vmatprep.subr.bf16.mxu1 %v992_v27  ;;  %v1017_v63 = vld [vmem:[%s1524_s5 + $0x80] sm:$0xff]   ;;  %v1034_v18 = vld [vmem:[%s1524_s5 + $0x68] sm:$0xff]   ;;  %v1039_v23 = vld [vmem:[%s1524_s5 + $0xf0] sm:$0xff]  }
  0x5b   :  { %v1032_v16 = vld [vmem:[%s1524_s5 + $0x20] sm:$0xff]   ;;  %v1035_v19 = vld [vmem:[%s1524_s5 + $0xe8] sm:$0xff]   ;;  %v1040_v24 = vld [vmem:[%s1524_s5 + $0x30] sm:$0xff]  }
  0x5c   :  { %v1033_v17 = vld [vmem:[%s1524_s5 + $0xa0] sm:$0xff]   ;;  %v1036_v20 = vld [vmem:[%s1524_s5 + $0x28] sm:$0xff]   ;;  %v1041_v25 = vld [vmem:[%s1524_s5 + $0xb0] sm:$0xff]  }
  0x5d   :  { %341 = vmatpush1.bf16.msra.mxu0 %v994_v28  ;;  %384 = vmatpush1.bf16.msra.mxu1 %v995_v29  ;;  %v1037_v21 = vld [vmem:[%s1524_s5 + $0xa8] sm:$0xff]   ;;  %v1042_v26 = vld [vmem:[%s1524_s5 + $0x78] sm:$0xff]  }
  0x5e   :  { %342 = vmatprep.subr.bf16.mxu0 %v996_v30  ;;  %385 = vmatprep.subr.bf16.mxu1 %v998_v31  ;;  %v1043_v27 = vld [vmem:[%s1524_s5 + $0xf8] sm:$0xff]   ;;  %v152_v30 = vlaneseq }
  0x5f   :  { %v1044_v28 = vld [vmem:[%s1524_s5 + $0x38] sm:$0xff]  }
  0x60   :  { %v1045_v29 = vld [vmem:[%s1524_s5 + $0xb8] sm:$0xff]   ;;  %v153_v31 = vshrl.u32 %v152_v30, 7 }
  0x61   :  { %343 = vmatpush1.bf16.msra.mxu0 %v1000_v32  ;;  %386 = vmatpush1.bf16.msra.mxu1 %v1001_v33 }
  0x62   :  { %344 = vmatprep.subr.bf16.mxu0 %v1002_v34  ;;  %387 = vmatprep.subr.bf16.mxu1 %v1004_v35  ;;  %v154_v32 = vsub.s32 0, %v153_v31  ;;  %v162_v33 = vsub.s32 2, %v153_v31  ;;  %v150_v34 = vld [vmem:[#allocation6] sm:$0xf]  ;;  %v158_v35 = vsub.s32 1, %v153_v31  ;;  %v166_v36 = vsub.s32 3, %v153_v31 }
  0x65   :  { %345 = vmatpush1.bf16.msra.mxu0 %v1006_v37  ;;  %388 = vmatpush1.bf16.msra.mxu1 %v1007_v38  ;;  %v155_v37 = vrot.slane %v150_v34, %v154_v32  ;;  %v163_v38 = vrot.slane %v150_v34, %v162_v33 }
  0x66   :  { %346 = vmatprep.subr.bf16.mxu0 %v1008_v39  ;;  %389 = vmatprep.subr.bf16.mxu1 %v1010_v40  ;;  %v159_v39 = vrot.slane %v150_v34, %v158_v35  ;;  %v167_v40 = vrot.slane %v150_v34, %v166_v36 }
  0x69   :  { %347 = vmatpush1.bf16.msra.mxu0 %v1012_v41  ;;  %390 = vmatpush1.bf16.msra.mxu1 %v1013_v42 }
  0x6a   :  { %917 = vmatprep.subr.bf16.mxu0 %v1014_v60  ;;  %939 = vmatprep.subr.bf16.mxu1 %v1015_v61 }
  0xd8   :  { %v79_v8 = vpop.xlane.xlu0 %78 }
  0xd9   :  { %v83_v9 = vmul.f32 0.0078125, %v79_v8  ;;  %v1024_v8 = vld [vmem:[%s1524_s5 + $0x10] sm:$0xff]  }
  0xdb   :  { %v1284_v10 = vsub.f32 %v1256_v0, %v83_v9  ;;  %v1025_v9 = vld [vmem:[%s1524_s5 + $0x90] sm:$0xff]  }
  0xdc   :  { %v81_v11 = vpop.xlane.xlu0 %80 }
  0xdd   :  { %v84_v12 = vmul.f32 0.0078125, %v81_v11  ;;  %v87_v13 = vmul.f32 %v1284_v10, %v1284_v10  ;;  %v1027_v11 = vld [vmem:[%s1524_s5 + $0xd8] sm:$0xff]  }
  0xdf   :  { %v1289_v14 = vsub.f32 %v1261_v1, %v84_v12  ;;  %89 = vadd.xlane.f32.xlu1 %v87_v13  ;;  %v1028_v12 = vld [vmem:[%s1524_s5 + $0x18] sm:$0xff]  }
  0xe0   :  { %v1029_v13 = vld [vmem:[%s1524_s5 + $0x98] sm:$0xff]  }
  0xe1   :  { %v88_v15 = vmul.f32 %v1289_v14, %v1289_v14 }
  0xe3   :  { %91 = vadd.xlane.f32.xlu1 %v88_v15  ;;  %v1031_v15 = vld [vmem:[%s1524_s5 + $0xe0] sm:$0xff]  }
 0x16c   :  { %v90_v43 = vpop.xlane.xlu1 %89 }
 0x16d   :  { %v93_v44 = vmul.f32 0.0078125, %v90_v43 }
 0x16f   :  { %v95_v45 = vadd.f32 1e-05, %v93_v44 }
 0x170   :  { %v92_v46 = vpop.xlane.xlu1 %91 }
 0x171   :  { %1046 = vrsqrt.f32 %v95_v45  ;;  %v94_v47 = vmul.f32 0.0078125, %v92_v46 }
 0x173   :  { %v96_v48 = vadd.f32 1e-05, %v94_v47 }
 0x175   :  { %1048 = vrsqrt.f32 %v96_v48 }
 0x17b   :  { %v1047_v49 = vpop.eup %1046 }
 0x17c   :  { %v99_v50 = vmul.f32 %v1047_v49, %v1284_v10  ;;  %v1026_v10 = vld [vmem:[%s1524_s5 + $0x58] sm:$0xff]  }
 0x17e   :  { %v107_v54 = vmul.f32 %v850_v51, %v99_v50 }
 0x17f   :  { %v1049_v52 = vpop.eup %1048 }
 0x180   :  { %v100_v53 = vmul.f32 %v1049_v52, %v1289_v14  ;;  %v115_v57 = vadd.f32 %v851_v55, %v107_v54  ;;  %v1030_v14 = vld [vmem:[%s1524_s5 + $0x60] sm:$0xff]  }
 0x182   :  { %v108_v56 = vmul.f32 %v850_v51, %v100_v53 }
 0x184   :  { %v116_v58 = vadd.f32 %v851_v55, %v108_v56 }
 0x186   :  { %v117_v59 = vpack.c.bf16 %v116_v58, %v115_v57 }
 0x188   :  { %365 = vmatmul.mubr.bf16.vlgmr.msra.gmra.mrb[0].mxu0 %v117_v59  ;;  %408 = vmatmul.mubr.bf16.vlgmr.msra.gmra.mrb[0].mxu1 %v117_v59 }
 0x189   :  { %918 = vmatpush3.bf16.msra.mxu0 %v1016_v62  ;;  %940 = vmatpush3.bf16.msra.mxu1 %v1017_v63 }
 0x18a   :  { %919 = vmatprep.subr.bf16.mxu0 %v1018_v2  ;;  %941 = vmatprep.subr.bf16.mxu1 %v1019_v3 }
 0x18d   :  { %920 = vmatpush3.bf16.msra.mxu0 %v1020_v4  ;;  %942 = vmatpush3.bf16.msra.mxu1 %v1021_v5 }
 0x18e   :  { %921 = vmatprep.subr.bf16.mxu0 %v1022_v6  ;;  %943 = vmatprep.subr.bf16.mxu1 %v1023_v7 }
 0x191   :  { %922 = vmatpush3.bf16.msra.mxu0 %v1024_v8  ;;  %944 = vmatpush3.bf16.msra.mxu1 %v1025_v9 }
 0x192   :  { %923 = vmatprep.subr.bf16.mxu0 %v1026_v10  ;;  %945 = vmatprep.subr.bf16.mxu1 %v1027_v11 }
 0x195   :  { %924 = vmatpush3.bf16.msra.mxu0 %v1028_v12  ;;  %946 = vmatpush3.bf16.msra.mxu1 %v1029_v13 }
 0x196   :  { %925 = vmatprep.subr.bf16.mxu0 %v1030_v14  ;;  %947 = vmatprep.subr.bf16.mxu1 %v1031_v15 }
 0x199   :  { %926 = vmatpush3.bf16.msra.mxu0 %v1032_v16  ;;  %948 = vmatpush3.bf16.msra.mxu1 %v1033_v17 }
 0x19a   :  { %927 = vmatprep.subr.bf16.mxu0 %v1034_v18  ;;  %949 = vmatprep.subr.bf16.mxu1 %v1035_v19 }
 0x19d   :  { %928 = vmatpush3.bf16.msra.mxu0 %v1036_v20  ;;  %950 = vmatpush3.bf16.msra.mxu1 %v1037_v21 }
 0x19e   :  { %929 = vmatprep.subr.bf16.mxu0 %v1038_v22  ;;  %951 = vmatprep.subr.bf16.mxu1 %v1039_v23 }
 0x1a1   :  { %930 = vmatpush3.bf16.msra.mxu0 %v1040_v24  ;;  %952 = vmatpush3.bf16.msra.mxu1 %v1041_v25 }
 0x1a2   :  { %931 = vmatprep.subr.bf16.mxu0 %v1042_v26  ;;  %953 = vmatprep.subr.bf16.mxu1 %v1043_v27 }
 0x1a5   :  { %932 = vmatpush3.bf16.msra.mxu0 %v1044_v28  ;;  %954 = vmatpush3.bf16.msra.mxu1 %v1045_v29 }
 0x25b   :  { %v366_v41 = vpop.f32.mrb[0].mxu0  ;;  %v409_v42 = vpop.f32.mrb[0].mxu1 }
 0x25c   :  { %v1469_v43 = vadd.f32 %v366_v41, %v155_v37  ;;  %v1471_v44 = vadd.f32 %v409_v42, %v163_v38  ;;  %v368_v45 = vpop.f32.mrb[1].mxu0  ;;  %v411_v46 = vpop.f32.mrb[1].mxu1 }
 0x25d   :  { %v1473_v47 = vadd.f32 %v368_v45, %v159_v39  ;;  %v1475_v48 = vadd.f32 %v411_v46, %v167_v40  ;;  %v370_v49 = vpop.f32.mrb[2].mxu0  ;;  %v413_v50 = vpop.f32.mrb[2].mxu1 }
 0x25e   :  { %v426_v51 = vmul.f32 0.044715, %v1469_v43  ;;  %v428_v52 = vmul.f32 0.044715, %v1471_v44  ;;  %v371_v53 = vadd.f32 %v370_v49, %v155_v37  ;;  %v414_v54 = vadd.f32 %v413_v50, %v163_v38  ;;  %v372_v55 = vpop.f32.mrb[3].mxu0  ;;  %v415_v56 = vpop.f32.mrb[3].mxu1 }
 0x25f   :  { %v427_v57 = vmul.f32 0.044715, %v1473_v47  ;;  %v429_v58 = vmul.f32 0.044715, %v1475_v48  ;;  %v1481_v59 = vadd.f32 %v372_v55, %v159_v39  ;;  %v1483_v60 = vadd.f32 %v415_v56, %v167_v40 }
 0x260   :  { %v434_v61 = vmul.f32 %v426_v51, %v1469_v43  ;;  %v436_v62 = vmul.f32 %v428_v52, %v1471_v44  ;;  %v430_v63 = vmul.f32 0.044715, %v371_v53  ;;  %v432_v2 = vmul.f32 0.044715, %v414_v54 }
 0x261   :  { %v435_v3 = vmul.f32 %v427_v57, %v1473_v47  ;;  %v437_v4 = vmul.f32 %v429_v58, %v1475_v48  ;;  %v431_v5 = vmul.f32 0.044715, %v1481_v59  ;;  %v433_v6 = vmul.f32 0.044715, %v1483_v60 }
 0x262   :  { %v442_v7 = vmul.f32 %v434_v61, %v1469_v43  ;;  %v444_v8 = vmul.f32 %v436_v62, %v1471_v44  ;;  %v438_v9 = vmul.f32 %v430_v63, %v371_v53  ;;  %v440_v10 = vmul.f32 %v432_v2, %v414_v54 }
 0x263   :  { %v443_v11 = vmul.f32 %v435_v3, %v1473_v47  ;;  %v445_v12 = vmul.f32 %v437_v4, %v1475_v48  ;;  %v439_v13 = vmul.f32 %v431_v5, %v1481_v59  ;;  %v441_v14 = vmul.f32 %v433_v6, %v1483_v60 }
 0x264   :  { %v450_v15 = vadd.f32 %v442_v7, %v1469_v43  ;;  %v452_v16 = vadd.f32 %v444_v8, %v1471_v44  ;;  %v446_v17 = vmul.f32 %v438_v9, %v371_v53  ;;  %v448_v18 = vmul.f32 %v440_v10, %v414_v54 }
 0x265   :  { %v447_v19 = vmul.f32 %v439_v13, %v1481_v59  ;;  %v449_v20 = vmul.f32 %v441_v14, %v1483_v60  ;;  %v451_v25 = vadd.f32 %v443_v11, %v1473_v47  ;;  %v453_v29 = vadd.f32 %v445_v12, %v1475_v48  ;;  %v884_v12 = vld [vmem:[#allocation7] ss:$0 sm:$0xff] }
 0x266   :  { %v458_v21 = vmul.f32 0.7978846, %v450_v15  ;;  %v460_v22 = vmul.f32 0.7978846, %v452_v16  ;;  %v454_v23 = vadd.f32 %v446_v17, %v371_v53  ;;  %v456_v24 = vadd.f32 %v448_v18, %v414_v54 }
 0x267   :  { %v455_v26 = vadd.f32 %v447_v19, %v1481_v59  ;;  %v459_v30 = vmul.f32 0.7978846, %v451_v25  ;;  %v457_v32 = vadd.f32 %v449_v20, %v1483_v60  ;;  %v461_v33 = vmul.f32 0.7978846, %v453_v29 }
 0x268   :  { %1050 = vtanh.f32 %v458_v21  ;;  %v462_v27 = vmul.f32 0.7978846, %v454_v23  ;;  %v464_v28 = vmul.f32 0.7978846, %v456_v24  ;;  %v418_v41 = vmul.f32 0.5, %v1469_v43 }
 0x269   :  { %1052 = vtanh.f32 %v460_v22  ;;  %v463_v31 = vmul.f32 0.7978846, %v455_v26  ;;  %v465_v34 = vmul.f32 0.7978846, %v457_v32  ;;  %v422_v42 = vmul.f32 0.5, %v371_v53 }
 0x26a   :  { %1054 = vtanh.f32 %v462_v27  ;;  %v420_v49 = vmul.f32 0.5, %v1471_v44  ;;  %v424_v50 = vmul.f32 0.5, %v414_v54  ;;  %v419_v55 = vmul.f32 0.5, %v1473_v47 }
 0x26b   :  { %1056 = vtanh.f32 %v464_v28  ;;  %v423_v62 = vmul.f32 0.5, %v1481_v59  ;;  %v421_v53 = vmul.f32 0.5, %v1475_v48  ;;  %v425_v4 = vmul.f32 0.5, %v1483_v60 }
 0x26c   :  { %1058 = vtanh.f32 %v459_v30 }
 0x26d   :  { %1060 = vtanh.f32 %v463_v31 }
 0x26e   :  { %1062 = vtanh.f32 %v461_v33 }
 0x26f   :  { %1064 = vtanh.f32 %v465_v34 }
 0x272   :  { %v1051_v35 = vpop.eup %1050 }
 0x273   :  { %v1053_v36 = vpop.eup %1052  ;;  %v474_v37 = vadd.f32 1.0, %v1051_v35 }
 0x274   :  { %v1055_v38 = vpop.eup %1054  ;;  %v476_v39 = vadd.f32 1.0, %v1053_v36 }
 0x275   :  { %v1057_v40 = vpop.eup %1056  ;;  %v478_v45 = vadd.f32 1.0, %v1055_v38  ;;  %v482_v57 = vmul.f32 %v474_v37, %v418_v41 }
 0x276   :  { %v1059_v46 = vpop.eup %1058  ;;  %v480_v51 = vadd.f32 1.0, %v1057_v40  ;;  %v484_v2 = vmul.f32 %v476_v39, %v420_v49 }
 0x277   :  { %v1061_v52 = vpop.eup %1060  ;;  %v475_v56 = vadd.f32 1.0, %v1059_v46  ;;  %v486_v58 = vmul.f32 %v478_v45, %v422_v42 }
 0x278   :  { %v1063_v61 = vpop.eup %1062  ;;  %v479_v63 = vadd.f32 1.0, %v1061_v52  ;;  %v488_v3 = vmul.f32 %v480_v51, %v424_v50 }
 0x279   :  { %v1065_v43 = vpop.eup %1064  ;;  %v477_v44 = vadd.f32 1.0, %v1063_v61  ;;  %v490_v54 = vpack.c.bf16 %v486_v58, %v482_v57  ;;  %v483_v5 = vmul.f32 %v475_v56, %v419_v55 }
 0x27a   :  { %v487_v6 = vmul.f32 %v479_v63, %v423_v62  ;;  %v481_v7 = vadd.f32 1.0, %v1065_v43  ;;  %v492_v47 = vpack.c.bf16 %v488_v3, %v484_v2 }
 0x27b   :  { %v485_v9 = vmul.f32 %v477_v44, %v421_v53 }
 0x27c   :  { %v491_v8 = vpack.c.bf16 %v487_v6, %v483_v5  ;;  %v489_v10 = vmul.f32 %v481_v7, %v425_v4 }
 0x27e   :  { %789 = vmatprep.mubr.bf16.mxu0 %v491_v8  ;;  %v493_v11 = vpack.c.bf16 %v489_v10, %v485_v9 }
 0x27f   :  { %790 = vmatmul.mubr.bf16.vlgmr.msra.gmra.mrb[4].mxu0 %v490_v54 }
 0x280   :  { %830 = vmatprep.mubr.bf16.mxu1 %v493_v11 }
 0x281   :  { %831 = vmatmul.mubr.bf16.vlgmr.msra.gmra.mrb[4].mxu1 %v492_v47 }
 0x352   :  { %v933_v59 = vpop.f32.mrb[4].mxu0 }
 0x353   :  { %v934_v13 = vpop.f32.mrb[5].mxu0 }
 0x354   :  { %v955_v48 = vpop.f32.mrb[4].mxu1  ;;  %v935_v14 = vadd.f32 %v934_v13, %v933_v59  ;;  %v936_v60 = vpop.f32.mrb[6].mxu0 }
 0x355   :  { %v956_v15 = vpop.f32.mrb[5].mxu1  ;;  %v937_v16 = vpop.f32.mrb[7].mxu0 }
 0x356   :  { %v792_v17 = vadd.f32 %v935_v14, %v884_v12  ;;  %v957_v18 = vadd.f32 %v956_v15, %v955_v48  ;;  %v958_v19 = vpop.f32.mrb[6].mxu1  ;;  %v938_v20 = vadd.f32 %v937_v16, %v936_v60 }
 0x357   :  { %v959_v21 = vpop.f32.mrb[7].mxu1 }
 0x358   :  { %v833_v22 = vadd.f32 %v957_v18, %v792_v17  ;;  %v795_v23 = vadd.f32 %v938_v20, %v884_v12  ;;  %v960_v24 = vadd.f32 %v959_v21, %v958_v19 }
 0x35a   :  { %v839_v25 = vadd.f32 %v833_v22, %v1256_v0  ;;  %v836_v26 = vadd.f32 %v960_v24, %v795_v23 }
 0x35c   :  { %841 = vst [vmem:[%s1526_s7] sm:$0xff] %v839_v25  ;;  %v840_v27 = vadd.f32 %v836_v26, %v1261_v1 }
 0x35e   :  { %842 = vst [vmem:[%s1526_s7 + $0x8] sm:$0xff] %v840_v27 }
 0x35f   :  { %847 = vsyncpa [#allocation3], 1 }
 0x360   :  { %848 = vsyncpa [#allocation5], 1 }
 0x361   :  { %849 = vsyncpa [#allocation8], 1 }

// kernel: mlm_forward.8
= control target key start
LH: loop header
LB: loop body
LE: loop exit
PB: predicated region body
PF: predicated region fallthrough
CT: control target
= control target key end

     0   :  { %14 = vsyncpa [#allocation3], 0  ;;  %s2037_s0 = inlined_call_operand.vmem [shape: f32[2,8,128], index: 0, kind: input, shape index: {}]   ;;  %s2038_s1 = inlined_call_operand.hbm [shape: f32[1,128], index: 1, kind: input, shape index: {}]   ;;  %s2039_s2 = inlined_call_operand.hbm [shape: f32[1,128], index: 2, kind: input, shape index: {}]   ;;  %s2040_s3 = inlined_call_operand.vmem [shape: bf16[128,128], index: 3, kind: input, shape index: {}]   ;;  %s2041_s4 = inlined_call_operand.hbm [shape: f32[1,128], index: 4, kind: input, shape index: {}]   ;;  %s2042_s5 = inlined_call_operand.hbm [shape: bf16[128,256], index: 5, kind: input, shape index: {}]   ;;  %s2043_s6 = inlined_call_operand.hbm [shape: f32[1,256], index: 6, kind: input, shape index: {}]   ;;  %s2044_s7 = inlined_call_operand.vmem [shape: bf16[128,128], index: 7, kind: input, shape index: {}]   ;;  %s2045_s8 = inlined_call_operand.hbm [shape: f32[1,128], index: 8, kind: input, shape index: {}]   ;;  %s2046_s9 = inlined_call_operand.vmem [shape: f32[2,8,128], index: 9, kind: output, shape index: {}]  }
   0x1   :  { %15 = vsyncpa [#allocation5], 0 }
   0x2   :  { %16 = vsyncpa [#allocation8], 0 }
   0x3   :  { %17 = vsyncpa [#allocation11], 0  ;;  %s1734_s30 = smov 0  }
   0x4 LB: > { %s1672_s10 = smov [#allocation4]   ;;  %s1740_s12 = sadd.s32 4294967295, %s1670_s30   ;;  %s1670_s30 = sphi %s1734_s30, %s23_s30  }
   0x5   : > { %s272_s11 = sshll.u32 %s1672_s10, 4  ;;  %p1199_p0 = scmp.ge.s32.totalorder %s1670_s30, 1  ;;  %s1745_s11 = int_to_ptr.vmem [resolvable:$true] %s272_s11 }
   0x6   : > { %p248_p1 = scmp.lt.s32.totalorder %s1670_s30, 3  ;;  %p2047_p2 = scmp.eq.s32.totalorder %s1740_s12, 0 }
   0x7   : > { %s1673_s14 = smov [#allocation7]   ;;  %s1674_s17 = smov [#allocation2]  }
   0x8   : > { %p1747_p3 = pnand %p1199_p0, %p248_p1  ;;  %s296_s15 = sshll.u32 %s1673_s14, 4  ;;  %s1753_s15 = int_to_ptr.vmem [resolvable:$true] %s296_s15 }
   0x9   : > { %s261_s18 = sshll.u32 %s1674_s17, 4  ;;  %s1675_s19 = smov [#allocation6]   ;;  %s1761_s18 = int_to_ptr.vmem [resolvable:$true] %s261_s18 }
   0xa   : > { %s2049_s13 = scalar_select %p1747_p3, 1, 0 }
   0xb   : > { %p1379_p4 = pneg %p1747_p3  ;;  %s1763_s20 = sshll.u32 %s1675_s19, 4  ;;  %s287_s20 = int_to_ptr.vmem [resolvable:$true] %s1763_s20 }
   0xc   : > { %s1480_s23 = scalar_lea.hbm %s2039_s2, 16 }
   0xd   : > { %p1757_p5 = pnand %p2047_p2, %p1379_p4  ;;  %p1481_p6 = scmp.ne.s32.totalorder %s2039_s2, %s1480_s23 }
   0xe   : > { %p1487_p10 = scmp.lt.u32.totalorder %s1480_s23, %s2039_s2 }
   0xf   : > { %p1773_p7 = pneg %p1757_p5 }
  0x11   : > { %p1483_p8 = pnand %p1773_p7, %p1481_p6 }
  0x13   : > { %p1484_p9 = pneg %p1483_p8 }
  0x15   : > { %p1489_p11 = pnand %p1487_p10, %p1484_p9 }
  0x17   : > { %1492 = shalt.err (!%p1489_p11)
}
  0x18   : > { %s1493_s29 = scalar_lea.vmem %s1745_s11, 16  ;;  %s1500_s10 = scalar_lea.vmem %s1745_s11, 32 }
  0x19   : > { %p1494_p12 = scmp.ne.s32.totalorder %s1745_s11, %s1493_s29  ;;  %p1501_p1 = scmp.lt.s32.totalorder %s1745_s11, %s1745_s11 }
  0x1a   : > { %p1502_p4 = scmp.lt.s32.totalorder %s1500_s10, %s1493_s29 }
  0x1b   : > { %p1496_p13 = pnand %p1494_p12, %p1773_p7 }
  0x1c   : > { %p1503_p6 = por %p1502_p4, %p1501_p1 }
  0x1d   : > { %p1497_p0 = pneg %p1496_p13 }
  0x1f   : > { %p1504_p8 = pnand %p1503_p6, %p1497_p0 }
  0x21   : > { %1507 = shalt.err (!%p1504_p8)
}
  0x22   : > { %1385 = dma.hbm_to_vmem [thread:$0]  (!%p1757_p5), %s2039_s2, 16, %s1745_s11, [#allocation5]  }
  0x23   : > { %s1508_s22 = scalar_lea.hbm %s2042_s5, 2048 }
  0x24   : > { %p1509_p9 = scmp.ne.s32.totalorder %s2042_s5, %s1508_s22  ;;  %p1515_p12 = scmp.lt.u32.totalorder %s1508_s22, %s2042_s5 }
  0x26   : > { %p1511_p10 = pnand %p1509_p9, %p1773_p7 }
  0x28   : > { %p1512_p11 = pneg %p1511_p10 }
  0x2a   : > { %p1517_p13 = pnand %p1515_p12, %p1512_p11 }
  0x2c   : > { %1520 = shalt.err (!%p1517_p13)
}
  0x2d   : > { %s1521_s11 = scalar_lea.vmem %s1753_s15, 2048  ;;  %p1529_p6 = scmp.lt.s32.totalorder %s1753_s15, %s1753_s15 }
  0x2e   : > { %p1522_p0 = scmp.ne.s32.totalorder %s1753_s15, %s1521_s11  ;;  %p1530_p8 = scmp.lt.s32.totalorder %s1521_s11, %s1521_s11 }
  0x30   : > { %p1524_p1 = pnand %p1522_p0, %p1773_p7  ;;  %p1531_p9 = por %p1530_p8, %p1529_p6 }
  0x32   : > { %p1525_p4 = pneg %p1524_p1 }
  0x34   : > { %p1532_p10 = pnand %p1531_p9, %p1525_p4 }
  0x36   : > { %1535 = shalt.err (!%p1532_p10)
}
  0x37   : > { %s1676_s28 = smov 128   ;;  %s1677_s29 = smov 8  }
  0x38   : > { %1391 = dma.hbm_to_vmem [thread:$0]  (!%p1757_p5), %s2042_s5, 2048, %s1753_s15, [#allocation8], %s1676_s28, %s1676_s28, %s1677_s29  }
  0x39   : > { %s1536_s21 = scalar_lea.hbm %s2038_s1, 16 }
  0x3a   : > { %p1537_p11 = scmp.ne.s32.totalorder %s2038_s1, %s1536_s21  ;;  %p1543_p0 = scmp.lt.u32.totalorder %s1536_s21, %s2038_s1 }
  0x3c   : > { %p1539_p12 = pnand %p1537_p11, %p1773_p7 }
  0x3e   : > { %p1540_p13 = pneg %p1539_p12 }
  0x40   : > { %p1545_p1 = pnand %p1543_p0, %p1540_p13 }
  0x42   : > { %1548 = shalt.err (!%p1545_p1)
}
  0x43   : > { %s1549_s15 = scalar_lea.vmem %s1761_s18, 16  ;;  %s1556_s27 = scalar_lea.vmem %s1761_s18, 32 }
  0x44   : > { %p1550_p4 = scmp.ne.s32.totalorder %s1761_s18, %s1549_s15  ;;  %p1557_p9 = scmp.lt.s32.totalorder %s1761_s18, %s1761_s18 }
  0x45   : > { %p1558_p10 = scmp.lt.s32.totalorder %s1556_s27, %s1549_s15 }
  0x46   : > { %p1552_p6 = pnand %p1550_p4, %p1773_p7 }
  0x47   : > { %p1559_p11 = por %p1558_p10, %p1557_p9 }
  0x48   : > { %p1553_p8 = pneg %p1552_p6 }
  0x4a   : > { %p1560_p12 = pnand %p1559_p11, %p1553_p8 }
  0x4c   : > { %1563 = shalt.err (!%p1560_p12)
}
  0x4d   : > { %1382 = dma.hbm_to_vmem [thread:$0]  (!%p1757_p5), %s2038_s1, 16, %s1761_s18, [#allocation3]  }
  0x4e   : > { %s1564_s14 = scalar_lea.hbm %s2041_s4, 16 }
  0x4f   : > { %p1565_p13 = scmp.ne.s32.totalorder %s2041_s4, %s1564_s14  ;;  %p1571_p4 = scmp.lt.u32.totalorder %s1564_s14, %s2041_s4 }
  0x51   : > { %p1567_p0 = pnand %p1565_p13, %p1773_p7 }
  0x53   : > { %p1568_p1 = pneg %p1567_p0 }
  0x55   : > { %p1573_p6 = pnand %p1571_p4, %p1568_p1 }
  0x57   : > { %1576 = shalt.err (!%p1573_p6)
}
  0x58   : > { %s1577_s23 = scalar_lea.vmem %s287_s20, 16  ;;  %s1584_s18 = scalar_lea.vmem %s287_s20, 32 }
  0x59   : > { %p1578_p8 = scmp.ne.s32.totalorder %s287_s20, %s1577_s23  ;;  %p1585_p11 = scmp.lt.s32.totalorder %s287_s20, %s287_s20 }
  0x5a   : > { %p1586_p12 = scmp.lt.s32.totalorder %s1584_s18, %s1577_s23 }
  0x5b   : > { %p1580_p9 = pnand %p1578_p8, %p1773_p7 }
  0x5c   : > { %p1587_p2 = por %p1586_p12, %p1585_p11 }
  0x5d   : > { %p1581_p10 = pneg %p1580_p9 }
  0x5f   : > { %p1588_p3 = pnand %p1587_p2, %p1581_p10 }
  0x61   : > { %1591 = shalt.err (!%p1588_p3)
}
  0x62   : > { %1388 = dma.hbm_to_vmem [thread:$0]  (!%p1757_p5), %s2041_s4, 16, %s287_s20, [#allocation5]  }
  0x63   : > { %s1678_s15 = smov [#allocation9]   ;;  %s1679_s11 = smov [#allocation10]  }
  0x64   : > { %s310_s27 = sshll.u32 %s1678_s15, 4  ;;  %s324_s28 = sshll.u32 %s1679_s11, 4  ;;  %s311_s27 = int_to_ptr.vmem [resolvable:$true] %s310_s27  ;;  %s325_s28 = int_to_ptr.vmem [resolvable:$true] %s324_s28 }
  0x65   : > { %s1592_s14 = scalar_lea.hbm %s2043_s6, 32 }
  0x66   : > { %p1593_p2 = scmp.ne.s32.totalorder %s2043_s6, %s1592_s14  ;;  %p1599_p0 = scmp.lt.u32.totalorder %s1592_s14, %s2043_s6 }
  0x68   : > { %p1595_p3 = pnand %p1593_p2, %p1773_p7 }
  0x6a   : > { %p1596_p13 = pneg %p1595_p3 }
  0x6c   : > { %p1601_p1 = pnand %p1599_p0, %p1596_p13 }
  0x6e   : > { %1604 = shalt.err (!%p1601_p1)
}
  0x6f   : > { %s1605_s20 = scalar_lea.vmem %s311_s27, 32  ;;  %p1613_p9 = scmp.lt.s32.totalorder %s311_s27, %s311_s27 }
  0x70   : > { %p1606_p4 = scmp.ne.s32.totalorder %s311_s27, %s1605_s20  ;;  %p1614_p10 = scmp.lt.s32.totalorder %s1605_s20, %s1605_s20 }
  0x72   : > { %p1608_p6 = pnand %p1606_p4, %p1773_p7  ;;  %p1615_p11 = por %p1614_p10, %p1613_p9 }
  0x74   : > { %p1609_p8 = pneg %p1608_p6 }
  0x76   : > { %p1616_p12 = pnand %p1615_p11, %p1609_p8 }
  0x78   : > { %1619 = shalt.err (!%p1616_p12)
}
  0x79   : > { %1394 = dma.hbm_to_vmem [thread:$0]  (!%p1757_p5), %s2043_s6, 32, %s311_s27, [#allocation8]  }
  0x7a   : > { %s1620_s15 = scalar_lea.hbm %s2045_s8, 16 }
  0x7b   : > { %p1621_p2 = scmp.ne.s32.totalorder %s2045_s8, %s1620_s15  ;;  %p1627_p0 = scmp.lt.u32.totalorder %s1620_s15, %s2045_s8 }
  0x7d   : > { %p1623_p3 = pnand %p1621_p2, %p1773_p7 }
  0x7f   : > { %p1624_p13 = pneg %p1623_p3 }
  0x81   : > { %p1629_p1 = pnand %p1627_p0, %p1624_p13 }
  0x83   : > { %1632 = shalt.err (!%p1629_p1)
}
  0x84   : > { %s1633_s17 = scalar_lea.vmem %s325_s28, 16  ;;  %s1640_s27 = scalar_lea.vmem %s325_s28, 32 }
  0x85   : > { %p1634_p4 = scmp.ne.s32.totalorder %s325_s28, %s1633_s17  ;;  %p1641_p9 = scmp.lt.s32.totalorder %s325_s28, %s325_s28 }
  0x86   : > { %p1642_p10 = scmp.lt.s32.totalorder %s1640_s27, %s1633_s17 }
  0x87   : > { %p1636_p6 = pnand %p1634_p4, %p1773_p7 }
  0x88   : > { %p1643_p11 = por %p1642_p10, %p1641_p9 }
  0x89   : > { %p1637_p8 = pneg %p1636_p6 }
  0x8b   : > { %p1644_p12 = pnand %p1643_p11, %p1637_p8 }
  0x8d   : > { %1647 = shalt.err (!%p1644_p12)
}
  0x8e   : > { %1397 = dma.hbm_to_vmem [thread:$0]  (!%p1757_p5), %s2045_s8, 16, %s325_s28, [#allocation11]  }
  0x8f   : > { %p2052_p2 = scmp.ne.s32.totalorder %s2049_s13, 0 }
  0x90   : > { %p2053_p3 = scmp.eq.s32.totalorder (!%p2052_p2), %s1740_s12, 0 }
  0x91   : > { %344 = sbr.rel (%p2052_p2) target bundleno = 1784 (0x6f8), region = 56 }
  0x98   : > { %1653 = dma.done.wait (%p2053_p3), [#allocation3], 16   ;;  %p2054_p7 = pmov %p2053_p3 }
  0x99   : > { %p2055_p13 = pmov %p2053_p3 }
  0x9a   : > { %1655 = vsyncadd (%p2054_p7), [#allocation3], 4294967280 }
  0x9b   : > { %1657 = dma.done.wait (%p2055_p13), [#allocation5], 32   ;;  %p2056_p0 = pmov %p2053_p3 }
  0x9d   : > { %1659 = vsyncadd (%p2056_p0), [#allocation5], 4294967264  ;;  %p2057_p1 = pmov %p2056_p0 }
  0x9e   : > { %p2058_p5 = pmov %p2056_p0 }
  0x9f   : > { %1661 = dma.done.wait (%p2057_p1), [#allocation8], 2080  }
  0xa0   : > { %1663 = vsyncadd (%p2058_p5), [#allocation8], 4294965216  ;;  %p2059_p4 = pmov %p2056_p0 }
  0xa1   : > { %p2060_p6 = pmov %p2056_p0 }
  0xa2   : > { %1665 = dma.done.wait (%p2059_p4), [#allocation11], 16  }
  0xa3   : > { %1667 = vsyncadd (%p2060_p6), [#allocation11], 4294967280  ;;  %p398_p8 = scmp.lt.s32.totalorder %s1740_s12, 1  ;;  %v1430_v1 = vld [vmem:[#allocation7 + $0x4] ss:$8 sps:$4 sm:$0xff]   ;;  %v1432_v2 = vld [vmem:[%s2040_s3] sm:$0xff]   ;;  %v566_v41 = vlaneseq }
  0xa4   : > { %v1433_v3 = vld [vmem:[#allocation7] ss:$8 sps:$4 sm:$0xff]   ;;  %v1680_v4 = vmov 0.0   ;;  %v1434_v5 = vld [vmem:[#allocation7 + $0x14] ss:$8 sps:$4 sm:$0xff]   ;;  %656 = vmatprep.subr.bf16.mxu1 %v1430_v1  ;;  %vm1681_vm0 = vmmov 0  }
  0xa5   : > { %s2062_s12 = smov (!%p398_p8, %s1740_s12), 1  ;;  %1287 = vmatprep.subr.bf16.mxu0 %v1680_v4  ;;  %v1436_v6 = vld [vmem:[%s2040_s3 + $0x8] sm:$0xff]   ;;  %657 = vmatpush1.bf16.msra.mxu1 %v1433_v3  ;;  %v1437_v7 = vld [vmem:[#allocation7 + $0x10] ss:$8 sps:$4 sm:$0xff]   ;;  %v1442_v15 = vld [vmem:[#allocation7 + $0x34] ss:$8 sps:$4 sm:$0xff]  }
  0xa6   : > { %s1214_s13 = sshll.u32 %s2062_s12, 3  ;;  %1288 = vmatpush3.bf16.msra.mxu0 %v1432_v2  ;;  %658 = vmatprep.subr.bf16.mxu1 %v1434_v5  ;;  %v1438_v8 = vld [vmem:[#allocation7 + $0x24] ss:$8 sps:$4 sm:$0xff]   ;;  %v1441_v14 = vld [vmem:[#allocation7 + $0x20] ss:$8 sps:$4 sm:$0xff]   ;;  %v1444_v16 = vld [vmem:[%s2040_s3 + $0x18] sm:$0xff]  }
  0xa7   : > { %s401_s28 = scalar_lea.vmem %s2037_s0, %s1214_s13  ;;  %1289 = vmatprep.subr.bf16.mxu0 %v1680_v4  ;;  %v1440_v13 = vld [vmem:[%s2040_s3 + $0x10] sm:$0xff]   ;;  %v1448_v19 = vld [vmem:[%s2040_s3 + $0x20] sm:$0xff]   ;;  %1303 = vmatprep.mubr.msk.bf16.mxu0 %vm1681_vm0, %v1680_v4  ;;  %v1682_v22 = vmov 0   ;;  %v1452_v23 = vld [vmem:[%s2040_s3 + $0x28] sm:$0xff]   ;;  %v567_v42 = vshrl.u32 %v566_v41, 7  ;;  %vm716_vm1 = vcmask 523264  }
  0xa8   : > { %v1925_v0 = vld [vmem:[%s401_s28] sm:$0xff]  ;;  %v1446_v18 = vld [vmem:[#allocation7 + $0x44] ss:$8 sps:$4 sm:$0xff]   ;;  %688 = vmatprep.mubr.bf16.mxu1 %v1682_v22  ;;  %v1460_v29 = vld [vmem:[%s2040_s3 + $0x38] sm:$0xff]   ;;  %vm780_vm2 = vcmask 1043456   ;;  %s1683_s26 = smov 64   ;;  %s405_s28 = scalar_lea.vmem %s2046_s9, %s1214_s13 }
  0xa9   : > { %410 = vadd.xlane.f32.xlu0 %v1925_v0  ;;  %659 = vmatpush1.bf16.msra.mxu1 %v1437_v7  ;;  %v1445_v17 = vld [vmem:[#allocation7 + $0x30] ss:$8 sps:$4 sm:$0xff]   ;;  %v1449_v20 = vld [vmem:[#allocation7 + $0x40] ss:$8 sps:$4 sm:$0xff]   ;;  %v1450_v21 = vld [vmem:[#allocation7 + $0x54] ss:$8 sps:$4 sm:$0xff]  }
  0xaa   : > { %1290 = vmatpush3.bf16.msra.mxu0 %v1436_v6  ;;  %660 = vmatprep.subr.bf16.mxu1 %v1438_v8  ;;  %v1453_v24 = vld [vmem:[#allocation7 + $0x50] ss:$8 sps:$4 sm:$0xff]   ;;  %v1454_v25 = vld [vmem:[#allocation7 + $0x64] ss:$8 sps:$4 sm:$0xff]   ;;  %v1457_v27 = vld [vmem:[#allocation7 + $0x60] ss:$8 sps:$4 sm:$0xff]  }
  0xab   : > { %1291 = vmatprep.subr.bf16.mxu0 %v1680_v4  ;;  %v1456_v26 = vld [vmem:[%s2040_s3 + $0x30] sm:$0xff]   ;;  %v1458_v28 = vld [vmem:[#allocation7 + $0x74] ss:$8 sps:$4 sm:$0xff]   ;;  %v1216_v35 = vld [vmem:[#allocation2] ss:$0 sm:$0xff]  ;;  %v568_v43 = vsub.s32 0, %v567_v42 }
  0xac   : > { %v1461_v30 = vld [vmem:[#allocation7 + $0x70] ss:$8 sps:$4 sm:$0xff]   ;;  %v1217_v37 = vld [vmem:[#allocation4] ss:$0 sm:$0xff]  ;;  %v564_v44 = vld [vmem:[#allocation9] sm:$0x3] }
  0xad   : > { %661 = vmatpush1.bf16.msra.mxu1 %v1441_v14  ;;  %v572_v45 = vsub.s32 1, %v567_v42  ;;  %v569_v46 = vrot.slane %v564_v44, %v568_v43  ;;  %v1218_v48 = vld [vmem:[#allocation6] ss:$0 sm:$0xff]  ;;  %vm764_vm3 = vcmask 64512   ;;  %v1463_v42 = vld [vmem:[%s2044_s7 + $0x8] sm:$0xff]   ;;  %v1464_v43 = vld [vmem:[%s2044_s7 + $0x10] sm:$0xff]  }
  0xae   : > { %1292 = vmatpush3.bf16.msra.mxu0 %v1440_v13  ;;  %662 = vmatprep.subr.bf16.mxu1 %v1442_v15 }
  0xaf   : > { %1293 = vmatprep.subr.bf16.mxu0 %v1680_v4  ;;  %v573_v47 = vrot.slane %v564_v44, %v572_v45  ;;  %v1465_v44 = vld [vmem:[%s2044_s7 + $0x18] sm:$0xff]  }
  0xb0   : > { %v1469_v45 = vld [vmem:[%s2044_s7 + $0x38] sm:$0xff]  }
  0xb1   : > { %663 = vmatpush1.bf16.msra.mxu1 %v1445_v17 }
  0xb2   : > { %1294 = vmatpush3.bf16.msra.mxu0 %v1444_v16  ;;  %664 = vmatprep.subr.bf16.mxu1 %v1446_v18 }
  0xb3   : > { %1295 = vmatprep.subr.bf16.mxu0 %v1680_v4 }
  0xb5   : > { %665 = vmatpush1.bf16.msra.mxu1 %v1449_v20 }
  0xb6   : > { %1296 = vmatpush3.bf16.msra.mxu0 %v1448_v19  ;;  %666 = vmatprep.subr.bf16.mxu1 %v1450_v21 }
  0xb7   : > { %1297 = vmatprep.subr.bf16.mxu0 %v1680_v4 }
  0xb9   : > { %667 = vmatpush1.bf16.msra.mxu1 %v1453_v24 }
  0xba   : > { %1298 = vmatpush3.bf16.msra.mxu0 %v1452_v23  ;;  %668 = vmatprep.subr.bf16.mxu1 %v1454_v25 }
  0xbb   : > { %1299 = vmatprep.subr.bf16.mxu0 %v1680_v4 }
  0xbd   : > { %669 = vmatpush1.bf16.msra.mxu1 %v1457_v27 }
  0xbe   : > { %1300 = vmatpush3.bf16.msra.mxu0 %v1456_v26  ;;  %670 = vmatprep.subr.bf16.mxu1 %v1458_v28 }
  0xbf   : > { %1301 = vmatprep.subr.bf16.mxu0 %v1680_v4 }
  0xc1   : > { %671 = vmatpush1.bf16.msra.mxu1 %v1461_v30 }
  0xc2   : > { %1302 = vmatpush3.bf16.msra.mxu0 %v1460_v29  ;;  %1313 = vmatprep.subr.bf16.mxu1 %v1680_v4 }
  0xc3   : > { %1307 = vmatprep.subr.bf16.mxu0 %v1680_v4 }
 0x136   : > { %v411_v9 = vpop.xlane.xlu0 %410 }
 0x137   : > { %v413_v10 = vmul.f32 0.0078125, %v411_v9 }
 0x139   : > { %v414_v11 = vsub.f32 %v1925_v0, %v413_v10 }
 0x13b   : > { %v415_v12 = vmul.f32 %v414_v11, %v414_v11 }
 0x13d   : > { %416 = vadd.xlane.f32.xlu0 %v415_v12 }
 0x1ca   : > { %v417_v31 = vpop.xlane.xlu0 %416 }
 0x1cb   : > { %v418_v32 = vmul.f32 0.0078125, %v417_v31 }
 0x1cd   : > { %v419_v33 = vadd.f32 1e-05, %v418_v32  ;;  %v1466_v32 = vld [vmem:[%s2044_s7 + $0x20] sm:$0xff]  }
 0x1cf   : > { %1470 = vrsqrt.f32 %v419_v33  ;;  %v1467_v33 = vld [vmem:[%s2044_s7 + $0x28] sm:$0xff]  }
 0x1d9   : > { %v1471_v34 = vpop.eup %1470 }
 0x1da   : > { %v421_v36 = vmul.f32 %v1471_v34, %v414_v11  ;;  %v1468_v34 = vld [vmem:[%s2044_s7 + $0x30] sm:$0xff]  }
 0x1dc   : > { %v428_v38 = vmul.f32 %v1216_v35, %v421_v36 }
 0x1de   : > { %v435_v39 = vadd.f32 %v1217_v37, %v428_v38 }
 0x1e0   : > { %v436_v40 = vpack.c.bf16 %v435_v39, %v435_v39 }
 0x1e2   : > { %1304 = vmatmul.mubr.bf16.vlgmr.msra.gmra.mrb[0].mxu0 %v436_v40  ;;  %689 = vmatmul.mubr.bf16.vlgmr.msra.gmra.mrb[0].mxu1 %v436_v40  ;;  %v1462_v40 = vld [vmem:[%s2044_s7] sm:$0xff]  }
 0x1e3   : > { %1309 = vmatprep.mubr.msk.bf16.mxu0 %vm1681_vm0, %v1680_v4  ;;  %1315 = vmatprep.mubr.msk.bf16.mxu1 %vm1681_vm0, %v1680_v4 }
 0x2b5   : > { %v542_v49 = vpop.f32.mrb[0].mxu0  ;;  %v690_v50 = vpop.f32.mrb[0].mxu1 }
 0x2b6   : > { %v691_v51 = vadd.f32 %v690_v50, %v569_v46  ;;  %v1305_v52 = vpop.f32.mrb[1].mxu0  ;;  %v692_v53 = vpop.f32.mrb[1].mxu1  ;;  %v543_v57 = vadd.f32 %v1218_v48, %v542_v49 }
 0x2b7   : > { %v693_v54 = vadd.f32 %v692_v53, %v573_v47  ;;  %v545_v55 = vpop.f32.mrb[2].mxu0  ;;  %v694_v56 = vpop.f32.mrb[2].mxu1 }
 0x2b8   : > { %v714_v58 = vpack.c.bf16 %v691_v51, %v691_v51  ;;  %v1306_v59 = vpop.f32.mrb[3].mxu0  ;;  %v695_v60 = vpop.f32.mrb[3].mxu1  ;;  %v713_v1 = vpack.c.bf16 %v543_v57, %v543_v57 }
 0x2b9   : > { %v715_v61 = vpack.c.bf16 %v693_v54, %v693_v54  ;;  %v1257_v60 = vld [vmem:[#allocation10] ss:$0 sm:$0xff] }
 0x2ba   : > { %v721_v62 = vsel %vm716_vm1, %v714_v58, 0  ;;  %829 = vrot.lane.b32.xlu1 %v714_v58, %s1683_s26 }
 0x2bb   : > { %v782_v63 = vsel %vm780_vm2, %v715_v61, 0  ;;  %1308 = vmatpush3.bf16.xpose.msra.mxu0 %v721_v62 }
 0x2bc   : > { %1314 = vmatpush3.bf16.msra.mxu1 %v782_v63  ;;  %1319 = vmatprep.subr.bf16.mxu0 %v1680_v4 }
 0x2bd   : > { %1325 = vmatprep.subr.bf16.mxu1 %v1680_v4 }
 0x2be   : > { %826 = vrot.lane.b32.xlu1 %v713_v1, %s1683_s26 }
 0x2c2   : > { %1310 = vmatmul.mubr.msk.bf16.vlgmr.msra.gmra.mrb[4].mxu0 %vm716_vm1, %v713_v1 }
 0x2c3   : > { %1321 = vmatprep.mubr.msk.bf16.mxu0 %vm1681_vm0, %v1680_v4 }
 0x32c   : > { %v830_v2 = vpop.permute.xlu1 %829 }
 0x32d   : > { %v835_v3 = vsel %vm716_vm1, %v830_v2, 0 }
 0x32e   : > { %1320 = vmatpush3.bf16.xpose.msra.mxu0 %v835_v3 }
 0x32f   : > { %1331 = vmatprep.subr.bf16.mxu0 %v1680_v4 }
 0x330   : > { %v827_v5 = vpop.permute.xlu1 %826 }
 0x335   : > { %1322 = vmatmul.mubr.msk.bf16.vlgmr.msra.gmra.mrb[8].mxu0 %vm716_vm1, %v827_v5 }
 0x336   : > { %1339 = vmatprep.mubr.msk.bf16.mxu0 %vm1681_vm0, %v1680_v4  ;;  %1332 = vmatpush3.bf16.msra.mxu0 %v1466_v32 }
 0x337   : > { %1333 = vmatprep.subr.bf16.mxu0 %v1680_v4 }
 0x33a   : > { %1334 = vmatpush3.bf16.msra.mxu0 %v1467_v33 }
 0x33b   : > { %1335 = vmatprep.subr.bf16.mxu0 %v1680_v4 }
 0x33e   : > { %1336 = vmatpush3.bf16.msra.mxu0 %v1468_v34 }
 0x33f   : > { %1337 = vmatprep.subr.bf16.mxu0 %v1680_v4 }
 0x342   : > { %1338 = vmatpush3.bf16.msra.mxu0 %v1469_v45 }
 0x395   : > { %v757_v6 = vpop.f32.mrb[4].mxu0 }
 0x396   : > { %v763_v7 = vmul.f32 0.125, %v757_v6  ;;  %v1311_v8 = vpop.f32.mrb[5].mxu0 }
 0x397   : > { %v760_v9 = vpop.f32.mrb[6].mxu0 }
 0x398   : > { %v1312_v10 = vpop.f32.mrb[7].mxu0  ;;  %v765_v11 = vsel %vm764_vm3, %v763_v7, -inf }
 0x399   : > { %766 = vmax.xlane.f32.xlu0 %v765_v11 }
 0x408   : > { %v871_v12 = vpop.f32.mrb[8].mxu0 }
 0x409   : > { %v877_v13 = vmul.f32 0.125, %v871_v12  ;;  %v1323_v14 = vpop.f32.mrb[9].mxu0 }
 0x40a   : > { %v874_v15 = vpop.f32.mrb[10].mxu0 }
 0x40b   : > { %v1324_v16 = vpop.f32.mrb[11].mxu0  ;;  %v878_v17 = vsel %vm764_vm3, %v877_v13, -inf }
 0x40c   : > { %879 = vmax.xlane.f32.xlu1 %v878_v17 }
 0x426   : > { %v767_v18 = vpop.xlane.xlu0 %766 }
 0x427   : > { %v768_v19 = vsub.f32 %v763_v7, %v767_v18 }
 0x429   : > { %v769_v20 = vmul.f32 1.442695, %v768_v19 }
 0x42b   : > { %1472 = vpow2.f32 %v769_v20 }
 0x435   : > { %v1473_v21 = vpop.eup %1472 }
 0x436   : > { %v771_v22 = vsel %vm764_vm3, %v1473_v21, 0.0 }
 0x437   : > { %772 = vadd.xlane.f32.xlu0 %v771_v22 }
 0x499   : > { %v880_v23 = vpop.xlane.xlu1 %879 }
 0x49a   : > { %v881_v24 = vsub.f32 %v877_v13, %v880_v23 }
 0x49c   : > { %v882_v25 = vmul.f32 1.442695, %v881_v24 }
 0x49e   : > { %1474 = vpow2.f32 %v882_v25 }
 0x4a8   : > { %v1475_v26 = vpop.eup %1474 }
 0x4a9   : > { %v884_v27 = vsel %vm764_vm3, %v1475_v26, 0.0 }
 0x4aa   : > { %885 = vadd.xlane.f32.xlu0 %v884_v27 }
 0x4c0   : > { %891 = vrot.lane.b32.xlu0 %v715_v61, %s1683_s26 }
 0x4c4   : > { %v773_v28 = vpop.xlane.xlu0 %772 }
 0x4c5   : > { %1476 = vrcp.f32 %v773_v28 }
 0x4cf   : > { %v1477_v29 = vpop.eup %1476 }
 0x4d0   : > { %v775_v30 = vmul.f32 %v1477_v29, %v1473_v21 }
 0x4d2   : > { %v776_v31 = vpack.c.bf16 %v775_v30, %v775_v30 }
 0x4d4   : > { %1316 = vmatmul.mubr.msk.bf16.vlgmr.msra.gmra.mrb[4].mxu1 %vm764_vm3, %v776_v31 }
 0x4d5   : > { %1327 = vmatprep.mubr.msk.bf16.mxu1 %vm1681_vm0, %v1680_v4 }
 0x537   : > { %v886_v35 = vpop.xlane.xlu0 %885 }
 0x538   : > { %1478 = vrcp.f32 %v886_v35 }
 0x53b   : > { %v892_v36 = vpop.permute.xlu0 %891 }
 0x53c   : > { %v897_v37 = vsel %vm780_vm2, %v892_v36, 0 }
 0x53d   : > { %1326 = vmatpush3.bf16.msra.mxu1 %v897_v37 }
 0x53e   : > { %1343 = vmatprep.subr.bf16.mxu1 %v1680_v4 }
 0x542   : > { %v1479_v38 = vpop.eup %1478 }
 0x543   : > { %v888_v39 = vmul.f32 %v1479_v38, %v1475_v26 }
 0x545   : > { %v889_v41 = vpack.c.bf16 %v888_v39, %v888_v39 }
 0x547   : > { %1328 = vmatmul.mubr.msk.bf16.vlgmr.msra.gmra.mrb[8].mxu1 %vm764_vm3, %v889_v41 }
 0x548   : > { %1344 = vmatpush3.bf16.msra.mxu1 %v1462_v40  ;;  %1351 = vmatprep.mubr.msk.bf16.mxu1 %vm1681_vm0, %v1680_v4 }
 0x549   : > { %1345 = vmatprep.subr.bf16.mxu1 %v1680_v4 }
 0x54c   : > { %1346 = vmatpush3.bf16.msra.mxu1 %v1463_v42 }
 0x54d   : > { %1347 = vmatprep.subr.bf16.mxu1 %v1680_v4 }
 0x550   : > { %1348 = vmatpush3.bf16.msra.mxu1 %v1464_v43 }
 0x551   : > { %1349 = vmatprep.subr.bf16.mxu1 %v1680_v4 }
 0x554   : > { %1350 = vmatpush3.bf16.msra.mxu1 %v1465_v44 }
 0x5a7   : > { %v818_v46 = vpop.f32.mrb[4].mxu1 }
 0x5a8   : > { %v824_v47 = vpack.c.bf16 %v818_v46, %v818_v46  ;;  %v1317_v48 = vpop.f32.mrb[5].mxu1 }
 0x5a9   : > { %v821_v49 = vpop.f32.mrb[6].mxu1 }
 0x5aa   : > { %v1318_v50 = vpop.f32.mrb[7].mxu1  ;;  %1352 = vmatmul.mubr.msk.bf16.vlgmr.msra.gmra.mrb[12].mxu1 %vm716_vm1, %v824_v47 }
 0x61a   : > { %v933_v51 = vpop.f32.mrb[8].mxu1 }
 0x61b   : > { %v939_v52 = vpack.c.bf16 %v933_v51, %v933_v51  ;;  %v1329_v53 = vpop.f32.mrb[9].mxu1 }
 0x61c   : > { %v936_v54 = vpop.f32.mrb[10].mxu1 }
 0x61d   : > { %v1330_v55 = vpop.f32.mrb[11].mxu1  ;;  %1340 = vmatmul.mubr.msk.bf16.vlgmr.msra.gmra.mrb[12].mxu0 %vm716_vm1, %v939_v52 }
 0x67d   : > { %v1068_v4 = vpop.f32.mrb[12].mxu1 }
 0x67e   : > { %v1353_v56 = vpop.f32.mrb[13].mxu1 }
 0x67f   : > { %v1071_v57 = vpop.f32.mrb[14].mxu1 }
 0x680   : > { %v1354_v58 = vpop.f32.mrb[15].mxu1 }
 0x6f0   : > { %v1001_v59 = vpop.f32.mrb[12].mxu0 }
 0x6f1   : > { %v1069_v61 = vadd.f32 %v1068_v4, %v1001_v59  ;;  %v1341_v62 = vpop.f32.mrb[13].mxu0 }
 0x6f2   : > { %v1004_v63 = vpop.f32.mrb[14].mxu0 }
 0x6f3   : > { %v1081_v1 = vadd.f32 %v1257_v60, %v1069_v61  ;;  %v1342_v2 = vpop.f32.mrb[15].mxu0 }
 0x6f5   : > { %v1082_v3 = vadd.f32 %v1081_v1, %v1925_v0 }
 0x6f7   : > { %1083 = vst [vmem:[%s405_s28] sm:$0xff] %v1082_v3 }
 0x6f8 PF: > { %s23_s30 = sadd.s32 1, %s1670_s30  }
 0x6f9   : > { %p20_p9 = scmp.ge.s32.totalorder %s23_s30, 4  }
 0x6fb   :  { %22 = sbr.rel (!%p20_p9) target bundleno = 4 (0x4), region = 111 }
 0x702   :  { %1103 = vsyncpa [#allocation3], 1 }
 0x703   :  { %1105 = vsyncpa [#allocation3 + $0x1], 1 }
 0x704   :  { %1106 = vsyncpa [#allocation5], 1 }
 0x705   :  { %1107 = vsyncpa [#allocation8], 1 }
 0x706   :  { %1108 = vsyncpa [#allocation11], 1 }

// kernel: mlm_forward.10
= control target key start
LH: loop header
LB: loop body
LE: loop exit
PB: predicated region body
PF: predicated region fallthrough
CT: control target
= control target key end

     0   :  { %s1329_s30 = smov 0   ;;  %s1520_s0 = inlined_call_operand.vmem [shape: f32[2,8,128], index: 0, kind: input, shape index: {}]   ;;  %s1521_s1 = inlined_call_operand.vmem [shape: f32[1,128], index: 1, kind: input, shape index: {}]   ;;  %s1522_s2 = inlined_call_operand.vmem [shape: f32[1,128], index: 2, kind: input, shape index: {}]   ;;  %s1523_s3 = inlined_call_operand.vmem [shape: bf16[128,128], index: 3, kind: input, shape index: {}]   ;;  %s1524_s4 = inlined_call_operand.vmem [shape: f32[1,128], index: 4, kind: input, shape index: {}]   ;;  %s1525_s5 = inlined_call_operand.vmem [shape: bf16[128,256], index: 5, kind: input, shape index: {}]   ;;  %s1526_s6 = inlined_call_operand.vmem [shape: f32[1,256], index: 6, kind: input, shape index: {}]   ;;  %s1527_s7 = inlined_call_operand.vmem [shape: bf16[128,128], index: 7, kind: input, shape index: {}]   ;;  %s1528_s8 = inlined_call_operand.vmem [shape: f32[1,128], index: 8, kind: input, shape index: {}]   ;;  %s1529_s9 = inlined_call_operand.vmem [shape: f32[2,8,128], index: 9, kind: output, shape index: {}]  }
   0x1 LB: > { %s1059_s10 = sadd.s32 4294967295, %s1273_s30   ;;  %p1063_p0 = scmp.ge.s32.totalorder %s1273_s30, 1  ;;  %s1273_s30 = sphi %s1329_s30, %s19_s30  }
   0x2   : > { %p286_p1 = scmp.lt.s32.totalorder %s1273_s30, 3 }
   0x4   : > { %p287_p2 = pnand %p1063_p0, %p286_p1 }
   0x5   : > { %p320_p3 = scmp.lt.s32.totalorder (!%p287_p2), %s1059_s10, 1  ;;  %v1217_v1 = vld [vmem:[%s1525_s5 + $0x4] ss:$8 sps:$4 sm:$0xff] (!%p287_p2)   ;;  %v1220_v3 = vld [vmem:[%s1525_s5] ss:$8 sps:$4 sm:$0xff] (!%p287_p2)   ;;  %v1275_v4 = vmov (!%p287_p2), 0.0   ;;  %v488_v41 = vlaneseq (!%p287_p2) }
   0x6   : > { %290 = sbr.rel (%p287_p2) target bundleno = 1632 (0x660), region = 56  ;;  %v1219_v2 = vld [vmem:[%s1523_s3] sm:$0xff] (!%p287_p2)   ;;  %1137 = vmatprep.subr.bf16.mxu0 (!%p287_p2), %v1275_v4  ;;  %v1221_v5 = vld [vmem:[%s1525_s5 + $0x14] ss:$8 sps:$4 sm:$0xff] (!%p287_p2)   ;;  %578 = vmatprep.subr.bf16.mxu1 (!%p287_p2), %v1217_v1  ;;  %v1223_v6 = vld [vmem:[%s1523_s3 + $0x8] sm:$0xff] (!%p287_p2)   ;;  %vm1276_vm0 = vmmov (!%p287_p2), 0  }
   0x7   : > { %1138 = vmatpush3.bf16.msra.mxu0 (!%p287_p2), %v1219_v2  ;;  %579 = vmatpush1.bf16.msra.mxu1 (!%p287_p2), %v1220_v3  ;;  %v1224_v7 = vld [vmem:[%s1525_s5 + $0x10] ss:$8 sps:$4 sm:$0xff] (!%p287_p2)   ;;  %v1225_v8 = vld [vmem:[%s1525_s5 + $0x24] ss:$8 sps:$4 sm:$0xff] (!%p287_p2)   ;;  %v1228_v14 = vld [vmem:[%s1525_s5 + $0x20] ss:$8 sps:$4 sm:$0xff] (!%p287_p2)  }
   0x8   : > { %1139 = vmatprep.subr.bf16.mxu0 (!%p287_p2), %v1275_v4  ;;  %580 = vmatprep.subr.bf16.mxu1 (!%p287_p2), %v1221_v5  ;;  %v1227_v13 = vld [vmem:[%s1523_s3 + $0x10] sm:$0xff] (!%p287_p2)   ;;  %v1231_v16 = vld [vmem:[%s1523_s3 + $0x18] sm:$0xff] (!%p287_p2)   ;;  %v1233_v18 = vld [vmem:[%s1525_s5 + $0x44] ss:$8 sps:$4 sm:$0xff] (!%p287_p2)   ;;  %v1277_v22 = vmov (!%p287_p2), 0   ;;  %v489_v42 = vshrl.u32 (!%p287_p2), %v488_v41, 7 }
   0x9   : > { %v1229_v15 = vld [vmem:[%s1525_s5 + $0x34] ss:$8 sps:$4 sm:$0xff] (!%p287_p2)   ;;  %v1232_v17 = vld [vmem:[%s1525_s5 + $0x30] ss:$8 sps:$4 sm:$0xff] (!%p287_p2)   ;;  %v1235_v19 = vld [vmem:[%s1523_s3 + $0x20] sm:$0xff] (!%p287_p2)   ;;  %1153 = vmatprep.mubr.msk.bf16.mxu0 (!%p287_p2), %vm1276_vm0, %v1275_v4  ;;  %610 = vmatprep.mubr.bf16.mxu1 (!%p287_p2), %v1277_v22  ;;  %vm638_vm1 = vcmask (!%p287_p2), 523264  }
   0xa   : > { %v1236_v20 = vld [vmem:[%s1525_s5 + $0x40] ss:$8 sps:$4 sm:$0xff] (!%p287_p2)   ;;  %v1237_v21 = vld [vmem:[%s1525_s5 + $0x54] ss:$8 sps:$4 sm:$0xff] (!%p287_p2)   ;;  %v1240_v24 = vld [vmem:[%s1525_s5 + $0x50] ss:$8 sps:$4 sm:$0xff] (!%p287_p2)  }
   0xb   : > { %1140 = vmatpush3.bf16.msra.mxu0 (!%p287_p2), %v1223_v6  ;;  %581 = vmatpush1.bf16.msra.mxu1 (!%p287_p2), %v1224_v7  ;;  %v1239_v23 = vld [vmem:[%s1523_s3 + $0x28] sm:$0xff] (!%p287_p2)   ;;  %v1243_v26 = vld [vmem:[%s1523_s3 + $0x30] sm:$0xff] (!%p287_p2)   ;;  %v1247_v29 = vld [vmem:[%s1523_s3 + $0x38] sm:$0xff] (!%p287_p2)   ;;  %v490_v43 = vsub.s32 (!%p287_p2), 0, %v489_v42  ;;  %v494_v45 = vsub.s32 (!%p287_p2), 1, %v489_v42  ;;  %vm702_vm2 = vcmask (!%p287_p2), 1043456  }
   0xc   : > { %1141 = vmatprep.subr.bf16.mxu0 (!%p287_p2), %v1275_v4  ;;  %582 = vmatprep.subr.bf16.mxu1 (!%p287_p2), %v1225_v8  ;;  %v1241_v25 = vld [vmem:[%s1525_s5 + $0x64] ss:$8 sps:$4 sm:$0xff] (!%p287_p2)   ;;  %v1244_v27 = vld [vmem:[%s1525_s5 + $0x60] ss:$8 sps:$4 sm:$0xff] (!%p287_p2)   ;;  %v1245_v28 = vld [vmem:[%s1525_s5 + $0x74] ss:$8 sps:$4 sm:$0xff] (!%p287_p2)  }
   0xd   : > { %s1531_s10 = smov (!%p320_p3, %s1059_s10), 1  ;;  %v1248_v30 = vld [vmem:[%s1525_s5 + $0x70] ss:$8 sps:$4 sm:$0xff]   ;;  %v1066_v35 = vld [vmem:[%s1521_s1] ss:$0 sm:$0xff]  ;;  %s1278_s17 = smov 64  }
   0xe   : > { %s1064_s11 = sshll.u32 %s1531_s10, 3  ;;  %v1067_v37 = vld [vmem:[%s1522_s2] ss:$0 sm:$0xff]  ;;  %vm686_vm3 = vcmask 64512   ;;  %v1250_v42 = vld [vmem:[%s1527_s7 + $0x8] sm:$0xff]  }
   0xf   : > { %s323_s14 = scalar_lea.vmem %s1520_s0, %s1064_s11  ;;  %1142 = vmatpush3.bf16.msra.mxu0 %v1227_v13  ;;  %583 = vmatpush1.bf16.msra.mxu1 %v1228_v14  ;;  %v486_v44 = vld [vmem:[%s1526_s6] sm:$0x3]  ;;  %s327_s20 = scalar_lea.vmem %s1529_s9, %s1064_s11 }
  0x10   : > { %v1345_v0 = vld [vmem:[%s323_s14] sm:$0xff]  ;;  %1143 = vmatprep.subr.bf16.mxu0 %v1275_v4  ;;  %584 = vmatprep.subr.bf16.mxu1 %v1229_v15  ;;  %v491_v46 = vrot.slane %v486_v44, %v490_v43  ;;  %v495_v47 = vrot.slane %v486_v44, %v494_v45  ;;  %v1251_v43 = vld [vmem:[%s1527_s7 + $0x10] sm:$0xff]   ;;  %v1252_v44 = vld [vmem:[%s1527_s7 + $0x18] sm:$0xff]  }
  0x11   : > { %332 = vadd.xlane.f32.xlu0 %v1345_v0  ;;  %v1068_v48 = vld [vmem:[%s1524_s4] ss:$0 sm:$0xff]  ;;  %v1256_v45 = vld [vmem:[%s1527_s7 + $0x38] sm:$0xff]  }
  0x13   : > { %1144 = vmatpush3.bf16.msra.mxu0 %v1231_v16  ;;  %585 = vmatpush1.bf16.msra.mxu1 %v1232_v17 }
  0x14   : > { %1145 = vmatprep.subr.bf16.mxu0 %v1275_v4  ;;  %586 = vmatprep.subr.bf16.mxu1 %v1233_v18 }
  0x17   : > { %1146 = vmatpush3.bf16.msra.mxu0 %v1235_v19  ;;  %587 = vmatpush1.bf16.msra.mxu1 %v1236_v20 }
  0x18   : > { %1147 = vmatprep.subr.bf16.mxu0 %v1275_v4  ;;  %588 = vmatprep.subr.bf16.mxu1 %v1237_v21 }
  0x1b   : > { %1148 = vmatpush3.bf16.msra.mxu0 %v1239_v23  ;;  %589 = vmatpush1.bf16.msra.mxu1 %v1240_v24 }
  0x1c   : > { %1149 = vmatprep.subr.bf16.mxu0 %v1275_v4  ;;  %590 = vmatprep.subr.bf16.mxu1 %v1241_v25 }
  0x1f   : > { %1150 = vmatpush3.bf16.msra.mxu0 %v1243_v26  ;;  %591 = vmatpush1.bf16.msra.mxu1 %v1244_v27 }
  0x20   : > { %1151 = vmatprep.subr.bf16.mxu0 %v1275_v4  ;;  %592 = vmatprep.subr.bf16.mxu1 %v1245_v28 }
  0x23   : > { %1152 = vmatpush3.bf16.msra.mxu0 %v1247_v29  ;;  %593 = vmatpush1.bf16.msra.mxu1 %v1248_v30 }
  0x24   : > { %1157 = vmatprep.subr.bf16.mxu0 %v1275_v4  ;;  %1163 = vmatprep.subr.bf16.mxu1 %v1275_v4 }
  0x9e   : > { %v333_v9 = vpop.xlane.xlu0 %332 }
  0x9f   : > { %v335_v10 = vmul.f32 0.0078125, %v333_v9 }
  0xa1   : > { %v336_v11 = vsub.f32 %v1345_v0, %v335_v10 }
  0xa3   : > { %v337_v12 = vmul.f32 %v336_v11, %v336_v11 }
  0xa5   : > { %338 = vadd.xlane.f32.xlu0 %v337_v12 }
 0x132   : > { %v339_v31 = vpop.xlane.xlu0 %338 }
 0x133   : > { %v340_v32 = vmul.f32 0.0078125, %v339_v31 }
 0x135   : > { %v341_v33 = vadd.f32 1e-05, %v340_v32  ;;  %v1253_v32 = vld [vmem:[%s1527_s7 + $0x20] sm:$0xff]  }
 0x137   : > { %1257 = vrsqrt.f32 %v341_v33  ;;  %v1254_v33 = vld [vmem:[%s1527_s7 + $0x28] sm:$0xff]  }
 0x141   : > { %v1258_v34 = vpop.eup %1257 }
 0x142   : > { %v343_v36 = vmul.f32 %v1258_v34, %v336_v11  ;;  %v1255_v34 = vld [vmem:[%s1527_s7 + $0x30] sm:$0xff]  }
 0x144   : > { %v350_v38 = vmul.f32 %v1066_v35, %v343_v36 }
 0x146   : > { %v357_v39 = vadd.f32 %v1067_v37, %v350_v38 }
 0x148   : > { %v358_v40 = vpack.c.bf16 %v357_v39, %v357_v39 }
 0x14a   : > { %1154 = vmatmul.mubr.bf16.vlgmr.msra.gmra.mrb[0].mxu0 %v358_v40  ;;  %611 = vmatmul.mubr.bf16.vlgmr.msra.gmra.mrb[0].mxu1 %v358_v40  ;;  %v1249_v40 = vld [vmem:[%s1527_s7] sm:$0xff]  }
 0x14b   : > { %1159 = vmatprep.mubr.msk.bf16.mxu0 %vm1276_vm0, %v1275_v4  ;;  %1165 = vmatprep.mubr.msk.bf16.mxu1 %vm1276_vm0, %v1275_v4 }
 0x21d   : > { %v464_v49 = vpop.f32.mrb[0].mxu0  ;;  %v612_v50 = vpop.f32.mrb[0].mxu1 }
 0x21e   : > { %v613_v51 = vadd.f32 %v612_v50, %v491_v46  ;;  %v1155_v52 = vpop.f32.mrb[1].mxu0  ;;  %v614_v53 = vpop.f32.mrb[1].mxu1  ;;  %v465_v57 = vadd.f32 %v1068_v48, %v464_v49 }
 0x21f   : > { %v615_v54 = vadd.f32 %v614_v53, %v495_v47  ;;  %v467_v55 = vpop.f32.mrb[2].mxu0  ;;  %v616_v56 = vpop.f32.mrb[2].mxu1 }
 0x220   : > { %v636_v58 = vpack.c.bf16 %v613_v51, %v613_v51  ;;  %v1156_v59 = vpop.f32.mrb[3].mxu0  ;;  %v617_v60 = vpop.f32.mrb[3].mxu1  ;;  %v635_v1 = vpack.c.bf16 %v465_v57, %v465_v57 }
 0x221   : > { %v637_v61 = vpack.c.bf16 %v615_v54, %v615_v54  ;;  %v1107_v60 = vld [vmem:[%s1528_s8] ss:$0 sm:$0xff] }
 0x222   : > { %v643_v62 = vsel %vm638_vm1, %v636_v58, 0  ;;  %751 = vrot.lane.b32.xlu1 %v636_v58, %s1278_s17 }
 0x223   : > { %v704_v63 = vsel %vm702_vm2, %v637_v61, 0  ;;  %1158 = vmatpush3.bf16.xpose.msra.mxu0 %v643_v62 }
 0x224   : > { %1164 = vmatpush3.bf16.msra.mxu1 %v704_v63  ;;  %1169 = vmatprep.subr.bf16.mxu0 %v1275_v4 }
 0x225   : > { %1175 = vmatprep.subr.bf16.mxu1 %v1275_v4 }
 0x226   : > { %748 = vrot.lane.b32.xlu1 %v635_v1, %s1278_s17 }
 0x22a   : > { %1160 = vmatmul.mubr.msk.bf16.vlgmr.msra.gmra.mrb[4].mxu0 %vm638_vm1, %v635_v1 }
 0x22b   : > { %1171 = vmatprep.mubr.msk.bf16.mxu0 %vm1276_vm0, %v1275_v4 }
 0x294   : > { %v752_v2 = vpop.permute.xlu1 %751 }
 0x295   : > { %v757_v3 = vsel %vm638_vm1, %v752_v2, 0 }
 0x296   : > { %1170 = vmatpush3.bf16.xpose.msra.mxu0 %v757_v3 }
 0x297   : > { %1181 = vmatprep.subr.bf16.mxu0 %v1275_v4 }
 0x298   : > { %v749_v5 = vpop.permute.xlu1 %748 }
 0x29d   : > { %1172 = vmatmul.mubr.msk.bf16.vlgmr.msra.gmra.mrb[8].mxu0 %vm638_vm1, %v749_v5 }
 0x29e   : > { %1189 = vmatprep.mubr.msk.bf16.mxu0 %vm1276_vm0, %v1275_v4  ;;  %1182 = vmatpush3.bf16.msra.mxu0 %v1253_v32 }
 0x29f   : > { %1183 = vmatprep.subr.bf16.mxu0 %v1275_v4 }
 0x2a2   : > { %1184 = vmatpush3.bf16.msra.mxu0 %v1254_v33 }
 0x2a3   : > { %1185 = vmatprep.subr.bf16.mxu0 %v1275_v4 }
 0x2a6   : > { %1186 = vmatpush3.bf16.msra.mxu0 %v1255_v34 }
 0x2a7   : > { %1187 = vmatprep.subr.bf16.mxu0 %v1275_v4 }
 0x2aa   : > { %1188 = vmatpush3.bf16.msra.mxu0 %v1256_v45 }
 0x2fd   : > { %v679_v6 = vpop.f32.mrb[4].mxu0 }
 0x2fe   : > { %v685_v7 = vmul.f32 0.125, %v679_v6  ;;  %v1161_v8 = vpop.f32.mrb[5].mxu0 }
 0x2ff   : > { %v682_v9 = vpop.f32.mrb[6].mxu0 }
 0x300   : > { %v1162_v10 = vpop.f32.mrb[7].mxu0  ;;  %v687_v11 = vsel %vm686_vm3, %v685_v7, -inf }
 0x301   : > { %688 = vmax.xlane.f32.xlu0 %v687_v11 }
 0x370   : > { %v793_v12 = vpop.f32.mrb[8].mxu0 }
 0x371   : > { %v799_v13 = vmul.f32 0.125, %v793_v12  ;;  %v1173_v14 = vpop.f32.mrb[9].mxu0 }
 0x372   : > { %v796_v15 = vpop.f32.mrb[10].mxu0 }
 0x373   : > { %v1174_v16 = vpop.f32.mrb[11].mxu0  ;;  %v800_v17 = vsel %vm686_vm3, %v799_v13, -inf }
 0x374   : > { %801 = vmax.xlane.f32.xlu1 %v800_v17 }
 0x38e   : > { %v689_v18 = vpop.xlane.xlu0 %688 }
 0x38f   : > { %v690_v19 = vsub.f32 %v685_v7, %v689_v18 }
 0x391   : > { %v691_v20 = vmul.f32 1.442695, %v690_v19 }
 0x393   : > { %1259 = vpow2.f32 %v691_v20 }
 0x39d   : > { %v1260_v21 = vpop.eup %1259 }
 0x39e   : > { %v693_v22 = vsel %vm686_vm3, %v1260_v21, 0.0 }
 0x39f   : > { %694 = vadd.xlane.f32.xlu0 %v693_v22 }
 0x401   : > { %v802_v23 = vpop.xlane.xlu1 %801 }
 0x402   : > { %v803_v24 = vsub.f32 %v799_v13, %v802_v23 }
 0x404   : > { %v804_v25 = vmul.f32 1.442695, %v803_v24 }
 0x406   : > { %1261 = vpow2.f32 %v804_v25 }
 0x410   : > { %v1262_v26 = vpop.eup %1261 }
 0x411   : > { %v806_v27 = vsel %vm686_vm3, %v1262_v26, 0.0 }
 0x412   : > { %807 = vadd.xlane.f32.xlu0 %v806_v27 }
 0x428   : > { %813 = vrot.lane.b32.xlu0 %v637_v61, %s1278_s17 }
 0x42c   : > { %v695_v28 = vpop.xlane.xlu0 %694 }
 0x42d   : > { %1263 = vrcp.f32 %v695_v28 }
 0x437   : > { %v1264_v29 = vpop.eup %1263 }
 0x438   : > { %v697_v30 = vmul.f32 %v1264_v29, %v1260_v21 }
 0x43a   : > { %v698_v31 = vpack.c.bf16 %v697_v30, %v697_v30 }
 0x43c   : > { %1166 = vmatmul.mubr.msk.bf16.vlgmr.msra.gmra.mrb[4].mxu1 %vm686_vm3, %v698_v31 }
 0x43d   : > { %1177 = vmatprep.mubr.msk.bf16.mxu1 %vm1276_vm0, %v1275_v4 }
 0x49f   : > { %v808_v35 = vpop.xlane.xlu0 %807 }
 0x4a0   : > { %1265 = vrcp.f32 %v808_v35 }
 0x4a3   : > { %v814_v36 = vpop.permute.xlu0 %813 }
 0x4a4   : > { %v819_v37 = vsel %vm702_vm2, %v814_v36, 0 }
 0x4a5   : > { %1176 = vmatpush3.bf16.msra.mxu1 %v819_v37 }
 0x4a6   : > { %1193 = vmatprep.subr.bf16.mxu1 %v1275_v4 }
 0x4aa   : > { %v1266_v38 = vpop.eup %1265 }
 0x4ab   : > { %v810_v39 = vmul.f32 %v1266_v38, %v1262_v26 }
 0x4ad   : > { %v811_v41 = vpack.c.bf16 %v810_v39, %v810_v39 }
 0x4af   : > { %1178 = vmatmul.mubr.msk.bf16.vlgmr.msra.gmra.mrb[8].mxu1 %vm686_vm3, %v811_v41 }
 0x4b0   : > { %1194 = vmatpush3.bf16.msra.mxu1 %v1249_v40  ;;  %1201 = vmatprep.mubr.msk.bf16.mxu1 %vm1276_vm0, %v1275_v4 }
 0x4b1   : > { %1195 = vmatprep.subr.bf16.mxu1 %v1275_v4 }
 0x4b4   : > { %1196 = vmatpush3.bf16.msra.mxu1 %v1250_v42 }
 0x4b5   : > { %1197 = vmatprep.subr.bf16.mxu1 %v1275_v4 }
 0x4b8   : > { %1198 = vmatpush3.bf16.msra.mxu1 %v1251_v43 }
 0x4b9   : > { %1199 = vmatprep.subr.bf16.mxu1 %v1275_v4 }
 0x4bc   : > { %1200 = vmatpush3.bf16.msra.mxu1 %v1252_v44 }
 0x50f   : > { %v740_v46 = vpop.f32.mrb[4].mxu1 }
 0x510   : > { %v746_v47 = vpack.c.bf16 %v740_v46, %v740_v46  ;;  %v1167_v48 = vpop.f32.mrb[5].mxu1 }
 0x511   : > { %v743_v49 = vpop.f32.mrb[6].mxu1 }
 0x512   : > { %v1168_v50 = vpop.f32.mrb[7].mxu1  ;;  %1202 = vmatmul.mubr.msk.bf16.vlgmr.msra.gmra.mrb[12].mxu1 %vm638_vm1, %v746_v47 }
 0x582   : > { %v855_v51 = vpop.f32.mrb[8].mxu1 }
 0x583   : > { %v861_v52 = vpack.c.bf16 %v855_v51, %v855_v51  ;;  %v1179_v53 = vpop.f32.mrb[9].mxu1 }
 0x584   : > { %v858_v54 = vpop.f32.mrb[10].mxu1 }
 0x585   : > { %v1180_v55 = vpop.f32.mrb[11].mxu1  ;;  %1190 = vmatmul.mubr.msk.bf16.vlgmr.msra.gmra.mrb[12].mxu0 %vm638_vm1, %v861_v52 }
 0x5e5   : > { %v990_v4 = vpop.f32.mrb[12].mxu1 }
 0x5e6   : > { %v1203_v56 = vpop.f32.mrb[13].mxu1 }
 0x5e7   : > { %v993_v57 = vpop.f32.mrb[14].mxu1 }
 0x5e8   : > { %v1204_v58 = vpop.f32.mrb[15].mxu1 }
 0x658   : > { %v923_v59 = vpop.f32.mrb[12].mxu0 }
 0x659   : > { %v991_v61 = vadd.f32 %v990_v4, %v923_v59  ;;  %v1191_v62 = vpop.f32.mrb[13].mxu0 }
 0x65a   : > { %v926_v63 = vpop.f32.mrb[14].mxu0 }
 0x65b   : > { %v1003_v1 = vadd.f32 %v1107_v60, %v991_v61  ;;  %v1192_v2 = vpop.f32.mrb[15].mxu0 }
 0x65d   : > { %v1004_v3 = vadd.f32 %v1003_v1, %v1345_v0 }
 0x65f   : > { %1005 = vst [vmem:[%s327_s20] sm:$0xff] %v1004_v3 }
 0x660 PF: > { %s19_s30 = sadd.s32 1, %s1273_s30  }
 0x661   : > { %p16_p4 = scmp.ge.s32.totalorder %s19_s30, 4  }
 0x663   :  { %18 = sbr.rel (!%p16_p4) target bundleno = 1 (0x1), region = 86 }

// kernel: mlm_forward.7
= control target key start
LH: loop header
LB: loop body
LE: loop exit
PB: predicated region body
PF: predicated region fallthrough
CT: control target
= control target key end

     0   :  { %17 = vsyncpa [#allocation3], 0  ;;  %s2047_s0 = inlined_call_operand.vmem [shape: f32[2,8,128], index: 0, kind: input, shape index: {}]   ;;  %s2048_s1 = inlined_call_operand.vmem [shape: f32[2,16,128], index: 1, kind: input, shape index: {}]   ;;  %s2049_s2 = inlined_call_operand.vmem [shape: f32[1,128], index: 2, kind: input, shape index: {}]   ;;  %s2050_s3 = inlined_call_operand.vmem [shape: f32[1,128], index: 3, kind: input, shape index: {}]   ;;  %s2051_s4 = inlined_call_operand.vmem [shape: f32[1,128], index: 4, kind: input, shape index: {}]   ;;  %s2052_s5 = inlined_call_operand.vmem [shape: f32[1,128], index: 5, kind: input, shape index: {}]   ;;  %s2053_s6 = inlined_call_operand.vmem [shape: bf16[128,128], index: 6, kind: input, shape index: {}]   ;;  %s2054_s7 = inlined_call_operand.hbm [shape: f32[1,128], index: 7, kind: input, shape index: {}]   ;;  %s2055_s8 = inlined_call_operand.hbm [shape: bf16[128,256], index: 8, kind: input, shape index: {}]   ;;  %s2056_s9 = inlined_call_operand.vmem [shape: f32[1,256], index: 9, kind: input, shape index: {}]   ;;  %s2057_s10 = inlined_call_operand.hbm [shape: bf16[128,128], index: 10, kind: input, shape index: {}]   ;;  %s2058_s11 = inlined_call_operand.hbm [shape: f32[1,128], index: 11, kind: input, shape index: {}]   ;;  %s2059_s12 = inlined_call_operand.vmem [shape: f32[2,8,128], index: 12, kind: output, shape index: {}]  }
   0x1   :  { %18 = vsyncpa [#allocation5], 0 }
   0x2   :  { %19 = vsyncpa [#allocation8], 0  ;;  %s1785_s21 = smov 0  }
   0x3 LB: > { %2063 = sst [smem:[#allocation12_spill]] %s1706_s21  ;;  %s1708_s22 = smov [#allocation4]   ;;  %s1706_s21 = sphi %s1785_s21, %s25_s21  }
   0x4   : > { %s356_s23 = sshll.u32 %s1708_s22, 4  ;;  %s1791_s24 = sadd.s32 4294967295, %s1706_s21   ;;  %s1796_s23 = int_to_ptr.vmem [resolvable:$true] %s356_s23 }
   0x5   : > { %p1308_p0 = scmp.ge.s32.totalorder %s1706_s21, 1  ;;  %p318_p1 = scmp.lt.s32.totalorder %s1706_s21, 3 }
   0x6   : > { %p2061_p2 = scmp.eq.s32.totalorder %s1791_s24, 0  ;;  %s1709_s26 = smov [#allocation2]  }
   0x7   : > { %p1798_p3 = pnand %p1308_p0, %p318_p1  ;;  %s346_s27 = sshll.u32 %s1709_s26, 4  ;;  %s1804_s27 = int_to_ptr.vmem [resolvable:$true] %s346_s27 }
   0x8   : > { %s1710_s29 = smov [#allocation6]   ;;  %s1576_s15 = scalar_lea.hbm %s2055_s8, 2048 }
   0x9   : > { %s2064_s25 = scalar_select %p1798_p3, 1, 0 }
   0xa   : > { %p1481_p4 = pneg %p1798_p3  ;;  %s372_s30 = sshll.u32 %s1710_s29, 4  ;;  %s1812_s30 = int_to_ptr.vmem [resolvable:$true] %s372_s30 }
   0xb   : > { %p1577_p6 = scmp.ne.s32.totalorder %s2055_s8, %s1576_s15  ;;  %p1583_p10 = scmp.lt.u32.totalorder %s1576_s15, %s2055_s8 }
   0xc   : > { %p1808_p5 = pnand %p2061_p2, %p1481_p4 }
   0xe   : > { %p1822_p7 = pneg %p1808_p5 }
  0x10   : > { %p1579_p8 = pnand %p1822_p7, %p1577_p6 }
  0x12   : > { %p1580_p9 = pneg %p1579_p8 }
  0x14   : > { %p1585_p11 = pnand %p1583_p10, %p1580_p9 }
  0x16   : > { %1588 = shalt.err (!%p1585_p11)
}
  0x17   : > { %s1589_s22 = scalar_lea.vmem %s1796_s23, 2048  ;;  %p1597_p1 = scmp.lt.s32.totalorder %s1796_s23, %s1796_s23 }
  0x18   : > { %p1590_p12 = scmp.ne.s32.totalorder %s1796_s23, %s1589_s22  ;;  %p1598_p4 = scmp.lt.s32.totalorder %s1589_s22, %s1589_s22 }
  0x1a   : > { %p1592_p13 = pnand %p1590_p12, %p1822_p7  ;;  %p1599_p6 = por %p1598_p4, %p1597_p1 }
  0x1c   : > { %p1593_p0 = pneg %p1592_p13 }
  0x1e   : > { %p1600_p8 = pnand %p1599_p6, %p1593_p0 }
  0x20   : > { %1603 = shalt.err (!%p1600_p8)
}
  0x21   : > { %s1711_s26 = smov 128   ;;  %s1712_s29 = smov 8  }
  0x22   : > { %1487 = dma.hbm_to_vmem [thread:$0]  (!%p1808_p5), %s2055_s8, 2048, %s1796_s23, [#allocation5], %s1711_s26, %s1711_s26, %s1712_s29  }
  0x23   : > { %s1604_s17 = scalar_lea.hbm %s2054_s7, 16 }
  0x24   : > { %p1605_p9 = scmp.ne.s32.totalorder %s2054_s7, %s1604_s17  ;;  %p1611_p12 = scmp.lt.u32.totalorder %s1604_s17, %s2054_s7 }
  0x26   : > { %p1607_p10 = pnand %p1605_p9, %p1822_p7 }
  0x28   : > { %p1608_p11 = pneg %p1607_p10 }
  0x2a   : > { %p1613_p13 = pnand %p1611_p12, %p1608_p11 }
  0x2c   : > { %1616 = shalt.err (!%p1613_p13)
}
  0x2d   : > { %s1617_s23 = scalar_lea.vmem %s1804_s27, 16  ;;  %s1624_s26 = scalar_lea.vmem %s1804_s27, 32 }
  0x2e   : > { %p1618_p0 = scmp.ne.s32.totalorder %s1804_s27, %s1617_s23  ;;  %p1625_p6 = scmp.lt.s32.totalorder %s1804_s27, %s1804_s27 }
  0x2f   : > { %p1626_p8 = scmp.lt.s32.totalorder %s1624_s26, %s1617_s23 }
  0x30   : > { %p1620_p1 = pnand %p1618_p0, %p1822_p7 }
  0x31   : > { %p1627_p9 = por %p1626_p8, %p1625_p6 }
  0x32   : > { %p1621_p4 = pneg %p1620_p1 }
  0x34   : > { %p1628_p10 = pnand %p1627_p9, %p1621_p4 }
  0x36   : > { %1631 = shalt.err (!%p1628_p10)
}
  0x37   : > { %1484 = dma.hbm_to_vmem [thread:$0]  (!%p1808_p5), %s2054_s7, 16, %s1804_s27, [#allocation3]  }
  0x38   : > { %s1632_s15 = scalar_lea.hbm %s2057_s10, 1024 }
  0x39   : > { %p1633_p11 = scmp.ne.s32.totalorder %s2057_s10, %s1632_s15  ;;  %p1639_p0 = scmp.lt.u32.totalorder %s1632_s15, %s2057_s10 }
  0x3b   : > { %p1635_p12 = pnand %p1633_p11, %p1822_p7 }
  0x3d   : > { %p1636_p13 = pneg %p1635_p12 }
  0x3f   : > { %p1641_p1 = pnand %p1639_p0, %p1636_p13 }
  0x41   : > { %1644 = shalt.err (!%p1641_p1)
}
  0x42   : > { %s1645_s27 = scalar_lea.vmem %s1812_s30, 1024  ;;  %p1653_p9 = scmp.lt.s32.totalorder %s1812_s30, %s1812_s30 }
  0x43   : > { %p1646_p4 = scmp.ne.s32.totalorder %s1812_s30, %s1645_s27  ;;  %p1654_p10 = scmp.lt.s32.totalorder %s1645_s27, %s1645_s27 }
  0x45   : > { %p1648_p6 = pnand %p1646_p4, %p1822_p7  ;;  %p1655_p11 = por %p1654_p10, %p1653_p9 }
  0x47   : > { %p1649_p8 = pneg %p1648_p6 }
  0x49   : > { %p1656_p12 = pnand %p1655_p11, %p1649_p8 }
  0x4b   : > { %1659 = shalt.err (!%p1656_p12)
}
  0x4c   : > { %s1713_s22 = smov 64   ;;  %s1714_s23 = smov 4  }
  0x4d   : > { %1490 = dma.hbm_to_vmem [thread:$0]  (!%p1808_p5), %s2057_s10, 1024, %s1812_s30, [#allocation5], %s1713_s22, %s1713_s22, %s1714_s23  }
  0x4e   : > { %s1715_s29 = smov [#allocation7]   ;;  %s1660_s16 = scalar_lea.hbm %s2058_s11, 16 }
  0x4f   : > { %s386_s13 = sshll.u32 %s1715_s29, 4  ;;  %p1661_p13 = scmp.ne.s32.totalorder %s2058_s11, %s1660_s16  ;;  %s387_s13 = int_to_ptr.vmem [resolvable:$true] %s386_s13 }
  0x50   : > { %p1667_p4 = scmp.lt.u32.totalorder %s1660_s16, %s2058_s11 }
  0x51   : > { %p1663_p0 = pnand %p1661_p13, %p1822_p7 }
  0x53   : > { %p1664_p1 = pneg %p1663_p0 }
  0x55   : > { %p1669_p6 = pnand %p1667_p4, %p1664_p1 }
  0x57   : > { %1672 = shalt.err (!%p1669_p6)
}
  0x58   : > { %s1673_s30 = scalar_lea.vmem %s387_s13, 16  ;;  %s1680_s22 = scalar_lea.vmem %s387_s13, 32 }
  0x59   : > { %p1674_p8 = scmp.ne.s32.totalorder %s387_s13, %s1673_s30  ;;  %p1681_p11 = scmp.lt.s32.totalorder %s387_s13, %s387_s13 }
  0x5a   : > { %p1682_p12 = scmp.lt.s32.totalorder %s1680_s22, %s1673_s30 }
  0x5b   : > { %p1676_p9 = pnand %p1674_p8, %p1822_p7 }
  0x5c   : > { %p1683_p2 = por %p1682_p12, %p1681_p11 }
  0x5d   : > { %p1677_p10 = pneg %p1676_p9 }
  0x5f   : > { %p1684_p3 = pnand %p1683_p2, %p1677_p10 }
  0x61   : > { %1687 = shalt.err (!%p1684_p3)
}
  0x62   : > { %1493 = dma.hbm_to_vmem [thread:$0]  (!%p1808_p5), %s2058_s11, 16, %s387_s13, [#allocation8]  }
  0x63   : > { %p2067_p13 = scmp.ne.s32.totalorder %s2064_s25, 0 }
  0x64   : > { %p2068_p0 = scmp.eq.s32.totalorder (!%p2067_p13), %s1791_s24, 0 }
  0x65   : > { %414 = sbr.rel (%p2067_p13) target bundleno = 1740 (0x6cc), region = 68 }
  0x6c   : > { %1693 = dma.done.wait (%p2068_p0), [#allocation3], 16   ;;  %p2069_p7 = pmov %p2068_p0 }
  0x6d   : > { %p2070_p1 = pmov %p2068_p0 }
  0x6e   : > { %1695 = vsyncadd (%p2069_p7), [#allocation3], 4294967280 }
  0x6f   : > { %1697 = dma.done.wait (%p2070_p1), [#allocation5], 3072   ;;  %p2071_p2 = pmov %p2068_p0 }
  0x70   : > { %p2072_p3 = pmov %p2068_p0 }
  0x71   : > { %1699 = vsyncadd (%p2071_p2), [#allocation5], 4294964224 }
  0x72   : > { %1701 = dma.done.wait (%p2072_p3), [#allocation8], 16   ;;  %p2073_p5 = pmov %p2068_p0 }
  0x73   : > { %p471_p4 = scmp.lt.s32.totalorder %s1791_s24, 1  ;;  %v1522_v3 = vld [vmem:[#allocation4 + $0x4] ss:$8 sps:$4 sm:$0xff]   ;;  %v1525_v5 = vld [vmem:[#allocation4] ss:$8 sps:$4 sm:$0xff]   ;;  %v1716_v6 = vmov 0.0  }
  0x74   : > { %1703 = vsyncadd (%p2073_p5), [#allocation8], 4294967280  ;;  %v1524_v4 = vld [vmem:[%s2053_s6] sm:$0xff]   ;;  %1397 = vmatprep.subr.bf16.mxu0 %v1716_v6  ;;  %777 = vmatprep.subr.bf16.mxu1 %v1522_v3  ;;  %v1528_v20 = vld [vmem:[%s2053_s6 + $0x8] sm:$0xff]   ;;  %vm1717_vm0 = vmmov 0   ;;  %v1718_v32 = vmov 0  }
  0x75   : > { %s2076_s24 = smov (!%p471_p4, %s1791_s24), 1  ;;  %v1526_v7 = vld [vmem:[#allocation4 + $0x14] ss:$8 sps:$4 sm:$0xff]   ;;  %1398 = vmatpush3.bf16.msra.mxu0 %v1524_v4  ;;  %778 = vmatpush1.bf16.msra.mxu1 %v1525_v5  ;;  %v1529_v21 = vld [vmem:[#allocation4 + $0x10] ss:$8 sps:$4 sm:$0xff]   ;;  %v1544_v33 = vld [vmem:[%s2053_s6 + $0x28] sm:$0xff]   ;;  %v687_v4 = vlaneseq }
  0x76   : > { %s1369_s25 = sshll.u32 %s2076_s24, 4  ;;  %s1319_s28 = sshll.u32 %s2076_s24, 3  ;;  %1399 = vmatprep.subr.bf16.mxu0 %v1716_v6  ;;  %779 = vmatprep.subr.bf16.mxu1 %v1526_v7  ;;  %v1530_v22 = vld [vmem:[#allocation4 + $0x24] ss:$8 sps:$4 sm:$0xff]   ;;  %v1533_v24 = vld [vmem:[#allocation4 + $0x20] ss:$8 sps:$4 sm:$0xff]  }
  0x77   : > { %s479_s29 = scalar_lea.vmem %s2048_s1, %s1369_s25  ;;  %s474_s15 = scalar_lea.vmem %s2047_s0, %s1319_s28  ;;  %v1532_v23 = vld [vmem:[%s2053_s6 + $0x10] sm:$0xff]   ;;  %v1536_v26 = vld [vmem:[%s2053_s6 + $0x18] sm:$0xff]   ;;  %v1540_v29 = vld [vmem:[%s2053_s6 + $0x20] sm:$0xff]   ;;  %1413 = vmatprep.mubr.msk.bf16.mxu0 %vm1717_vm0, %v1716_v6  ;;  %809 = vmatprep.mubr.bf16.mxu1 %v1718_v32  ;;  %v688_v5 = vshrl.u32 %v687_v4, 7  ;;  %vm839_vm1 = vcmask 523264   ;;  %vm887_vm2 = vcmask 130048  }
  0x78   : > { %v514_v0 = vld [vmem:[%s479_s29] sm:$0xff]  ;;  %v515_v1 = vld [vmem:[%s479_s29 + $0x8] sm:$0xff]  ;;  %v1537_v27 = vld [vmem:[#allocation4 + $0x30] ss:$8 sps:$4 sm:$0xff]   ;;  %s1719_s18 = smov 64   ;;  %s483_s13 = scalar_lea.vmem %s2059_s12, %s1319_s28 }
  0x79   : > { %v485_v2 = vld [vmem:[%s474_s15] sm:$0xff]  ;;  %518 = vadd.xlane.f32.xlu0 %v514_v0  ;;  %1400 = vmatpush3.bf16.msra.mxu0 %v1528_v20  ;;  %v1545_v34 = vld [vmem:[#allocation4 + $0x50] ss:$8 sps:$4 sm:$0xff]   ;;  %v689_v7 = vsub.s32 0, %v688_v5  ;;  %v1555_v4 = vld [vmem:[#allocation6 + $0x8] sm:$0xff]  }
  0x7a   : > { %488 = vadd.xlane.f32.xlu1 %v485_v2  ;;  %780 = vmatpush1.bf16.msra.mxu1 %v1529_v21  ;;  %v1534_v25 = vld [vmem:[#allocation4 + $0x34] ss:$8 sps:$4 sm:$0xff]   ;;  %v1538_v28 = vld [vmem:[#allocation4 + $0x44] ss:$8 sps:$4 sm:$0xff]   ;;  %v1541_v30 = vld [vmem:[#allocation4 + $0x40] ss:$8 sps:$4 sm:$0xff]  }
  0x7b   : > { %1401 = vmatprep.subr.bf16.mxu0 %v1716_v6  ;;  %781 = vmatprep.subr.bf16.mxu1 %v1530_v22  ;;  %v1542_v31 = vld [vmem:[#allocation4 + $0x54] ss:$8 sps:$4 sm:$0xff]   ;;  %v1546_v35 = vld [vmem:[#allocation4 + $0x64] ss:$8 sps:$4 sm:$0xff]   ;;  %v1549_v37 = vld [vmem:[#allocation4 + $0x60] ss:$8 sps:$4 sm:$0xff]  }
  0x7c   : > { %v1548_v36 = vld [vmem:[%s2053_s6 + $0x30] sm:$0xff]   ;;  %v1552_v39 = vld [vmem:[%s2053_s6 + $0x38] sm:$0xff]   ;;  %v1325_v52 = vld [vmem:[%s2051_s4] ss:$0 sm:$0xff] }
  0x7d   : > { %520 = vadd.xlane.f32.xlu0 %v515_v1  ;;  %1402 = vmatpush3.bf16.msra.mxu0 %v1532_v23  ;;  %v1550_v38 = vld [vmem:[#allocation4 + $0x74] ss:$8 sps:$4 sm:$0xff]   ;;  %v1553_v40 = vld [vmem:[#allocation4 + $0x70] ss:$8 sps:$4 sm:$0xff]  }
  0x7e   : > { %782 = vmatpush1.bf16.msra.mxu1 %v1533_v24  ;;  %1403 = vmatprep.subr.bf16.mxu0 %v1716_v6  ;;  %v1323_v55 = vld [vmem:[%s2049_s2] ss:$0 sm:$0xff] }
  0x7f   : > { %783 = vmatprep.subr.bf16.mxu1 %v1534_v25  ;;  %v1326_v59 = vld [vmem:[%s2052_s5] ss:$0 sm:$0xff] }
  0x80   : > { %v1324_v60 = vld [vmem:[%s2050_s3] ss:$0 sm:$0xff] }
  0x81   : > { %1404 = vmatpush3.bf16.msra.mxu0 %v1536_v26 }
  0x82   : > { %784 = vmatpush1.bf16.msra.mxu1 %v1537_v27  ;;  %1405 = vmatprep.subr.bf16.mxu0 %v1716_v6 }
  0x83   : > { %785 = vmatprep.subr.bf16.mxu1 %v1538_v28 }
  0x85   : > { %1406 = vmatpush3.bf16.msra.mxu0 %v1540_v29 }
  0x86   : > { %786 = vmatpush1.bf16.msra.mxu1 %v1541_v30  ;;  %1407 = vmatprep.subr.bf16.mxu0 %v1716_v6 }
  0x87   : > { %787 = vmatprep.subr.bf16.mxu1 %v1542_v31 }
  0x89   : > { %1408 = vmatpush3.bf16.msra.mxu0 %v1544_v33 }
  0x8a   : > { %788 = vmatpush1.bf16.msra.mxu1 %v1545_v34  ;;  %1409 = vmatprep.subr.bf16.mxu0 %v1716_v6 }
  0x8b   : > { %789 = vmatprep.subr.bf16.mxu1 %v1546_v35 }
  0x8d   : > { %1410 = vmatpush3.bf16.msra.mxu0 %v1548_v36 }
  0x8e   : > { %790 = vmatpush1.bf16.msra.mxu1 %v1549_v37  ;;  %1411 = vmatprep.subr.bf16.mxu0 %v1716_v6 }
  0x8f   : > { %791 = vmatprep.subr.bf16.mxu1 %v1550_v38 }
  0x91   : > { %1412 = vmatpush3.bf16.msra.mxu0 %v1552_v39 }
  0x92   : > { %792 = vmatpush1.bf16.msra.mxu1 %v1553_v40  ;;  %1417 = vmatprep.subr.bf16.mxu0 %v1716_v6 }
  0x93   : > { %1423 = vmatprep.subr.bf16.mxu1 %v1716_v6 }
 0x106   : > { %v519_v8 = vpop.xlane.xlu0 %518 }
 0x107   : > { %v489_v9 = vpop.xlane.xlu1 %488  ;;  %v522_v10 = vmul.f32 0.0078125, %v519_v8  ;;  %v685_v8 = vld [vmem:[%s2056_s9] sm:$0x3] }
 0x108   : > { %v491_v11 = vmul.f32 0.0078125, %v489_v9  ;;  %v693_v9 = vsub.s32 1, %v688_v5  ;;  %v1556_v5 = vld [vmem:[#allocation6 + $0x10] sm:$0xff]  }
 0x109   : > { %v1941_v12 = vsub.f32 %v514_v0, %v522_v10  ;;  %v1327_v10 = vld [vmem:[#allocation2] ss:$0 sm:$0xff] }
 0x10a   : > { %v1943_v13 = vsub.f32 %v485_v2, %v491_v11  ;;  %v521_v14 = vpop.xlane.xlu0 %520  ;;  %v690_v11 = vrot.slane %v685_v8, %v689_v7  ;;  %v1557_v7 = vld [vmem:[#allocation6 + $0x18] sm:$0xff]  }
 0x10b   : > { %v523_v15 = vmul.f32 0.0078125, %v521_v14  ;;  %v526_v16 = vmul.f32 %v1941_v12, %v1941_v12 }
 0x10c   : > { %v493_v18 = vmul.f32 %v1943_v13, %v1943_v13 }
 0x10d   : > { %v1947_v17 = vsub.f32 %v515_v1, %v523_v15  ;;  %528 = vadd.xlane.f32.xlu1 %v526_v16 }
 0x10f   : > { %v527_v19 = vmul.f32 %v1947_v17, %v1947_v17 }
 0x111   : > { %530 = vadd.xlane.f32.xlu0 %v527_v19  ;;  %494 = vadd.xlane.f32.xlu1 %v493_v18 }
 0x19a   : > { %v529_v41 = vpop.xlane.xlu1 %528 }
 0x19b   : > { %v532_v42 = vmul.f32 0.0078125, %v529_v41 }
 0x19d   : > { %v534_v43 = vadd.f32 1e-05, %v532_v42 }
 0x19e   : > { %v531_v44 = vpop.xlane.xlu0 %530  ;;  %v495_v45 = vpop.xlane.xlu1 %494 }
 0x19f   : > { %1562 = vrsqrt.f32 %v534_v43  ;;  %v533_v46 = vmul.f32 0.0078125, %v531_v44  ;;  %v496_v47 = vmul.f32 0.0078125, %v495_v45 }
 0x1a1   : > { %v535_v48 = vadd.f32 1e-05, %v533_v46  ;;  %v497_v49 = vadd.f32 1e-05, %v496_v47 }
 0x1a3   : > { %1564 = vrsqrt.f32 %v535_v48 }
 0x1a4   : > { %1566 = vrsqrt.f32 %v497_v49 }
 0x1a9   : > { %v1563_v50 = vpop.eup %1562 }
 0x1aa   : > { %v538_v51 = vmul.f32 %v1563_v50, %v1941_v12 }
 0x1ac   : > { %v546_v57 = vmul.f32 %v1325_v52, %v538_v51 }
 0x1ad   : > { %v1565_v53 = vpop.eup %1564 }
 0x1ae   : > { %v1567_v54 = vpop.eup %1566  ;;  %v539_v56 = vmul.f32 %v1565_v53, %v1947_v17  ;;  %v554_v63 = vadd.f32 %v1326_v59, %v546_v57 }
 0x1af   : > { %v499_v58 = vmul.f32 %v1567_v54, %v1943_v13  ;;  %v694_v13 = vrot.slane %v685_v8, %v693_v9  ;;  %v1561_v8 = vld [vmem:[#allocation6 + $0x38] sm:$0xff]  }
 0x1b0   : > { %v547_v61 = vmul.f32 %v1325_v52, %v539_v56 }
 0x1b1   : > { %v506_v62 = vmul.f32 %v1323_v55, %v499_v58 }
 0x1b2   : > { %v555_v0 = vadd.f32 %v1326_v59, %v547_v61  ;;  %v1559_v61 = vld [vmem:[#allocation6 + $0x28] sm:$0xff]  }
 0x1b3   : > { %v513_v1 = vadd.f32 %v1324_v60, %v506_v62  ;;  %v1558_v60 = vld [vmem:[#allocation6 + $0x20] sm:$0xff]   ;;  %v1560_v62 = vld [vmem:[#allocation6 + $0x30] sm:$0xff]  }
 0x1b4   : > { %v668_v2 = vpack.c.bf16 %v555_v0, %v554_v63 }
 0x1b5   : > { %v556_v3 = vpack.c.bf16 %v513_v1, %v513_v1 }
 0x1b6   : > { %810 = vmatmul.mubr.bf16.vlgmr.msra.gmra.mrb[0].mxu1 %v668_v2  ;;  %v1554_v2 = vld [vmem:[#allocation6] sm:$0xff]  }
 0x1b7   : > { %1414 = vmatmul.mubr.bf16.vlgmr.msra.gmra.mrb[0].mxu0 %v556_v3  ;;  %1425 = vmatprep.mubr.msk.bf16.mxu1 %vm1717_vm0, %v1716_v6 }
 0x1b8   : > { %1419 = vmatprep.mubr.msk.bf16.mxu0 %vm1717_vm0, %v1716_v6 }
 0x289   : > { %v811_v12 = vpop.f32.mrb[0].mxu1 }
 0x28a   : > { %v662_v14 = vpop.f32.mrb[0].mxu0  ;;  %v813_v15 = vpop.f32.mrb[1].mxu1  ;;  %v812_v19 = vadd.f32 %v811_v12, %v690_v11 }
 0x28b   : > { %v663_v16 = vadd.f32 %v1327_v10, %v662_v14  ;;  %v1415_v17 = vpop.f32.mrb[1].mxu0  ;;  %v815_v18 = vpop.f32.mrb[2].mxu1  ;;  %v814_v24 = vadd.f32 %v813_v15, %v694_v13 }
 0x28c   : > { %v665_v20 = vpop.f32.mrb[2].mxu0  ;;  %v816_v21 = vadd.f32 %v815_v18, %v690_v11  ;;  %v817_v22 = vpop.f32.mrb[3].mxu1 }
 0x28d   : > { %v836_v23 = vpack.c.bf16 %v663_v16, %v663_v16  ;;  %v1416_v25 = vpop.f32.mrb[3].mxu0  ;;  %v818_v26 = vadd.f32 %v817_v22, %v694_v13 }
 0x28e   : > { %v837_v27 = vpack.c.bf16 %v816_v21, %v812_v19 }
 0x28f   : > { %v838_v28 = vpack.c.bf16 %v818_v26, %v814_v24  ;;  %945 = vrot.lane.b32.xlu1 %v836_v23, %s1719_s18 }
 0x290   : > { %948 = vrot.lane.b32.xlu0 %v837_v27, %s1719_s18  ;;  %v844_v29 = vsel %vm839_vm1, %v837_v27, 0 }
 0x291   : > { %1418 = vmatpush3.bf16.xpose.msra.mxu0 %v844_v29  ;;  %1424 = vmatpush3.bf16.msra.mxu1 %v838_v28 }
 0x292   : > { %1429 = vmatprep.subr.bf16.mxu0 %v1716_v6  ;;  %1435 = vmatprep.subr.bf16.mxu1 %v1716_v6 }
 0x298   : > { %1420 = vmatmul.mubr.msk.bf16.vlgmr.msra.gmra.mrb[4].mxu0 %vm839_vm1, %v836_v23  ;;  %v1366_v23 = vld [vmem:[#allocation7] ss:$0 sm:$0xff] }
 0x299   : > { %1431 = vmatprep.mubr.msk.bf16.mxu0 %vm1717_vm0, %v1716_v6 }
 0x301   : > { %v946_v32 = vpop.permute.xlu1 %945 }
 0x302   : > { %v949_v30 = vpop.permute.xlu0 %948 }
 0x303   : > { %v954_v31 = vsel %vm839_vm1, %v949_v30, 0 }
 0x304   : > { %1430 = vmatpush3.bf16.xpose.msra.mxu0 %v954_v31 }
 0x305   : > { %1441 = vmatprep.subr.bf16.mxu0 %v1716_v6 }
 0x30b   : > { %1432 = vmatmul.mubr.msk.bf16.vlgmr.msra.gmra.mrb[8].mxu0 %vm839_vm1, %v946_v32 }
 0x30c   : > { %1449 = vmatprep.mubr.msk.bf16.mxu0 %vm1717_vm0, %v1716_v6  ;;  %1442 = vmatpush3.bf16.msra.mxu0 %v1558_v60 }
 0x30d   : > { %1443 = vmatprep.subr.bf16.mxu0 %v1716_v6 }
 0x310   : > { %1444 = vmatpush3.bf16.msra.mxu0 %v1559_v61 }
 0x311   : > { %1445 = vmatprep.subr.bf16.mxu0 %v1716_v6 }
 0x314   : > { %1446 = vmatpush3.bf16.msra.mxu0 %v1560_v62 }
 0x315   : > { %1447 = vmatprep.subr.bf16.mxu0 %v1716_v6 }
 0x318   : > { %1448 = vmatpush3.bf16.msra.mxu0 %v1561_v8 }
 0x36b   : > { %v880_v33 = vpop.f32.mrb[4].mxu0 }
 0x36c   : > { %v886_v34 = vmul.f32 0.125, %v880_v33  ;;  %v1421_v35 = vpop.f32.mrb[5].mxu0 }
 0x36d   : > { %v883_v36 = vpop.f32.mrb[6].mxu0 }
 0x36e   : > { %v1422_v37 = vpop.f32.mrb[7].mxu0  ;;  %v888_v38 = vsel %vm887_vm2, %v886_v34, -inf }
 0x36f   : > { %889 = vmax.xlane.f32.xlu1 %v888_v38 }
 0x3de   : > { %v990_v39 = vpop.f32.mrb[8].mxu0 }
 0x3df   : > { %v996_v40 = vmul.f32 0.125, %v990_v39  ;;  %v1433_v41 = vpop.f32.mrb[9].mxu0 }
 0x3e0   : > { %v993_v42 = vpop.f32.mrb[10].mxu0 }
 0x3e1   : > { %v1434_v43 = vpop.f32.mrb[11].mxu0  ;;  %v997_v44 = vsel %vm887_vm2, %v996_v40, -inf }
 0x3e2   : > { %998 = vmax.xlane.f32.xlu0 %v997_v44 }
 0x3fc   : > { %v890_v45 = vpop.xlane.xlu1 %889 }
 0x3fd   : > { %v891_v46 = vsub.f32 %v886_v34, %v890_v45 }
 0x3ff   : > { %v892_v47 = vmul.f32 1.442695, %v891_v46 }
 0x401   : > { %1568 = vpow2.f32 %v892_v47 }
 0x40b   : > { %v1569_v48 = vpop.eup %1568 }
 0x40c   : > { %v894_v49 = vsel %vm887_vm2, %v1569_v48, 0.0 }
 0x40d   : > { %895 = vadd.xlane.f32.xlu0 %v894_v49 }
 0x423   : > { %1010 = vrot.lane.b32.xlu0 %v838_v28, %s1719_s18 }
 0x46f   : > { %v999_v50 = vpop.xlane.xlu0 %998 }
 0x470   : > { %v1000_v51 = vsub.f32 %v996_v40, %v999_v50 }
 0x472   : > { %v1001_v52 = vmul.f32 1.442695, %v1000_v51 }
 0x474   : > { %1570 = vpow2.f32 %v1001_v52 }
 0x47e   : > { %v1571_v53 = vpop.eup %1570 }
 0x47f   : > { %v1003_v54 = vsel %vm887_vm2, %v1571_v53, 0.0 }
 0x480   : > { %1004 = vadd.xlane.f32.xlu1 %v1003_v54 }
 0x49a   : > { %v896_v55 = vpop.xlane.xlu0 %895 }
 0x49b   : > { %1572 = vrcp.f32 %v896_v55 }
 0x49e   : > { %v1011_v59 = vpop.permute.xlu0 %1010 }
 0x4a5   : > { %v1573_v56 = vpop.eup %1572 }
 0x4a6   : > { %v898_v57 = vmul.f32 %v1573_v56, %v1569_v48 }
 0x4a8   : > { %v899_v58 = vpack.c.bf16 %v898_v57, %v898_v57 }
 0x4aa   : > { %1426 = vmatmul.mubr.msk.bf16.vlgmr.msra.gmra.mrb[4].mxu1 %vm887_vm2, %v899_v58 }
 0x4ab   : > { %1436 = vmatpush3.bf16.msra.mxu1 %v1011_v59  ;;  %1437 = vmatprep.mubr.msk.bf16.mxu1 %vm1717_vm0, %v1716_v6 }
 0x4ac   : > { %1453 = vmatprep.subr.bf16.mxu1 %v1716_v6 }
 0x50d   : > { %v1005_v63 = vpop.xlane.xlu1 %1004 }
 0x50e   : > { %1574 = vrcp.f32 %v1005_v63 }
 0x518   : > { %v1575_v0 = vpop.eup %1574 }
 0x519   : > { %v1007_v1 = vmul.f32 %v1575_v0, %v1571_v53 }
 0x51b   : > { %v1008_v3 = vpack.c.bf16 %v1007_v1, %v1007_v1 }
 0x51d   : > { %1438 = vmatmul.mubr.msk.bf16.vlgmr.msra.gmra.mrb[8].mxu1 %vm887_vm2, %v1008_v3 }
 0x51e   : > { %1454 = vmatpush3.bf16.msra.mxu1 %v1554_v2  ;;  %1461 = vmatprep.mubr.msk.bf16.mxu1 %vm1717_vm0, %v1716_v6 }
 0x51f   : > { %1455 = vmatprep.subr.bf16.mxu1 %v1716_v6 }
 0x522   : > { %1456 = vmatpush3.bf16.msra.mxu1 %v1555_v4 }
 0x523   : > { %1457 = vmatprep.subr.bf16.mxu1 %v1716_v6 }
 0x526   : > { %1458 = vmatpush3.bf16.msra.mxu1 %v1556_v5 }
 0x527   : > { %1459 = vmatprep.subr.bf16.mxu1 %v1716_v6 }
 0x52a   : > { %1460 = vmatpush3.bf16.msra.mxu1 %v1557_v7 }
 0x57d   : > { %v937_v9 = vpop.f32.mrb[4].mxu1 }
 0x57e   : > { %v943_v10 = vpack.c.bf16 %v937_v9, %v937_v9  ;;  %v1427_v11 = vpop.f32.mrb[5].mxu1 }
 0x57f   : > { %v940_v12 = vpop.f32.mrb[6].mxu1 }
 0x580   : > { %v1428_v13 = vpop.f32.mrb[7].mxu1  ;;  %1462 = vmatmul.mubr.msk.bf16.vlgmr.msra.gmra.mrb[12].mxu1 %vm839_vm1, %v943_v10 }
 0x5f0   : > { %v1050_v14 = vpop.f32.mrb[8].mxu1 }
 0x5f1   : > { %v1056_v15 = vpack.c.bf16 %v1050_v14, %v1050_v14  ;;  %v1439_v16 = vpop.f32.mrb[9].mxu1 }
 0x5f2   : > { %v1053_v17 = vpop.f32.mrb[10].mxu1 }
 0x5f3   : > { %v1440_v18 = vpop.f32.mrb[11].mxu1  ;;  %1450 = vmatmul.mubr.msk.bf16.vlgmr.msra.gmra.mrb[12].mxu0 %vm839_vm1, %v1056_v15 }
 0x653   : > { %v1185_v19 = vpop.f32.mrb[12].mxu1 }
 0x654   : > { %v1463_v6 = vpop.f32.mrb[13].mxu1 }
 0x655   : > { %v1188_v20 = vpop.f32.mrb[14].mxu1 }
 0x656   : > { %v1464_v21 = vpop.f32.mrb[15].mxu1 }
 0x6c6   : > { %v1118_v22 = vpop.f32.mrb[12].mxu0 }
 0x6c7   : > { %v1186_v24 = vadd.f32 %v1185_v19, %v1118_v22  ;;  %v1451_v25 = vpop.f32.mrb[13].mxu0 }
 0x6c8   : > { %v1121_v26 = vpop.f32.mrb[14].mxu0 }
 0x6c9   : > { %v1198_v27 = vadd.f32 %v1366_v23, %v1186_v24  ;;  %v1452_v28 = vpop.f32.mrb[15].mxu0 }
 0x6cb   : > { %1199 = vst [vmem:[%s483_s13] sm:$0xff] %v1198_v27 }
 0x6cc PF: > { %s2074_s14 = sld [smem:[#allocation12_spill]] }
 0x6d2   : > { %s25_s21 = sadd.s32 1, %s2074_s14  }
 0x6d3   : > { %p22_p6 = scmp.ge.s32.totalorder %s25_s21, 4  }
 0x6d5   :  { %24 = sbr.rel (!%p22_p6) target bundleno = 3 (0x3), region = 118 }
 0x6dc   :  { %1219 = vsyncpa [#allocation3], 1 }
 0x6dd   :  { %1221 = vsyncpa [#allocation3 + $0x1], 1 }
 0x6de   :  { %1222 = vsyncpa [#allocation5], 1 }
 0x6df   :  { %1223 = vsyncpa [#allocation8], 1 }

// kernel: mlm_forward.12
= control target key start
LH: loop header
LB: loop body
LE: loop exit
PB: predicated region body
PF: predicated region fallthrough
CT: control target
= control target key end

     0   :  { %v311_v2 = vmov 0.0   ;;  %vm312_vm0 = vmmov 0   ;;  %s404_s0 = inlined_call_operand.vmem [shape: f32[16,128], index: 0, kind: input, shape index: {}]   ;;  %s405_s3 = inlined_call_operand.vmem [shape: bf16[128,128], index: 3, kind: input, shape index: {}]   ;;  %s406_s1 = inlined_call_operand.vmem [shape: f32[1,128], index: 1, kind: input, shape index: {}]   ;;  %s407_s2 = inlined_call_operand.vmem [shape: f32[1,128], index: 2, kind: input, shape index: {}]   ;;  %s408_s4 = inlined_call_operand.vmem [shape: f32[1,128], index: 4, kind: input, shape index: {}]   ;;  %s409_s5 = inlined_call_operand.vmem [shape: f32[1,128], index: 5, kind: input, shape index: {}]   ;;  %s410_s6 = inlined_call_operand.vmem [shape: f32[1,128], index: 6, kind: input, shape index: {}]   ;;  %s411_s7 = inlined_call_operand.vmem [shape: f32[16,128], index: 7, kind: output, shape index: {}]  }
   0x1   :  { %v27_v0 = vld [vmem:[%s404_s0] sm:$0xff]  ;;  %v28_v1 = vld [vmem:[%s404_s0 + $0x8] sm:$0xff]  ;;  %269 = vmatprep.subr.bf16.mxu0 %v311_v2  ;;  %v293_v13 = vld [vmem:[%s405_s3 + $0x10] sm:$0xff]   ;;  %285 = vmatprep.mubr.msk.bf16.mxu0 %vm312_vm0, %v311_v2 }
   0x2   :  { %31 = vadd.xlane.f32.xlu0 %v27_v0  ;;  %v291_v3 = vld [vmem:[%s405_s3] sm:$0xff]   ;;  %v292_v12 = vld [vmem:[%s405_s3 + $0x8] sm:$0xff]   ;;  %v294_v14 = vld [vmem:[%s405_s3 + $0x18] sm:$0xff]  }
   0x3   :  { %270 = vmatpush3.bf16.msra.mxu0 %v291_v3  ;;  %v295_v15 = vld [vmem:[%s405_s3 + $0x20] sm:$0xff]   ;;  %v296_v16 = vld [vmem:[%s405_s3 + $0x28] sm:$0xff]   ;;  %v297_v17 = vld [vmem:[%s405_s3 + $0x30] sm:$0xff]  }
   0x4   :  { %271 = vmatprep.subr.bf16.mxu0 %v311_v2  ;;  %v298_v18 = vld [vmem:[%s405_s3 + $0x38] sm:$0xff]   ;;  %v247_v27 = vld [vmem:[%s406_s1] ss:$0 sm:$0xff] }
   0x5   :  { %v248_v31 = vld [vmem:[%s407_s2] ss:$0 sm:$0xff] }
   0x6   :  { %33 = vadd.xlane.f32.xlu0 %v28_v1  ;;  %v249_v36 = vld [vmem:[%s408_s4] ss:$0 sm:$0xff] }
   0x7   :  { %272 = vmatpush3.bf16.msra.mxu0 %v292_v12  ;;  %v258_v12 = vld [vmem:[%s409_s5] ss:$0 sm:$0xff] }
   0x8   :  { %273 = vmatprep.subr.bf16.mxu0 %v311_v2 }
   0xb   :  { %274 = vmatpush3.bf16.msra.mxu0 %v293_v13 }
   0xc   :  { %275 = vmatprep.subr.bf16.mxu0 %v311_v2 }
   0xf   :  { %276 = vmatpush3.bf16.msra.mxu0 %v294_v14 }
  0x10   :  { %277 = vmatprep.subr.bf16.mxu0 %v311_v2 }
  0x13   :  { %278 = vmatpush3.bf16.msra.mxu0 %v295_v15  ;;  %v259_v15 = vld [vmem:[%s410_s6] ss:$0 sm:$0xff] }
  0x14   :  { %279 = vmatprep.subr.bf16.mxu0 %v311_v2 }
  0x17   :  { %280 = vmatpush3.bf16.msra.mxu0 %v296_v16 }
  0x18   :  { %281 = vmatprep.subr.bf16.mxu0 %v311_v2 }
  0x1b   :  { %282 = vmatpush3.bf16.msra.mxu0 %v297_v17 }
  0x1c   :  { %283 = vmatprep.subr.bf16.mxu0 %v311_v2 }
  0x1f   :  { %284 = vmatpush3.bf16.msra.mxu0 %v298_v18 }
  0x8f   :  { %v32_v4 = vpop.xlane.xlu0 %31 }
  0x90   :  { %v36_v5 = vmul.f32 0.0078125, %v32_v4 }
  0x92   :  { %v38_v6 = vsub.f32 %v27_v0, %v36_v5 }
  0x93   :  { %v34_v7 = vpop.xlane.xlu0 %33 }
  0x94   :  { %v37_v8 = vmul.f32 0.0078125, %v34_v7  ;;  %v40_v9 = vmul.f32 %v38_v6, %v38_v6 }
  0x96   :  { %v39_v10 = vsub.f32 %v28_v1, %v37_v8  ;;  %42 = vadd.xlane.f32.xlu1 %v40_v9 }
  0x98   :  { %v41_v11 = vmul.f32 %v39_v10, %v39_v10 }
  0x9a   :  { %44 = vadd.xlane.f32.xlu1 %v41_v11 }
 0x123   :  { %v43_v19 = vpop.xlane.xlu1 %42 }
 0x124   :  { %v46_v20 = vmul.f32 0.0078125, %v43_v19 }
 0x126   :  { %v48_v21 = vadd.f32 1e-05, %v46_v20 }
 0x127   :  { %v45_v22 = vpop.xlane.xlu1 %44 }
 0x128   :  { %299 = vrsqrt.f32 %v48_v21  ;;  %v47_v23 = vmul.f32 0.0078125, %v45_v22 }
 0x12a   :  { %v49_v24 = vadd.f32 1e-05, %v47_v23 }
 0x12c   :  { %301 = vrsqrt.f32 %v49_v24 }
 0x132   :  { %v300_v25 = vpop.eup %299 }
 0x133   :  { %v52_v26 = vmul.f32 %v300_v25, %v38_v6 }
 0x135   :  { %v60_v30 = vmul.f32 %v247_v27, %v52_v26 }
 0x136   :  { %v302_v28 = vpop.eup %301 }
 0x137   :  { %v53_v29 = vmul.f32 %v302_v28, %v39_v10  ;;  %v68_v33 = vadd.f32 %v248_v31, %v60_v30 }
 0x139   :  { %v61_v32 = vmul.f32 %v247_v27, %v53_v29 }
 0x13b   :  { %v69_v34 = vadd.f32 %v248_v31, %v61_v32 }
 0x13d   :  { %v70_v35 = vpack.c.bf16 %v69_v34, %v68_v33 }
 0x13f   :  { %286 = vmatmul.mubr.bf16.vlgmr.msra.gmra.mrb[0].mxu0 %v70_v35 }
 0x212   :  { %v176_v37 = vpop.f32.mrb[0].mxu0 }
 0x213   :  { %v177_v38 = vadd.f32 %v249_v36, %v176_v37  ;;  %v287_v39 = vpop.f32.mrb[1].mxu0 }
 0x214   :  { %v179_v40 = vpop.f32.mrb[2].mxu0 }
 0x215   :  { %v185_v41 = vmul.f32 0.044715, %v177_v38  ;;  %v180_v42 = vadd.f32 %v249_v36, %v179_v40  ;;  %v288_v43 = vpop.f32.mrb[3].mxu0  ;;  %v183_v54 = vmul.f32 0.5, %v177_v38 }
 0x217   :  { %v186_v44 = vmul.f32 0.044715, %v180_v42  ;;  %v187_v45 = vmul.f32 %v185_v41, %v177_v38  ;;  %v184_v58 = vmul.f32 0.5, %v180_v42 }
 0x219   :  { %v189_v46 = vmul.f32 %v187_v45, %v177_v38  ;;  %v188_v47 = vmul.f32 %v186_v44, %v180_v42 }
 0x21b   :  { %v191_v48 = vadd.f32 %v189_v46, %v177_v38  ;;  %v190_v49 = vmul.f32 %v188_v47, %v180_v42 }
 0x21d   :  { %v193_v50 = vmul.f32 0.7978846, %v191_v48  ;;  %v192_v51 = vadd.f32 %v190_v49, %v180_v42 }
 0x21f   :  { %303 = vtanh.f32 %v193_v50  ;;  %v194_v52 = vmul.f32 0.7978846, %v192_v51 }
 0x221   :  { %305 = vtanh.f32 %v194_v52 }
 0x229   :  { %v304_v53 = vpop.eup %303 }
 0x22a   :  { %v197_v55 = vadd.f32 1.0, %v304_v53 }
 0x22b   :  { %v306_v56 = vpop.eup %305 }
 0x22c   :  { %v199_v57 = vmul.f32 %v197_v55, %v183_v54  ;;  %v198_v59 = vadd.f32 1.0, %v306_v56 }
 0x22e   :  { %203 = vadd.xlane.f32.xlu0 %v199_v57  ;;  %v200_v60 = vmul.f32 %v198_v59, %v184_v58 }
 0x230   :  { %205 = vadd.xlane.f32.xlu1 %v200_v60 }
 0x2bb   :  { %v204_v61 = vpop.xlane.xlu0 %203 }
 0x2bc   :  { %v207_v62 = vmul.f32 0.0078125, %v204_v61 }
 0x2bd   :  { %v206_v63 = vpop.xlane.xlu1 %205 }
 0x2be   :  { %v209_v0 = vsub.f32 %v199_v57, %v207_v62  ;;  %v208_v1 = vmul.f32 0.0078125, %v206_v63 }
 0x2c0   :  { %v210_v2 = vsub.f32 %v200_v60, %v208_v1  ;;  %v211_v3 = vmul.f32 %v209_v0, %v209_v0 }
 0x2c2   :  { %213 = vadd.xlane.f32.xlu0 %v211_v3  ;;  %v212_v4 = vmul.f32 %v210_v2, %v210_v2 }
 0x2c4   :  { %215 = vadd.xlane.f32.xlu1 %v212_v4 }
 0x34f   :  { %v214_v5 = vpop.xlane.xlu0 %213 }
 0x350   :  { %v217_v6 = vmul.f32 0.0078125, %v214_v5 }
 0x351   :  { %v216_v7 = vpop.xlane.xlu1 %215 }
 0x352   :  { %v219_v8 = vadd.f32 1e-05, %v217_v6  ;;  %v218_v9 = vmul.f32 0.0078125, %v216_v7 }
 0x354   :  { %307 = vrsqrt.f32 %v219_v8  ;;  %v220_v10 = vadd.f32 1e-05, %v218_v9 }
 0x356   :  { %309 = vrsqrt.f32 %v220_v10 }
 0x35e   :  { %v308_v11 = vpop.eup %307 }
 0x35f   :  { %v223_v13 = vmul.f32 %v308_v11, %v209_v0 }
 0x360   :  { %v310_v14 = vpop.eup %309 }
 0x361   :  { %v231_v16 = vmul.f32 %v258_v12, %v223_v13  ;;  %v224_v17 = vmul.f32 %v310_v14, %v210_v2 }
 0x363   :  { %v239_v18 = vadd.f32 %v259_v15, %v231_v16  ;;  %v232_v19 = vmul.f32 %v258_v12, %v224_v17 }
 0x365   :  { %241 = vst [vmem:[%s411_s7] sm:$0xff] %v239_v18  ;;  %v240_v20 = vadd.f32 %v259_v15, %v232_v19 }
 0x367   :  { %242 = vst [vmem:[%s411_s7 + $0x8] sm:$0xff] %v240_v20 }

// kernel: mlm_forward.13
= control target key start
LH: loop header
LB: loop body
LE: loop exit
PB: predicated region body
PF: predicated region fallthrough
CT: control target
= control target key end

     0   :  { %v451_v2 = vmov 0   ;;  %s592_s0 = inlined_call_operand.vmem [shape: f32[16,128], index: 0, kind: input, shape index: {}]   ;;  %s593_s1 = inlined_call_operand.vmem [shape: bf16[128,512], index: 1, kind: input, shape index: {}]   ;;  %s594_s2 = inlined_call_operand.vmem [shape: f32[1,512], index: 2, kind: input, shape index: {}]   ;;  %s595_s3 = inlined_call_operand.hbm [shape: f32[16,512], index: 3, kind: output, shape index: {}]  }
   0x1   :  { %v379_v0 = vld [vmem:[%s593_s1 + $0x4] ss:$16 sps:$4 sm:$0xff]   ;;  %v381_v1 = vld [vmem:[%s593_s1 + $0xc] ss:$16 sps:$4 sm:$0xff]   ;;  %265 = vmatprep.mubr.bf16.mxu0 %v451_v2  ;;  %308 = vmatprep.mubr.bf16.mxu1 %v451_v2  ;;  %v383_v3 = vld [vmem:[%s593_s1] ss:$16 sps:$4 sm:$0xff]  }
   0x2   :  { %233 = vmatprep.subr.bf16.mxu0 %v379_v0  ;;  %v384_v4 = vld [vmem:[%s593_s1 + $0x8] ss:$16 sps:$4 sm:$0xff]   ;;  %276 = vmatprep.subr.bf16.mxu1 %v381_v1  ;;  %v385_v5 = vld [vmem:[%s593_s1 + $0x24] ss:$16 sps:$4 sm:$0xff]   ;;  %v387_v6 = vld [vmem:[%s593_s1 + $0x2c] ss:$16 sps:$4 sm:$0xff]  }
   0x3   :  { %234 = vmatpush1.bf16.msra.mxu0 %v383_v3  ;;  %277 = vmatpush1.bf16.msra.mxu1 %v384_v4  ;;  %v389_v7 = vld [vmem:[%s593_s1 + $0x20] ss:$16 sps:$4 sm:$0xff]   ;;  %v390_v8 = vld [vmem:[%s593_s1 + $0x28] ss:$16 sps:$4 sm:$0xff]   ;;  %v391_v9 = vld [vmem:[%s593_s1 + $0x44] ss:$16 sps:$4 sm:$0xff]  }
   0x4   :  { %235 = vmatprep.subr.bf16.mxu0 %v385_v5  ;;  %278 = vmatprep.subr.bf16.mxu1 %v387_v6  ;;  %v393_v10 = vld [vmem:[%s593_s1 + $0x4c] ss:$16 sps:$4 sm:$0xff]   ;;  %v395_v11 = vld [vmem:[%s593_s1 + $0x40] ss:$16 sps:$4 sm:$0xff]   ;;  %v396_v12 = vld [vmem:[%s593_s1 + $0x48] ss:$16 sps:$4 sm:$0xff]  }
   0x5   :  { %v397_v13 = vld [vmem:[%s593_s1 + $0x64] ss:$16 sps:$4 sm:$0xff]   ;;  %v399_v14 = vld [vmem:[%s593_s1 + $0x6c] ss:$16 sps:$4 sm:$0xff]   ;;  %v401_v15 = vld [vmem:[%s593_s1 + $0x60] ss:$16 sps:$4 sm:$0xff]  }
   0x6   :  { %v402_v16 = vld [vmem:[%s593_s1 + $0x68] ss:$16 sps:$4 sm:$0xff]   ;;  %v403_v17 = vld [vmem:[%s593_s1 + $0x84] ss:$16 sps:$4 sm:$0xff]   ;;  %v405_v18 = vld [vmem:[%s593_s1 + $0x8c] ss:$16 sps:$4 sm:$0xff]  }
   0x7   :  { %236 = vmatpush1.bf16.msra.mxu0 %v389_v7  ;;  %279 = vmatpush1.bf16.msra.mxu1 %v390_v8  ;;  %v407_v19 = vld [vmem:[%s593_s1 + $0x80] ss:$16 sps:$4 sm:$0xff]   ;;  %v408_v20 = vld [vmem:[%s593_s1 + $0x88] ss:$16 sps:$4 sm:$0xff]   ;;  %v409_v21 = vld [vmem:[%s593_s1 + $0xa4] ss:$16 sps:$4 sm:$0xff]  }
   0x8   :  { %237 = vmatprep.subr.bf16.mxu0 %v391_v9  ;;  %280 = vmatprep.subr.bf16.mxu1 %v393_v10  ;;  %v411_v22 = vld [vmem:[%s593_s1 + $0xac] ss:$16 sps:$4 sm:$0xff]   ;;  %v413_v23 = vld [vmem:[%s593_s1 + $0xa0] ss:$16 sps:$4 sm:$0xff]   ;;  %v414_v24 = vld [vmem:[%s593_s1 + $0xa8] ss:$16 sps:$4 sm:$0xff]  }
   0x9   :  { %v415_v25 = vld [vmem:[%s593_s1 + $0xc4] ss:$16 sps:$4 sm:$0xff]   ;;  %v417_v26 = vld [vmem:[%s593_s1 + $0xcc] ss:$16 sps:$4 sm:$0xff]  }
   0xb   :  { %238 = vmatpush1.bf16.msra.mxu0 %v395_v11  ;;  %281 = vmatpush1.bf16.msra.mxu1 %v396_v12 }
   0xc   :  { %239 = vmatprep.subr.bf16.mxu0 %v397_v13  ;;  %282 = vmatprep.subr.bf16.mxu1 %v399_v14 }
   0xf   :  { %240 = vmatpush1.bf16.msra.mxu0 %v401_v15  ;;  %283 = vmatpush1.bf16.msra.mxu1 %v402_v16 }
  0x10   :  { %241 = vmatprep.subr.bf16.mxu0 %v403_v17  ;;  %284 = vmatprep.subr.bf16.mxu1 %v405_v18 }
  0x13   :  { %242 = vmatpush1.bf16.msra.mxu0 %v407_v19  ;;  %285 = vmatpush1.bf16.msra.mxu1 %v408_v20 }
  0x14   :  { %243 = vmatprep.subr.bf16.mxu0 %v409_v21  ;;  %286 = vmatprep.subr.bf16.mxu1 %v411_v22 }
  0x15   :  { %8 = vsyncpa [#allocation3], 0  ;;  %v419_v27 = vld [vmem:[%s593_s1 + $0xc0] ss:$16 sps:$4 sm:$0xff]   ;;  %v420_v28 = vld [vmem:[%s593_s1 + $0xc8] ss:$16 sps:$4 sm:$0xff]   ;;  %v53_v36 = vlaneseq }
  0x16   :  { %v421_v29 = vld [vmem:[%s593_s1 + $0xe4] ss:$16 sps:$4 sm:$0xff]   ;;  %v423_v30 = vld [vmem:[%s593_s1 + $0xec] ss:$16 sps:$4 sm:$0xff]   ;;  %v425_v31 = vld [vmem:[%s593_s1 + $0xe0] ss:$16 sps:$4 sm:$0xff]  }
  0x17   :  { %244 = vmatpush1.bf16.msra.mxu0 %v413_v23  ;;  %287 = vmatpush1.bf16.msra.mxu1 %v414_v24  ;;  %v426_v32 = vld [vmem:[%s593_s1 + $0xe8] ss:$16 sps:$4 sm:$0xff]   ;;  %v16_v33 = vld [vmem:[%s592_s0] sm:$0xff]  ;;  %v54_v37 = vshrl.u32 %v53_v36, 7 }
  0x18   :  { %245 = vmatprep.subr.bf16.mxu0 %v415_v25  ;;  %288 = vmatprep.subr.bf16.mxu1 %v417_v26  ;;  %v17_v34 = vld [vmem:[%s592_s0 + $0x8] sm:$0xff]  ;;  %v51_v40 = vld [vmem:[%s594_s2] sm:$0xf]  ;;  %s452_s0 = smov [#allocation2]  }
  0x19   :  { %v18_v35 = vpack.c.bf16 %v17_v34, %v16_v33  ;;  %v55_v38 = vsub.s32 0, %v54_v37  ;;  %v63_v39 = vsub.s32 2, %v54_v37  ;;  %v59_v41 = vsub.s32 1, %v54_v37  ;;  %s332_s27 = sshll.u32 %s452_s0, 4  ;;  %s333_s27 = int_to_ptr.vmem [resolvable:$true] %s332_s27 }
  0x1a   :  { %v67_v42 = vsub.s32 3, %v54_v37  ;;  %s427_s2 = scalar_lea.vmem %s333_s27, 1024  ;;  %p432_p1 = scmp.lt.s32.totalorder %s333_s27, %s333_s27 }
  0x1b   :  { %246 = vmatpush1.bf16.msra.mxu0 %v419_v27  ;;  %289 = vmatpush1.bf16.msra.mxu1 %v420_v28  ;;  %v56_v43 = vrot.slane %v51_v40, %v55_v38  ;;  %v64_v44 = vrot.slane %v51_v40, %v63_v39  ;;  %v60_v45 = vrot.slane %v51_v40, %v59_v41  ;;  %p428_p0 = scmp.ne.s32.totalorder %s333_s27, %s427_s2  ;;  %p433_p2 = scmp.lt.s32.totalorder %s427_s2, %s427_s2 }
  0x1c   :  { %247 = vmatprep.subr.bf16.mxu0 %v421_v29  ;;  %290 = vmatprep.subr.bf16.mxu1 %v423_v30  ;;  %v68_v46 = vrot.slane %v51_v40, %v67_v42 }
  0x1d   :  { %p434_p3 = por %p433_p2, %p432_p1 }
  0x1f   :  { %248 = vmatpush1.bf16.msra.mxu0 %v425_v31  ;;  %291 = vmatpush1.bf16.msra.mxu1 %v426_v32  ;;  %p435_p4 = pnand %p434_p3, %p428_p0 }
  0x22   :  { %266 = vmatmul.mubr.bf16.vlgmr.msra.gmra.mrb[0].mxu0 %v18_v35  ;;  %309 = vmatmul.mubr.bf16.vlgmr.msra.gmra.mrb[0].mxu1 %v18_v35 }
  0xf5   :  { %v267_v47 = vpop.f32.mrb[0].mxu0  ;;  %v310_v48 = vpop.f32.mrb[0].mxu1 }
  0xf6   :  { %v268_v49 = vadd.f32 %v267_v47, %v56_v43  ;;  %v311_v50 = vadd.f32 %v310_v48, %v64_v44  ;;  %v269_v51 = vpop.f32.mrb[1].mxu0  ;;  %v312_v52 = vpop.f32.mrb[1].mxu1 }
  0xf7   :  { %v270_v53 = vadd.f32 %v269_v51, %v60_v45  ;;  %v313_v54 = vadd.f32 %v312_v52, %v68_v46  ;;  %v271_v55 = vpop.f32.mrb[2].mxu0  ;;  %v314_v56 = vpop.f32.mrb[2].mxu1 }
  0xf8   :  { %319 = vst [vmem:[#allocation2] sm:$0xff] %v268_v49  ;;  %321 = vst [vmem:[#allocation2 + $0x10] sm:$0xff] %v311_v50  ;;  %v272_v57 = vadd.f32 %v271_v55, %v56_v43  ;;  %v315_v58 = vadd.f32 %v314_v56, %v64_v44  ;;  %v273_v59 = vpop.f32.mrb[3].mxu0  ;;  %v316_v60 = vpop.f32.mrb[3].mxu1 }
  0xf9   :  { %320 = vst [vmem:[#allocation2 + $0x8] sm:$0xff] %v270_v53  ;;  %322 = vst [vmem:[#allocation2 + $0x18] sm:$0xff] %v313_v54  ;;  %v274_v61 = vadd.f32 %v273_v59, %v60_v45  ;;  %v317_v62 = vadd.f32 %v316_v60, %v68_v46 }
  0xfa   :  { %323 = vst [vmem:[#allocation2 + $0x20] sm:$0xff] %v272_v57  ;;  %325 = vst [vmem:[#allocation2 + $0x30] sm:$0xff] %v315_v58 }
  0xfb   :  { %324 = vst [vmem:[#allocation2 + $0x28] sm:$0xff] %v274_v61  ;;  %326 = vst [vmem:[#allocation2 + $0x38] sm:$0xff] %v317_v62 }
  0xfc   :  { %438 = shalt.err (!%p435_p4)
}
  0xfd   :  { %s439_s30 = scalar_lea.hbm %s595_s3, 1024 }
  0xfe   :  { %p440_p5 = scmp.ne.s32.totalorder %s595_s3, %s439_s30  ;;  %p443_p6 = scmp.lt.u32.totalorder %s439_s30, %s595_s3 }
 0x100   :  { %p445_p7 = pnand %p443_p6, %p440_p5 }
 0x102   :  { %448 = shalt.err (!%p445_p7)
}
 0x103   :  { %s453_s8 = smov 512   ;;  %s454_s9 = smov 32  }
 0x104   :  { %338 = dma.vmem_to_hbm [thread:$0]  %s333_s27, 1024, %s595_s3, [#allocation3], %s453_s8, %s453_s8, %s454_s9  }
 0x105   :  { %449 = dma.done.wait [#allocation3], 1024  }
 0x106   :  { %450 = vsyncadd [#allocation3], 4294966272 }
 0x107   :  { %342 = vsyncpa [#allocation3], 1 }

// kernel: mlm_forward.11
= control target key start
LH: loop header
LB: loop body
LE: loop exit
PB: predicated region body
PF: predicated region fallthrough
CT: control target
= control target key end

     0   :  { %v1012_v36 = vmov 0   ;;  %s1331_s0 = inlined_call_operand.vmem [shape: f32[16,128], index: 0, kind: input, shape index: {}]   ;;  %s1332_s3 = inlined_call_operand.vmem [shape: bf16[128,512], index: 3, kind: input, shape index: {}]   ;;  %s1333_s1 = inlined_call_operand.vmem [shape: f32[1,128], index: 1, kind: input, shape index: {}]   ;;  %s1334_s2 = inlined_call_operand.vmem [shape: f32[1,128], index: 2, kind: input, shape index: {}]   ;;  %s1335_s5 = inlined_call_operand.vmem [shape: bf16[512,128], index: 5, kind: input, shape index: {}]   ;;  %s1336_s4 = inlined_call_operand.vmem [shape: f32[1,512], index: 4, kind: input, shape index: {}]   ;;  %s1337_s6 = inlined_call_operand.vmem [shape: f32[1,128], index: 6, kind: input, shape index: {}]   ;;  %s1338_s7 = inlined_call_operand.vmem [shape: f32[16,128], index: 7, kind: output, shape index: {}]  }
   0x1   :  { %v1056_v0 = vld [vmem:[%s1331_s0] sm:$0xff]  ;;  %v1062_v1 = vld [vmem:[%s1331_s0 + $0x8] sm:$0xff]  ;;  %317 = vmatprep.mubr.bf16.mxu0 %v1012_v36  ;;  %360 = vmatprep.mubr.bf16.mxu1 %v1012_v36 }
   0x2   :  { %31 = vadd.xlane.f32.xlu0 %v1056_v0  ;;  %v912_v2 = vld [vmem:[%s1332_s3 + $0x4] ss:$16 sps:$4 sm:$0xff]   ;;  %v914_v3 = vld [vmem:[%s1332_s3 + $0xc] ss:$16 sps:$4 sm:$0xff]   ;;  %v916_v4 = vld [vmem:[%s1332_s3] ss:$16 sps:$4 sm:$0xff]  }
   0x3   :  { %285 = vmatprep.subr.bf16.mxu0 %v912_v2  ;;  %v917_v5 = vld [vmem:[%s1332_s3 + $0x8] ss:$16 sps:$4 sm:$0xff]   ;;  %328 = vmatprep.subr.bf16.mxu1 %v914_v3  ;;  %v918_v6 = vld [vmem:[%s1332_s3 + $0x24] ss:$16 sps:$4 sm:$0xff]   ;;  %v920_v7 = vld [vmem:[%s1332_s3 + $0x2c] ss:$16 sps:$4 sm:$0xff]  }
   0x4   :  { %286 = vmatpush1.bf16.msra.mxu0 %v916_v4  ;;  %329 = vmatpush1.bf16.msra.mxu1 %v917_v5  ;;  %v922_v16 = vld [vmem:[%s1332_s3 + $0x20] ss:$16 sps:$4 sm:$0xff]   ;;  %v923_v17 = vld [vmem:[%s1332_s3 + $0x28] ss:$16 sps:$4 sm:$0xff]   ;;  %v924_v18 = vld [vmem:[%s1332_s3 + $0x44] ss:$16 sps:$4 sm:$0xff]  }
   0x5   :  { %287 = vmatprep.subr.bf16.mxu0 %v918_v6  ;;  %330 = vmatprep.subr.bf16.mxu1 %v920_v7  ;;  %v926_v19 = vld [vmem:[%s1332_s3 + $0x4c] ss:$16 sps:$4 sm:$0xff]   ;;  %v928_v20 = vld [vmem:[%s1332_s3 + $0x40] ss:$16 sps:$4 sm:$0xff]   ;;  %v929_v21 = vld [vmem:[%s1332_s3 + $0x48] ss:$16 sps:$4 sm:$0xff]  }
   0x6   :  { %33 = vadd.xlane.f32.xlu0 %v1062_v1  ;;  %v930_v22 = vld [vmem:[%s1332_s3 + $0x64] ss:$16 sps:$4 sm:$0xff]   ;;  %v932_v23 = vld [vmem:[%s1332_s3 + $0x6c] ss:$16 sps:$4 sm:$0xff]   ;;  %v934_v24 = vld [vmem:[%s1332_s3 + $0x60] ss:$16 sps:$4 sm:$0xff]  }
   0x7   :  { %v935_v25 = vld [vmem:[%s1332_s3 + $0x68] ss:$16 sps:$4 sm:$0xff]   ;;  %v936_v26 = vld [vmem:[%s1332_s3 + $0x84] ss:$16 sps:$4 sm:$0xff]   ;;  %v938_v27 = vld [vmem:[%s1332_s3 + $0x8c] ss:$16 sps:$4 sm:$0xff]  }
   0x8   :  { %288 = vmatpush1.bf16.msra.mxu0 %v922_v16  ;;  %331 = vmatpush1.bf16.msra.mxu1 %v923_v17  ;;  %v940_v28 = vld [vmem:[%s1332_s3 + $0x80] ss:$16 sps:$4 sm:$0xff]   ;;  %v941_v29 = vld [vmem:[%s1332_s3 + $0x88] ss:$16 sps:$4 sm:$0xff]   ;;  %v942_v30 = vld [vmem:[%s1332_s3 + $0xa4] ss:$16 sps:$4 sm:$0xff]  }
   0x9   :  { %289 = vmatprep.subr.bf16.mxu0 %v924_v18  ;;  %332 = vmatprep.subr.bf16.mxu1 %v926_v19  ;;  %v944_v31 = vld [vmem:[%s1332_s3 + $0xac] ss:$16 sps:$4 sm:$0xff]   ;;  %v946_v32 = vld [vmem:[%s1332_s3 + $0xa0] ss:$16 sps:$4 sm:$0xff]   ;;  %v947_v33 = vld [vmem:[%s1332_s3 + $0xa8] ss:$16 sps:$4 sm:$0xff]  }
   0xa   :  { %v948_v34 = vld [vmem:[%s1332_s3 + $0xc4] ss:$16 sps:$4 sm:$0xff]   ;;  %v950_v35 = vld [vmem:[%s1332_s3 + $0xcc] ss:$16 sps:$4 sm:$0xff]   ;;  %v952_v37 = vld [vmem:[%s1332_s3 + $0xc0] ss:$16 sps:$4 sm:$0xff]  }
   0xb   :  { %v953_v38 = vld [vmem:[%s1332_s3 + $0xc8] ss:$16 sps:$4 sm:$0xff]   ;;  %v954_v39 = vld [vmem:[%s1332_s3 + $0xe4] ss:$16 sps:$4 sm:$0xff]   ;;  %v956_v40 = vld [vmem:[%s1332_s3 + $0xec] ss:$16 sps:$4 sm:$0xff]  }
   0xc   :  { %290 = vmatpush1.bf16.msra.mxu0 %v928_v20  ;;  %333 = vmatpush1.bf16.msra.mxu1 %v929_v21  ;;  %v958_v41 = vld [vmem:[%s1332_s3 + $0xe0] ss:$16 sps:$4 sm:$0xff]   ;;  %v959_v42 = vld [vmem:[%s1332_s3 + $0xe8] ss:$16 sps:$4 sm:$0xff]  }
   0xd   :  { %291 = vmatprep.subr.bf16.mxu0 %v930_v22  ;;  %334 = vmatprep.subr.bf16.mxu1 %v932_v23  ;;  %v800_v51 = vld [vmem:[%s1333_s1] ss:$0 sm:$0xff]  ;;  %v964_v2 = vld [vmem:[%s1335_s5 + $0x48] sm:$0xff]   ;;  %v968_v6 = vld [vmem:[%s1335_s5 + $0x50] sm:$0xff]  }
   0xe   :  { %v801_v55 = vld [vmem:[%s1334_s2] ss:$0 sm:$0xff]  ;;  %v965_v3 = vld [vmem:[%s1335_s5 + $0xc8] sm:$0xff]   ;;  %v969_v7 = vld [vmem:[%s1335_s5 + $0xd0] sm:$0xff]  }
   0xf   :  { %v960_v60 = vld [vmem:[%s1335_s5 + $0x40] sm:$0xff]   ;;  %v966_v4 = vld [vmem:[%s1335_s5 + $0x8] sm:$0xff]   ;;  %v984_v22 = vld [vmem:[%s1335_s5 + $0x70] sm:$0xff]  }
  0x10   :  { %292 = vmatpush1.bf16.msra.mxu0 %v934_v24  ;;  %335 = vmatpush1.bf16.msra.mxu1 %v935_v25  ;;  %v961_v61 = vld [vmem:[%s1335_s5 + $0xc0] sm:$0xff]   ;;  %v967_v5 = vld [vmem:[%s1335_s5 + $0x88] sm:$0xff]   ;;  %v985_v23 = vld [vmem:[%s1335_s5 + $0xf0] sm:$0xff]  }
  0x11   :  { %293 = vmatprep.subr.bf16.mxu0 %v936_v26  ;;  %336 = vmatprep.subr.bf16.mxu1 %v938_v27  ;;  %v962_v62 = vld [vmem:[%s1335_s5] sm:$0xff]   ;;  %v980_v18 = vld [vmem:[%s1335_s5 + $0x68] sm:$0xff]   ;;  %v986_v24 = vld [vmem:[%s1335_s5 + $0x30] sm:$0xff]  }
  0x12   :  { %v963_v63 = vld [vmem:[%s1335_s5 + $0x80] sm:$0xff]   ;;  %v981_v19 = vld [vmem:[%s1335_s5 + $0xe8] sm:$0xff]   ;;  %v987_v25 = vld [vmem:[%s1335_s5 + $0xb0] sm:$0xff]  }
  0x13   :  { %v978_v16 = vld [vmem:[%s1335_s5 + $0x20] sm:$0xff]   ;;  %v982_v20 = vld [vmem:[%s1335_s5 + $0x28] sm:$0xff]   ;;  %v988_v26 = vld [vmem:[%s1335_s5 + $0x78] sm:$0xff]  }
  0x14   :  { %294 = vmatpush1.bf16.msra.mxu0 %v940_v28  ;;  %337 = vmatpush1.bf16.msra.mxu1 %v941_v29  ;;  %v979_v17 = vld [vmem:[%s1335_s5 + $0xa0] sm:$0xff]   ;;  %v983_v21 = vld [vmem:[%s1335_s5 + $0xa8] sm:$0xff]   ;;  %v989_v27 = vld [vmem:[%s1335_s5 + $0xf8] sm:$0xff]  }
  0x15   :  { %295 = vmatprep.subr.bf16.mxu0 %v942_v30  ;;  %338 = vmatprep.subr.bf16.mxu1 %v944_v31  ;;  %v990_v28 = vld [vmem:[%s1335_s5 + $0x38] sm:$0xff]   ;;  %v105_v30 = vlaneseq }
  0x16   :  { %v991_v29 = vld [vmem:[%s1335_s5 + $0xb8] sm:$0xff]  }
  0x17   :  { %v106_v31 = vshrl.u32 %v105_v30, 7 }
  0x18   :  { %296 = vmatpush1.bf16.msra.mxu0 %v946_v32  ;;  %339 = vmatpush1.bf16.msra.mxu1 %v947_v33 }
  0x19   :  { %297 = vmatprep.subr.bf16.mxu0 %v948_v34  ;;  %340 = vmatprep.subr.bf16.mxu1 %v950_v35  ;;  %v107_v32 = vsub.s32 0, %v106_v31  ;;  %v115_v33 = vsub.s32 2, %v106_v31  ;;  %v103_v34 = vld [vmem:[%s1336_s4] sm:$0xf]  ;;  %v111_v35 = vsub.s32 1, %v106_v31  ;;  %v119_v36 = vsub.s32 3, %v106_v31 }
  0x1c   :  { %298 = vmatpush1.bf16.msra.mxu0 %v952_v37  ;;  %341 = vmatpush1.bf16.msra.mxu1 %v953_v38  ;;  %v108_v37 = vrot.slane %v103_v34, %v107_v32  ;;  %v116_v38 = vrot.slane %v103_v34, %v115_v33 }
  0x1d   :  { %299 = vmatprep.subr.bf16.mxu0 %v954_v39  ;;  %342 = vmatprep.subr.bf16.mxu1 %v956_v40  ;;  %v112_v39 = vrot.slane %v103_v34, %v111_v35  ;;  %v120_v40 = vrot.slane %v103_v34, %v119_v36 }
  0x20   :  { %300 = vmatpush1.bf16.msra.mxu0 %v958_v41  ;;  %343 = vmatpush1.bf16.msra.mxu1 %v959_v42 }
  0x21   :  { %867 = vmatprep.subr.bf16.mxu0 %v960_v60  ;;  %889 = vmatprep.subr.bf16.mxu1 %v961_v61 }
  0x8f   :  { %v32_v8 = vpop.xlane.xlu0 %31 }
  0x90   :  { %v36_v9 = vmul.f32 0.0078125, %v32_v8  ;;  %v970_v8 = vld [vmem:[%s1335_s5 + $0x10] sm:$0xff]  }
  0x92   :  { %v1084_v10 = vsub.f32 %v1056_v0, %v36_v9  ;;  %v971_v9 = vld [vmem:[%s1335_s5 + $0x90] sm:$0xff]  }
  0x93   :  { %v34_v11 = vpop.xlane.xlu0 %33 }
  0x94   :  { %v37_v12 = vmul.f32 0.0078125, %v34_v11  ;;  %v40_v13 = vmul.f32 %v1084_v10, %v1084_v10  ;;  %v973_v11 = vld [vmem:[%s1335_s5 + $0xd8] sm:$0xff]  }
  0x96   :  { %v1089_v14 = vsub.f32 %v1062_v1, %v37_v12  ;;  %42 = vadd.xlane.f32.xlu1 %v40_v13  ;;  %v974_v12 = vld [vmem:[%s1335_s5 + $0x18] sm:$0xff]  }
  0x97   :  { %v975_v13 = vld [vmem:[%s1335_s5 + $0x98] sm:$0xff]  }
  0x98   :  { %v41_v15 = vmul.f32 %v1089_v14, %v1089_v14 }
  0x9a   :  { %44 = vadd.xlane.f32.xlu1 %v41_v15  ;;  %v977_v15 = vld [vmem:[%s1335_s5 + $0xe0] sm:$0xff]  }
 0x123   :  { %v43_v43 = vpop.xlane.xlu1 %42 }
 0x124   :  { %v46_v44 = vmul.f32 0.0078125, %v43_v43 }
 0x126   :  { %v48_v45 = vadd.f32 1e-05, %v46_v44 }
 0x127   :  { %v45_v46 = vpop.xlane.xlu1 %44 }
 0x128   :  { %992 = vrsqrt.f32 %v48_v45  ;;  %v47_v47 = vmul.f32 0.0078125, %v45_v46 }
 0x12a   :  { %v49_v48 = vadd.f32 1e-05, %v47_v47 }
 0x12c   :  { %994 = vrsqrt.f32 %v49_v48 }
 0x132   :  { %v993_v49 = vpop.eup %992 }
 0x133   :  { %v52_v50 = vmul.f32 %v993_v49, %v1084_v10  ;;  %v972_v10 = vld [vmem:[%s1335_s5 + $0x58] sm:$0xff]  }
 0x135   :  { %v60_v54 = vmul.f32 %v800_v51, %v52_v50 }
 0x136   :  { %v995_v52 = vpop.eup %994 }
 0x137   :  { %v53_v53 = vmul.f32 %v995_v52, %v1089_v14  ;;  %v68_v57 = vadd.f32 %v801_v55, %v60_v54  ;;  %v976_v14 = vld [vmem:[%s1335_s5 + $0x60] sm:$0xff]  }
 0x139   :  { %v61_v56 = vmul.f32 %v800_v51, %v53_v53 }
 0x13b   :  { %v69_v58 = vadd.f32 %v801_v55, %v61_v56 }
 0x13d   :  { %v70_v59 = vpack.c.bf16 %v69_v58, %v68_v57 }
 0x13f   :  { %318 = vmatmul.mubr.bf16.vlgmr.msra.gmra.mrb[0].mxu0 %v70_v59  ;;  %361 = vmatmul.mubr.bf16.vlgmr.msra.gmra.mrb[0].mxu1 %v70_v59 }
 0x140   :  { %868 = vmatpush3.bf16.msra.mxu0 %v962_v62  ;;  %890 = vmatpush3.bf16.msra.mxu1 %v963_v63 }
 0x141   :  { %869 = vmatprep.subr.bf16.mxu0 %v964_v2  ;;  %891 = vmatprep.subr.bf16.mxu1 %v965_v3 }
 0x144   :  { %870 = vmatpush3.bf16.msra.mxu0 %v966_v4  ;;  %892 = vmatpush3.bf16.msra.mxu1 %v967_v5 }
 0x145   :  { %871 = vmatprep.subr.bf16.mxu0 %v968_v6  ;;  %893 = vmatprep.subr.bf16.mxu1 %v969_v7 }
 0x148   :  { %872 = vmatpush3.bf16.msra.mxu0 %v970_v8  ;;  %894 = vmatpush3.bf16.msra.mxu1 %v971_v9 }
 0x149   :  { %873 = vmatprep.subr.bf16.mxu0 %v972_v10  ;;  %895 = vmatprep.subr.bf16.mxu1 %v973_v11 }
 0x14c   :  { %874 = vmatpush3.bf16.msra.mxu0 %v974_v12  ;;  %896 = vmatpush3.bf16.msra.mxu1 %v975_v13 }
 0x14d   :  { %875 = vmatprep.subr.bf16.mxu0 %v976_v14  ;;  %897 = vmatprep.subr.bf16.mxu1 %v977_v15 }
 0x150   :  { %876 = vmatpush3.bf16.msra.mxu0 %v978_v16  ;;  %898 = vmatpush3.bf16.msra.mxu1 %v979_v17 }
 0x151   :  { %877 = vmatprep.subr.bf16.mxu0 %v980_v18  ;;  %899 = vmatprep.subr.bf16.mxu1 %v981_v19 }
 0x154   :  { %878 = vmatpush3.bf16.msra.mxu0 %v982_v20  ;;  %900 = vmatpush3.bf16.msra.mxu1 %v983_v21 }
 0x155   :  { %879 = vmatprep.subr.bf16.mxu0 %v984_v22  ;;  %901 = vmatprep.subr.bf16.mxu1 %v985_v23 }
 0x158   :  { %880 = vmatpush3.bf16.msra.mxu0 %v986_v24  ;;  %902 = vmatpush3.bf16.msra.mxu1 %v987_v25 }
 0x159   :  { %881 = vmatprep.subr.bf16.mxu0 %v988_v26  ;;  %903 = vmatprep.subr.bf16.mxu1 %v989_v27 }
 0x15c   :  { %882 = vmatpush3.bf16.msra.mxu0 %v990_v28  ;;  %904 = vmatpush3.bf16.msra.mxu1 %v991_v29 }
 0x212   :  { %v319_v41 = vpop.f32.mrb[0].mxu0  ;;  %v362_v42 = vpop.f32.mrb[0].mxu1 }
 0x213   :  { %v1278_v43 = vadd.f32 %v319_v41, %v108_v37  ;;  %v1280_v44 = vadd.f32 %v362_v42, %v116_v38  ;;  %v321_v45 = vpop.f32.mrb[1].mxu0  ;;  %v364_v46 = vpop.f32.mrb[1].mxu1 }
 0x214   :  { %v1282_v47 = vadd.f32 %v321_v45, %v112_v39  ;;  %v1284_v48 = vadd.f32 %v364_v46, %v120_v40  ;;  %v323_v49 = vpop.f32.mrb[2].mxu0  ;;  %v366_v50 = vpop.f32.mrb[2].mxu1 }
 0x215   :  { %v379_v51 = vmul.f32 0.044715, %v1278_v43  ;;  %v381_v52 = vmul.f32 0.044715, %v1280_v44  ;;  %v324_v53 = vadd.f32 %v323_v49, %v108_v37  ;;  %v367_v54 = vadd.f32 %v366_v50, %v116_v38  ;;  %v325_v55 = vpop.f32.mrb[3].mxu0  ;;  %v368_v56 = vpop.f32.mrb[3].mxu1 }
 0x216   :  { %v380_v57 = vmul.f32 0.044715, %v1282_v47  ;;  %v382_v58 = vmul.f32 0.044715, %v1284_v48  ;;  %v1290_v59 = vadd.f32 %v325_v55, %v112_v39  ;;  %v1292_v60 = vadd.f32 %v368_v56, %v120_v40 }
 0x217   :  { %v387_v61 = vmul.f32 %v379_v51, %v1278_v43  ;;  %v389_v62 = vmul.f32 %v381_v52, %v1280_v44  ;;  %v383_v63 = vmul.f32 0.044715, %v324_v53  ;;  %v385_v2 = vmul.f32 0.044715, %v367_v54 }
 0x218   :  { %v388_v3 = vmul.f32 %v380_v57, %v1282_v47  ;;  %v390_v4 = vmul.f32 %v382_v58, %v1284_v48  ;;  %v384_v5 = vmul.f32 0.044715, %v1290_v59  ;;  %v386_v6 = vmul.f32 0.044715, %v1292_v60 }
 0x219   :  { %v395_v7 = vmul.f32 %v387_v61, %v1278_v43  ;;  %v397_v8 = vmul.f32 %v389_v62, %v1280_v44  ;;  %v391_v9 = vmul.f32 %v383_v63, %v324_v53  ;;  %v393_v10 = vmul.f32 %v385_v2, %v367_v54 }
 0x21a   :  { %v396_v11 = vmul.f32 %v388_v3, %v1282_v47  ;;  %v398_v12 = vmul.f32 %v390_v4, %v1284_v48  ;;  %v392_v13 = vmul.f32 %v384_v5, %v1290_v59  ;;  %v394_v14 = vmul.f32 %v386_v6, %v1292_v60 }
 0x21b   :  { %v403_v15 = vadd.f32 %v395_v7, %v1278_v43  ;;  %v405_v16 = vadd.f32 %v397_v8, %v1280_v44  ;;  %v399_v17 = vmul.f32 %v391_v9, %v324_v53  ;;  %v401_v18 = vmul.f32 %v393_v10, %v367_v54 }
 0x21c   :  { %v400_v19 = vmul.f32 %v392_v13, %v1290_v59  ;;  %v402_v20 = vmul.f32 %v394_v14, %v1292_v60  ;;  %v404_v25 = vadd.f32 %v396_v11, %v1282_v47  ;;  %v406_v29 = vadd.f32 %v398_v12, %v1284_v48 }
 0x21d   :  { %v411_v21 = vmul.f32 0.7978846, %v403_v15  ;;  %v413_v22 = vmul.f32 0.7978846, %v405_v16  ;;  %v407_v23 = vadd.f32 %v399_v17, %v324_v53  ;;  %v409_v24 = vadd.f32 %v401_v18, %v367_v54 }
 0x21e   :  { %v408_v26 = vadd.f32 %v400_v19, %v1290_v59  ;;  %v412_v30 = vmul.f32 0.7978846, %v404_v25  ;;  %v410_v32 = vadd.f32 %v402_v20, %v1292_v60  ;;  %v414_v33 = vmul.f32 0.7978846, %v406_v29 }
 0x21f   :  { %996 = vtanh.f32 %v411_v21  ;;  %v415_v27 = vmul.f32 0.7978846, %v407_v23  ;;  %v417_v28 = vmul.f32 0.7978846, %v409_v24  ;;  %v371_v41 = vmul.f32 0.5, %v1278_v43 }
 0x220   :  { %998 = vtanh.f32 %v413_v22  ;;  %v416_v31 = vmul.f32 0.7978846, %v408_v26  ;;  %v418_v34 = vmul.f32 0.7978846, %v410_v32  ;;  %v375_v42 = vmul.f32 0.5, %v324_v53 }
 0x221   :  { %1000 = vtanh.f32 %v415_v27  ;;  %v373_v49 = vmul.f32 0.5, %v1280_v44  ;;  %v377_v50 = vmul.f32 0.5, %v367_v54  ;;  %v372_v55 = vmul.f32 0.5, %v1282_v47 }
 0x222   :  { %1002 = vtanh.f32 %v417_v28  ;;  %v376_v62 = vmul.f32 0.5, %v1290_v59  ;;  %v374_v53 = vmul.f32 0.5, %v1284_v48  ;;  %v378_v4 = vmul.f32 0.5, %v1292_v60  ;;  %v834_v48 = vld [vmem:[%s1337_s6] ss:$0 sm:$0xff] }
 0x223   :  { %1004 = vtanh.f32 %v412_v30 }
 0x224   :  { %1006 = vtanh.f32 %v416_v31 }
 0x225   :  { %1008 = vtanh.f32 %v414_v33 }
 0x226   :  { %1010 = vtanh.f32 %v418_v34 }
 0x229   :  { %v997_v35 = vpop.eup %996 }
 0x22a   :  { %v999_v36 = vpop.eup %998  ;;  %v427_v37 = vadd.f32 1.0, %v997_v35 }
 0x22b   :  { %v1001_v38 = vpop.eup %1000  ;;  %v429_v39 = vadd.f32 1.0, %v999_v36 }
 0x22c   :  { %v1003_v40 = vpop.eup %1002  ;;  %v431_v45 = vadd.f32 1.0, %v1001_v38  ;;  %v435_v57 = vmul.f32 %v427_v37, %v371_v41 }
 0x22d   :  { %v1005_v46 = vpop.eup %1004  ;;  %v433_v51 = vadd.f32 1.0, %v1003_v40  ;;  %v437_v2 = vmul.f32 %v429_v39, %v373_v49 }
 0x22e   :  { %v1007_v52 = vpop.eup %1006  ;;  %v428_v56 = vadd.f32 1.0, %v1005_v46  ;;  %v439_v58 = vmul.f32 %v431_v45, %v375_v42 }
 0x22f   :  { %v1009_v61 = vpop.eup %1008  ;;  %v432_v63 = vadd.f32 1.0, %v1007_v52  ;;  %v441_v3 = vmul.f32 %v433_v51, %v377_v50 }
 0x230   :  { %v1011_v43 = vpop.eup %1010  ;;  %v430_v44 = vadd.f32 1.0, %v1009_v61  ;;  %v443_v54 = vpack.c.bf16 %v439_v58, %v435_v57  ;;  %v436_v5 = vmul.f32 %v428_v56, %v372_v55 }
 0x231   :  { %v440_v6 = vmul.f32 %v432_v63, %v376_v62  ;;  %v434_v7 = vadd.f32 1.0, %v1011_v43  ;;  %v445_v47 = vpack.c.bf16 %v441_v3, %v437_v2 }
 0x232   :  { %v438_v9 = vmul.f32 %v430_v44, %v374_v53 }
 0x233   :  { %v444_v8 = vpack.c.bf16 %v440_v6, %v436_v5  ;;  %v442_v10 = vmul.f32 %v434_v7, %v378_v4 }
 0x235   :  { %742 = vmatprep.mubr.bf16.mxu0 %v444_v8  ;;  %v446_v11 = vpack.c.bf16 %v442_v10, %v438_v9 }
 0x236   :  { %743 = vmatmul.mubr.bf16.vlgmr.msra.gmra.mrb[4].mxu0 %v443_v54 }
 0x237   :  { %783 = vmatprep.mubr.bf16.mxu1 %v446_v11 }
 0x238   :  { %784 = vmatmul.mubr.bf16.vlgmr.msra.gmra.mrb[4].mxu1 %v445_v47 }
 0x309   :  { %v883_v59 = vpop.f32.mrb[4].mxu0 }
 0x30a   :  { %v884_v60 = vpop.f32.mrb[5].mxu0 }
 0x30b   :  { %v905_v12 = vpop.f32.mrb[4].mxu1  ;;  %v885_v13 = vadd.f32 %v884_v60, %v883_v59  ;;  %v886_v14 = vpop.f32.mrb[6].mxu0 }
 0x30c   :  { %v906_v15 = vpop.f32.mrb[5].mxu1  ;;  %v887_v16 = vpop.f32.mrb[7].mxu0 }
 0x30d   :  { %v745_v17 = vadd.f32 %v885_v13, %v834_v48  ;;  %v907_v18 = vadd.f32 %v906_v15, %v905_v12  ;;  %v908_v19 = vpop.f32.mrb[6].mxu1  ;;  %v888_v20 = vadd.f32 %v887_v16, %v886_v14 }
 0x30e   :  { %v909_v21 = vpop.f32.mrb[7].mxu1 }
 0x30f   :  { %v786_v22 = vadd.f32 %v907_v18, %v745_v17  ;;  %v748_v23 = vadd.f32 %v888_v20, %v834_v48  ;;  %v910_v24 = vadd.f32 %v909_v21, %v908_v19 }
 0x311   :  { %v792_v25 = vadd.f32 %v786_v22, %v1056_v0  ;;  %v789_v26 = vadd.f32 %v910_v24, %v748_v23 }
 0x313   :  { %794 = vst [vmem:[%s1338_s7] sm:$0xff] %v792_v25  ;;  %v793_v27 = vadd.f32 %v789_v26, %v1062_v1 }
 0x315   :  { %795 = vst [vmem:[%s1338_s7 + $0x8] sm:$0xff] %v793_v27 }

</bundles_post_ra>
